<compile_context>
chip_gen: v7x
topology: tpu7x:2x2x1
jax: 0.10.0
libtpu: 0.0.40
codegen_flags: <defaults>
</compile_context>

<pallas_src>
import jax
import jax.numpy as jnp
from jax.experimental import pallas as pl
from jax.experimental.pallas import tpu as pltpu


def decoder_kernel(enc_ref, h0_ref, maskb_ref, w_ref, b_ref, out_ref):
    """Full T-step attention decoder in one kernel invocation.

    enc_ref   : (B, S, H)  encoder outputs (batch-major)
    h0_ref    : (B, H)     last encoder hidden state
    maskb_ref : (B, 1, S)  additive mask bias: 0 where s < lengths[b], else -1e30
    w_ref     : (8, H, H)  [(W_ir+W_hr)^T, (W_iz+W_hz)^T, W_in^T, W_hn^T,
                            W_hr^T, W_hz^T, W_ctxt[:, :H]^T, W_ctxt[:, H:]^T]
    b_ref     : (4, 1, H)  [b_ir+b_hr, b_iz+b_hz, b_in, b_hn]
    out_ref   : (B, T, H)  htilde for every decode step (batch-major)
    """
    T = out_ref.shape[1]

    # --- hoist all loop-invariant loads out of the recurrence ---
    enc = enc_ref[...]                      # (B, S, H)
    mask_b = maskb_ref[...]                 # (B, 1, S)
    w_r, w_z, w_in, w_hn = w_ref[0], w_ref[1], w_ref[2], w_ref[3]
    whh_r, whh_z = w_ref[4], w_ref[5]       # step-0-only (x == 0) gate weights
    wc_ctx, wc_h = w_ref[6], w_ref[7]       # W_ctxt halves
    b_r, b_z, b_in, b_hn = b_ref[0], b_ref[1], b_ref[2], b_ref[3]

    def attention_project(h):
        # align[b, s] = <enc[b, s, :], h[b, :]>  -> batched MXU matmul (q = 1)
        hq = h[:, None, :]                                       # (B, 1, H)
        align = jnp.einsum('bqh,bsh->bqs', hq, enc,
                           preferred_element_type=jnp.float32)   # (B, 1, S)
        align = align + mask_b                                   # mask s >= lengths[b]
        m = jnp.max(align, axis=-1, keepdims=True)
        e = jnp.exp(align - m)
        denom = jnp.sum(e, axis=-1, keepdims=True)
        w = e * (1.0 / denom)                                    # softmax over S
        ctx = jnp.einsum('bqs,bsh->bqh', w, enc,
                         preferred_element_type=jnp.float32)[:, 0, :]   # (B, H)
        # [ctx, h] @ W_ctxt^T as two aligned (H,H) matmuls (no concat).
        return (jnp.dot(ctx, wc_ctx, preferred_element_type=jnp.float32)
                + jnp.dot(h, wc_h, preferred_element_type=jnp.float32))

    # --- step 0, peeled: GRU input x == 0, so i_* = b_i* ---
    h = h0_ref[...]                                              # (B, H)
    r = jax.nn.sigmoid(jnp.dot(h, whh_r, preferred_element_type=jnp.float32) + b_r)
    z = jax.nn.sigmoid(jnp.dot(h, whh_z, preferred_element_type=jnp.float32) + b_z)
    h_n = jnp.dot(h, w_hn, preferred_element_type=jnp.float32) + b_hn
    n = jnp.tanh(b_in + r * h_n)
    h = (1.0 - z) * n + z * h
    out_ref[:, 0, :] = attention_project(h).astype(out_ref.dtype)

    # --- steps 1..T-1: GRU input x == previous hidden state (fused weights).
    # T is small & static, so a Python unroll emits straight-line code with
    # static store offsets (no scan/while lowering, no dynamic indexing).
    for t in range(1, T):
        r = jax.nn.sigmoid(jnp.dot(h, w_r, preferred_element_type=jnp.float32) + b_r)
        z = jax.nn.sigmoid(jnp.dot(h, w_z, preferred_element_type=jnp.float32) + b_z)
        i_n = jnp.dot(h, w_in, preferred_element_type=jnp.float32) + b_in
        h_n = jnp.dot(h, w_hn, preferred_element_type=jnp.float32) + b_hn
        n = jnp.tanh(i_n + r * h_n)
        h = (1.0 - z) * n + z * h
        out_ref[:, t, :] = attention_project(h).astype(out_ref.dtype)


def attention_decoder_forward(enc_outputs_sbh, last_enc_state, lengths, params):
    """Pallas implementation of AttentionDecoderRNN.forward (method='dot')."""
    S, B, H = enc_outputs_sbh.shape
    T = int(max(lengths))

    enc_bsh = jnp.transpose(enc_outputs_sbh, (1, 0, 2)).astype(jnp.float32)  # (B,S,H)
    h0 = last_enc_state[0].astype(jnp.float32)                               # (B,H)

    lengths_arr = jnp.asarray(lengths, dtype=jnp.int32)
    valid = jnp.arange(S, dtype=jnp.int32)[None, :] < lengths_arr[:, None]   # (B,S)
    mask_bias = jnp.where(valid, 0.0, -1e30).astype(jnp.float32)[:, None, :]  # (B,1,S)

    W_ih = params["W_ih"].astype(jnp.float32)      # (3H, H), gate order r, z, n
    W_hh = params["W_hh"].astype(jnp.float32)      # (3H, H)
    b_ih = params["b_ih"].astype(jnp.float32)      # (3H,)
    b_hh = params["b_hh"].astype(jnp.float32)      # (3H,)
    W_ctxt = params["W_ctxt"].astype(jnp.float32)  # (H, 2H)

    Wir, Wiz, Win = W_ih[:H], W_ih[H:2 * H], W_ih[2 * H:]
    Whr, Whz, Whn = W_hh[:H], W_hh[H:2 * H], W_hh[2 * H:]

    # All weights packed into one operand: per-gate (H,H) blocks, r/z weights
    # pre-fused for t>0 where x == h, plus step-0 W_hh r/z and W_ctxt halves.
    w_all = jnp.stack([
        (Wir + Whr).T, (Wiz + Whz).T, Win.T, Whn.T,   # fused/plain gate weights
        Whr.T, Whz.T,                                  # step-0 (x == 0) r/z
        W_ctxt[:, :H].T, W_ctxt[:, H:].T,              # W_ctxt halves
    ], axis=0)                                                                  # (8,H,H)
    b_all = jnp.stack([
        (b_ih[:H] + b_hh[:H])[None, :],
        (b_ih[H:2 * H] + b_hh[H:2 * H])[None, :],
        b_ih[2 * H:][None, :],
        b_hh[2 * H:][None, :],
    ], axis=0)                                                                  # (4,1,H)

    def full(shape):
        return pl.BlockSpec(shape, lambda i: (0,) * len(shape))

    out_bth = pl.pallas_call(
        decoder_kernel,
        out_shape=jax.ShapeDtypeStruct((B, T, H), jnp.float32),
        grid=(1,),  # single invocation; recurrence lives in an in-kernel loop
        in_specs=[
            full((B, S, H)),      # enc
            full((B, H)),         # h0
            full((B, 1, S)),      # additive mask bias
            full((8, H, H)),      # packed weights
            full((4, 1, H)),      # gate biases
        ],
        out_specs=pl.BlockSpec((B, T, H), lambda i: (0, 0, 0)),
        compiler_params=pltpu.CompilerParams(
            dimension_semantics=("arbitrary",)),
    )(enc_bsh, h0, mask_bias, w_all, b_all)

    # Already matches torch.cat(htildes).transpose(1, 0): (B, T, H)
    return out_bth


def reference_forward(enc_outputs_sbh, last_enc_state, lengths, params):
    """Pure-JAX reference mirroring the PyTorch forward (method='dot')."""
    S, B, H = enc_outputs_sbh.shape
    T = int(max(lengths))
    prec = jax.lax.Precision.HIGHEST
    enc_bsh = jnp.transpose(enc_outputs_sbh, (1, 0, 2))
    lengths_arr = jnp.asarray(lengths, dtype=jnp.int32)
    mask = jnp.arange(S)[None, :] < lengths_arr[:, None]
    h = last_enc_state[0]
    outs = []
    for t in range(T):
        x = jnp.zeros_like(h) if t == 0 else h
        gi = jnp.dot(x, params["W_ih"].T, precision=prec) + params["b_ih"]
        gh = jnp.dot(h, params["W_hh"].T, precision=prec) + params["b_hh"]
        i_r, i_z, i_n = jnp.split(gi, 3, axis=1)
        h_r, h_z, h_n = jnp.split(gh, 3, axis=1)
        r = jax.nn.sigmoid(i_r + h_r)
        z = jax.nn.sigmoid(i_z + h_z)
        n = jnp.tanh(i_n + r * h_n)
        h = (1.0 - z) * n + z * h
        align = jnp.einsum("bsh,bh->bs", enc_bsh, h, precision=prec)
        align = jnp.where(mask, align, -jnp.inf)
        w = jax.nn.softmax(align, axis=1)
        ctx = jnp.einsum("bs,bsh->bh", w, enc_bsh, precision=prec)
        sc = jnp.concatenate([ctx, h], axis=1)
        outs.append(jnp.dot(sc, params["W_ctxt"].T, precision=prec))
    return jnp.stack(outs, axis=1)  # (B, T, H)


if __name__ == "__main__":
    # Small shapes: input_size == hidden_size (required for the torch loop to
    # typecheck), batch=2, encoder seq=8.
    H = 32            # hidden_size == input_size
    B = 2             # batch
    S = 8             # encoder sequence length
    lengths = [8, 5]  # per-example valid encoder lengths; T = max = 8

    key = jax.random.PRNGKey(0)
    keys = jax.random.split(key, 8)
    scale = 1.0 / jnp.sqrt(jnp.float32(H))

    params = {
        # nn.GRU(input_size=H, hidden_size=H, num_layers=1) weights (gate order r,z,n)
        "W_ih": jax.random.normal(keys[0], (3 * H, H), jnp.float32) * scale,
        "W_hh": jax.random.normal(keys[1], (3 * H, H), jnp.float32) * scale,
        "b_ih": jax.random.normal(keys[2], (3 * H,), jnp.float32) * scale,
        "b_hh": jax.random.normal(keys[3], (3 * H,), jnp.float32) * scale,
        # W_ctxt = nn.Parameter(torch.randn(H, 2H)) -- scaled down for stability
        "W_ctxt": jax.random.normal(keys[4], (H, 2 * H), jnp.float32) * 0.1,
    }

    enc_outputs = jax.random.normal(keys[5], (S, B, H), jnp.float32)     # (S, B, H)
    last_enc_state = jax.random.normal(keys[6], (1, B, H), jnp.float32)  # (1, B, H)

    out = attention_decoder_forward(enc_outputs, last_enc_state, lengths, params)
    out = jax.block_until_ready(out)

    ref = reference_forward(enc_outputs, last_enc_state, lengths, params)
    assert out.shape == (B, max(lengths), H), out.shape
    max_err = float(jnp.max(jnp.abs(out - ref)))
    assert jnp.allclose(out, ref, rtol=2e-3, atol=2e-3), max_err

    print("KERNEL_OK")
</pallas_src>

<mosaic_0001>
module attributes {stable_mosaic.version = 11 : i64} {
  func.func @decoder_kernel(%arg0: i32, %arg1: memref<2x8x32xf32, #tpu.memory_space<vmem>>, %arg2: memref<2x32xf32, #tpu.memory_space<vmem>>, %arg3: memref<2x1x8xf32, #tpu.memory_space<vmem>>, %arg4: memref<8x32x32xf32, #tpu.memory_space<vmem>>, %arg5: memref<4x1x32xf32, #tpu.memory_space<vmem>>, %arg6: memref<2x8x32xf32, #tpu.memory_space<vmem>>) attributes {dimension_semantics = [#tpu.dimension_semantics<arbitrary>], iteration_bounds = array<i64: 1>, scalar_prefetch = 0 : i64, scratch_operands = 0 : i64, tpu.core_type = #tpu.core_type<tc>, window_params = [{pipeline_mode = #tpu.pipeline_mode<synchronous>, transform_indices = @transform_0, window_bounds = array<i64: 2, 8, 32>}, {pipeline_mode = #tpu.pipeline_mode<synchronous>, transform_indices = @transform_1, window_bounds = array<i64: 2, 32>}, {pipeline_mode = #tpu.pipeline_mode<synchronous>, transform_indices = @transform_2, window_bounds = array<i64: 2, 1, 8>}, {pipeline_mode = #tpu.pipeline_mode<synchronous>, transform_indices = @transform_3, window_bounds = array<i64: 8, 32, 32>}, {pipeline_mode = #tpu.pipeline_mode<synchronous>, transform_indices = @transform_4, window_bounds = array<i64: 4, 1, 32>}, {pipeline_mode = #tpu.pipeline_mode<synchronous>, transform_indices = @transform_5, window_bounds = array<i64: 2, 8, 32>}]} {
    %c0 = arith.constant 0 : index
    %c0_0 = arith.constant 0 : index
    %c0_1 = arith.constant 0 : index
    %0 = vector.load %arg1[%c0, %c0_0, %c0_1] : memref<2x8x32xf32, #tpu.memory_space<vmem>>, vector<2x8x32xf32>
    %c0_2 = arith.constant 0 : index
    %c0_3 = arith.constant 0 : index
    %c0_4 = arith.constant 0 : index
    %1 = vector.load %arg3[%c0_2, %c0_3, %c0_4] : memref<2x1x8xf32, #tpu.memory_space<vmem>>, vector<2x1x8xf32>
    %c0_5 = arith.constant 0 : index
    %c0_6 = arith.constant 0 : index
    %c0_7 = arith.constant 0 : index
    %2 = vector.load %arg4[%c0_5, %c0_6, %c0_7] : memref<8x32x32xf32, #tpu.memory_space<vmem>>, vector<1x32x32xf32>
    %3 = vector.shape_cast %2 : vector<1x32x32xf32> to vector<32x32xf32>
    %c1 = arith.constant 1 : index
    %c0_8 = arith.constant 0 : index
    %c0_9 = arith.constant 0 : index
    %4 = vector.load %arg4[%c1, %c0_8, %c0_9] : memref<8x32x32xf32, #tpu.memory_space<vmem>>, vector<1x32x32xf32>
    %5 = vector.shape_cast %4 : vector<1x32x32xf32> to vector<32x32xf32>
    %c2 = arith.constant 2 : index
    %c0_10 = arith.constant 0 : index
    %c0_11 = arith.constant 0 : index
    %6 = vector.load %arg4[%c2, %c0_10, %c0_11] : memref<8x32x32xf32, #tpu.memory_space<vmem>>, vector<1x32x32xf32>
    %7 = vector.shape_cast %6 : vector<1x32x32xf32> to vector<32x32xf32>
    %c3 = arith.constant 3 : index
    %c0_12 = arith.constant 0 : index
    %c0_13 = arith.constant 0 : index
    %8 = vector.load %arg4[%c3, %c0_12, %c0_13] : memref<8x32x32xf32, #tpu.memory_space<vmem>>, vector<1x32x32xf32>
    %9 = vector.shape_cast %8 : vector<1x32x32xf32> to vector<32x32xf32>
    %c4 = arith.constant 4 : index
    %c0_14 = arith.constant 0 : index
    %c0_15 = arith.constant 0 : index
    %10 = vector.load %arg4[%c4, %c0_14, %c0_15] : memref<8x32x32xf32, #tpu.memory_space<vmem>>, vector<1x32x32xf32>
    %11 = vector.shape_cast %10 : vector<1x32x32xf32> to vector<32x32xf32>
    %c5 = arith.constant 5 : index
    %c0_16 = arith.constant 0 : index
    %c0_17 = arith.constant 0 : index
    %12 = vector.load %arg4[%c5, %c0_16, %c0_17] : memref<8x32x32xf32, #tpu.memory_space<vmem>>, vector<1x32x32xf32>
    %13 = vector.shape_cast %12 : vector<1x32x32xf32> to vector<32x32xf32>
    %c6 = arith.constant 6 : index
    %c0_18 = arith.constant 0 : index
    %c0_19 = arith.constant 0 : index
    %14 = vector.load %arg4[%c6, %c0_18, %c0_19] : memref<8x32x32xf32, #tpu.memory_space<vmem>>, vector<1x32x32xf32>
    %15 = vector.shape_cast %14 : vector<1x32x32xf32> to vector<32x32xf32>
    %c7 = arith.constant 7 : index
    %c0_20 = arith.constant 0 : index
    %c0_21 = arith.constant 0 : index
    %16 = vector.load %arg4[%c7, %c0_20, %c0_21] : memref<8x32x32xf32, #tpu.memory_space<vmem>>, vector<1x32x32xf32>
    %17 = vector.shape_cast %16 : vector<1x32x32xf32> to vector<32x32xf32>
    %c0_22 = arith.constant 0 : index
    %c0_23 = arith.constant 0 : index
    %c0_24 = arith.constant 0 : index
    %18 = vector.load %arg5[%c0_22, %c0_23, %c0_24] : memref<4x1x32xf32, #tpu.memory_space<vmem>>, vector<1x1x32xf32>
    %19 = vector.shape_cast %18 : vector<1x1x32xf32> to vector<1x32xf32>
    %c1_25 = arith.constant 1 : index
    %c0_26 = arith.constant 0 : index
    %c0_27 = arith.constant 0 : index
    %20 = vector.load %arg5[%c1_25, %c0_26, %c0_27] : memref<4x1x32xf32, #tpu.memory_space<vmem>>, vector<1x1x32xf32>
    %21 = vector.shape_cast %20 : vector<1x1x32xf32> to vector<1x32xf32>
    %c2_28 = arith.constant 2 : index
    %c0_29 = arith.constant 0 : index
    %c0_30 = arith.constant 0 : index
    %22 = vector.load %arg5[%c2_28, %c0_29, %c0_30] : memref<4x1x32xf32, #tpu.memory_space<vmem>>, vector<1x1x32xf32>
    %23 = vector.shape_cast %22 : vector<1x1x32xf32> to vector<1x32xf32>
    %c3_31 = arith.constant 3 : index
    %c0_32 = arith.constant 0 : index
    %c0_33 = arith.constant 0 : index
    %24 = vector.load %arg5[%c3_31, %c0_32, %c0_33] : memref<4x1x32xf32, #tpu.memory_space<vmem>>, vector<1x1x32xf32>
    %25 = vector.shape_cast %24 : vector<1x1x32xf32> to vector<1x32xf32>
    %c0_34 = arith.constant 0 : index
    %c0_35 = arith.constant 0 : index
    %26 = vector.load %arg2[%c0_34, %c0_35] : memref<2x32xf32, #tpu.memory_space<vmem>>, vector<2x32xf32>
    %cst = arith.constant dense<0.000000e+00> : vector<2x32xf32>
    %27 = tpu.matmul %26, %11, %cst {dimension_numbers = #tpu.dot_dimension_numbers<[1], [0], [0], [1], [0, 0, 1, 1], [], []>} : vector<2x32xf32>, vector<32x32xf32>, vector<2x32xf32> -> vector<2x32xf32>
    %28 = vector.broadcast %19 : vector<1x32xf32> to vector<2x32xf32>
    %29 = arith.addf %27, %28 : vector<2x32xf32>
    %30 = arith.negf %29 : vector<2x32xf32>
    %31 = math.exp %30 : vector<2x32xf32>
    %cst_36 = arith.constant 1.000000e+00 : f32
    %32 = vector.broadcast %cst_36 : f32 to vector<2x32xf32>
    %33 = arith.addf %32, %31 : vector<2x32xf32>
    %34 = arith.divf %32, %33 : vector<2x32xf32>
    %cst_37 = arith.constant dense<0.000000e+00> : vector<2x32xf32>
    %35 = tpu.matmul %26, %13, %cst_37 {dimension_numbers = #tpu.dot_dimension_numbers<[1], [0], [0], [1], [0, 0, 1, 1], [], []>} : vector<2x32xf32>, vector<32x32xf32>, vector<2x32xf32> -> vector<2x32xf32>
    %36 = vector.broadcast %21 : vector<1x32xf32> to vector<2x32xf32>
    %37 = arith.addf %35, %36 : vector<2x32xf32>
    %38 = arith.negf %37 : vector<2x32xf32>
    %39 = math.exp %38 : vector<2x32xf32>
    %cst_38 = arith.constant 1.000000e+00 : f32
    %40 = vector.broadcast %cst_38 : f32 to vector<2x32xf32>
    %41 = arith.addf %40, %39 : vector<2x32xf32>
    %42 = arith.divf %40, %41 : vector<2x32xf32>
    %cst_39 = arith.constant dense<0.000000e+00> : vector<2x32xf32>
    %43 = tpu.matmul %26, %9, %cst_39 {dimension_numbers = #tpu.dot_dimension_numbers<[1], [0], [0], [1], [0, 0, 1, 1], [], []>} : vector<2x32xf32>, vector<32x32xf32>, vector<2x32xf32> -> vector<2x32xf32>
    %44 = vector.broadcast %25 : vector<1x32xf32> to vector<2x32xf32>
    %45 = arith.addf %43, %44 : vector<2x32xf32>
    %46 = arith.mulf %34, %45 : vector<2x32xf32>
    %47 = vector.broadcast %23 : vector<1x32xf32> to vector<2x32xf32>
    %48 = arith.addf %47, %46 : vector<2x32xf32>
    %49 = math.tanh %48 : vector<2x32xf32>
    %cst_40 = arith.constant 1.000000e+00 : f32
    %50 = vector.broadcast %cst_40 : f32 to vector<2x32xf32>
    %51 = arith.subf %50, %42 : vector<2x32xf32>
    %52 = arith.mulf %51, %49 : vector<2x32xf32>
    %53 = arith.mulf %42, %26 : vector<2x32xf32>
    %54 = arith.addf %52, %53 : vector<2x32xf32>
    %55 = vector.shape_cast %54 : vector<2x32xf32> to vector<2x1x32xf32>
    "tpu.trace_start"() <{level = 10 : i32, message = "bqh,bsh->bqs"}> : () -> ()
    %cst_41 = arith.constant dense<0.000000e+00> : vector<2x1x8xf32>
    %56 = tpu.matmul %55, %0, %cst_41 {dimension_numbers = #tpu.dot_dimension_numbers<[2], [2], [1], [1], [0, 0, 0, 1, 1, 1], [0], [0]>} : vector<2x1x32xf32>, vector<2x8x32xf32>, vector<2x1x8xf32> -> vector<2x1x8xf32>
    "tpu.trace_stop"() : () -> ()
    %57 = arith.addf %56, %1 : vector<2x1x8xf32>
    %cst_42 = arith.constant dense<0xFF800000> : vector<2x1xf32>
    %58 = vector.multi_reduction <maximumf>, %57, %cst_42 [2] : vector<2x1x8xf32> to vector<2x1xf32>
    %59 = vector.shape_cast %58 : vector<2x1xf32> to vector<2x1x1xf32>
    %60 = vector.broadcast %59 : vector<2x1x1xf32> to vector<2x1x8xf32>
    %61 = arith.subf %57, %60 : vector<2x1x8xf32>
    %62 = math.exp %61 : vector<2x1x8xf32>
    %cst_43 = arith.constant dense<0.000000e+00> : vector<2x1xf32>
    %63 = vector.multi_reduction <add>, %62, %cst_43 [2] : vector<2x1x8xf32> to vector<2x1xf32>
    %64 = vector.shape_cast %63 : vector<2x1xf32> to vector<2x1x1xf32>
    %cst_44 = arith.constant 1.000000e+00 : f32
    %65 = vector.broadcast %cst_44 : f32 to vector<2x1x1xf32>
    %66 = arith.divf %65, %64 : vector<2x1x1xf32>
    %67 = vector.broadcast %66 : vector<2x1x1xf32> to vector<2x1x8xf32>
    %68 = arith.mulf %62, %67 : vector<2x1x8xf32>
    "tpu.trace_start"() <{level = 10 : i32, message = "bqs,bsh->bqh"}> : () -> ()
    %cst_45 = arith.constant dense<0.000000e+00> : vector<2x1x32xf32>
    %69 = tpu.matmul %68, %0, %cst_45 {dimension_numbers = #tpu.dot_dimension_numbers<[2], [1], [1], [2], [0, 0, 0, 1, 1, 2], [0], [0]>} : vector<2x1x8xf32>, vector<2x8x32xf32>, vector<2x1x32xf32> -> vector<2x1x32xf32>
    "tpu.trace_stop"() : () -> ()
    %70 = vector.shape_cast %69 : vector<2x1x32xf32> to vector<2x32xf32>
    %cst_46 = arith.constant dense<0.000000e+00> : vector<2x32xf32>
    %71 = tpu.matmul %70, %15, %cst_46 {dimension_numbers = #tpu.dot_dimension_numbers<[1], [0], [0], [1], [0, 0, 1, 1], [], []>} : vector<2x32xf32>, vector<32x32xf32>, vector<2x32xf32> -> vector<2x32xf32>
    %cst_47 = arith.constant dense<0.000000e+00> : vector<2x32xf32>
    %72 = tpu.matmul %54, %17, %cst_47 {dimension_numbers = #tpu.dot_dimension_numbers<[1], [0], [0], [1], [0, 0, 1, 1], [], []>} : vector<2x32xf32>, vector<32x32xf32>, vector<2x32xf32> -> vector<2x32xf32>
    %73 = arith.addf %71, %72 : vector<2x32xf32>
    %c0_48 = arith.constant 0 : index
    %c0_49 = arith.constant 0 : index
    %c0_50 = arith.constant 0 : index
    %74 = vector.load %arg6[%c0_48, %c0_49, %c0_50] : memref<2x8x32xf32, #tpu.memory_space<vmem>>, vector<2x1x32xf32>
    %75 = vector.shape_cast %74 : vector<2x1x32xf32> to vector<2x32xf32>
    %76 = vector.shape_cast %73 : vector<2x32xf32> to vector<2x1x32xf32>
    tpu.vector_store %arg6[%c0_48, %c0_49, %c0_50], %76 {strides = array<i32>} : memref<2x8x32xf32, #tpu.memory_space<vmem>>, vector<2x1x32xf32>,
    %cst_51 = arith.constant dense<0.000000e+00> : vector<2x32xf32>
    %77 = tpu.matmul %54, %3, %cst_51 {dimension_numbers = #tpu.dot_dimension_numbers<[1], [0], [0], [1], [0, 0, 1, 1], [], []>} : vector<2x32xf32>, vector<32x32xf32>, vector<2x32xf32> -> vector<2x32xf32>
    %78 = vector.broadcast %19 : vector<1x32xf32> to vector<2x32xf32>
    %79 = arith.addf %77, %78 : vector<2x32xf32>
    %80 = arith.negf %79 : vector<2x32xf32>
    %81 = math.exp %80 : vector<2x32xf32>
    %cst_52 = arith.constant 1.000000e+00 : f32
    %82 = vector.broadcast %cst_52 : f32 to vector<2x32xf32>
    %83 = arith.addf %82, %81 : vector<2x32xf32>
    %84 = arith.divf %82, %83 : vector<2x32xf32>
    %cst_53 = arith.constant dense<0.000000e+00> : vector<2x32xf32>
    %85 = tpu.matmul %54, %5, %cst_53 {dimension_numbers = #tpu.dot_dimension_numbers<[1], [0], [0], [1], [0, 0, 1, 1], [], []>} : vector<2x32xf32>, vector<32x32xf32>, vector<2x32xf32> -> vector<2x32xf32>
    %86 = vector.broadcast %21 : vector<1x32xf32> to vector<2x32xf32>
    %87 = arith.addf %85, %86 : vector<2x32xf32>
    %88 = arith.negf %87 : vector<2x32xf32>
    %89 = math.exp %88 : vector<2x32xf32>
    %cst_54 = arith.constant 1.000000e+00 : f32
    %90 = vector.broadcast %cst_54 : f32 to vector<2x32xf32>
    %91 = arith.addf %90, %89 : vector<2x32xf32>
    %92 = arith.divf %90, %91 : vector<2x32xf32>
    %cst_55 = arith.constant dense<0.000000e+00> : vector<2x32xf32>
    %93 = tpu.matmul %54, %7, %cst_55 {dimension_numbers = #tpu.dot_dimension_numbers<[1], [0], [0], [1], [0, 0, 1, 1], [], []>} : vector<2x32xf32>, vector<32x32xf32>, vector<2x32xf32> -> vector<2x32xf32>
    %94 = vector.broadcast %23 : vector<1x32xf32> to vector<2x32xf32>
    %95 = arith.addf %93, %94 : vector<2x32xf32>
    %cst_56 = arith.constant dense<0.000000e+00> : vector<2x32xf32>
    %96 = tpu.matmul %54, %9, %cst_56 {dimension_numbers = #tpu.dot_dimension_numbers<[1], [0], [0], [1], [0, 0, 1, 1], [], []>} : vector<2x32xf32>, vector<32x32xf32>, vector<2x32xf32> -> vector<2x32xf32>
    %97 = vector.broadcast %25 : vector<1x32xf32> to vector<2x32xf32>
    %98 = arith.addf %96, %97 : vector<2x32xf32>
    %99 = arith.mulf %84, %98 : vector<2x32xf32>
    %100 = arith.addf %95, %99 : vector<2x32xf32>
    %101 = math.tanh %100 : vector<2x32xf32>
    %cst_57 = arith.constant 1.000000e+00 : f32
    %102 = vector.broadcast %cst_57 : f32 to vector<2x32xf32>
    %103 = arith.subf %102, %92 : vector<2x32xf32>
    %104 = arith.mulf %103, %101 : vector<2x32xf32>
    %105 = arith.mulf %92, %54 : vector<2x32xf32>
    %106 = arith.addf %104, %105 : vector<2x32xf32>
    %107 = vector.shape_cast %106 : vector<2x32xf32> to vector<2x1x32xf32>
    "tpu.trace_start"() <{level = 10 : i32, message = "bqh,bsh->bqs"}> : () -> ()
    %cst_58 = arith.constant dense<0.000000e+00> : vector<2x1x8xf32>
    %108 = tpu.matmul %107, %0, %cst_58 {dimension_numbers = #tpu.dot_dimension_numbers<[2], [2], [1], [1], [0, 0, 0, 1, 1, 1], [0], [0]>} : vector<2x1x32xf32>, vector<2x8x32xf32>, vector<2x1x8xf32> -> vector<2x1x8xf32>
    "tpu.trace_stop"() : () -> ()
    %109 = arith.addf %108, %1 : vector<2x1x8xf32>
    %cst_59 = arith.constant dense<0xFF800000> : vector<2x1xf32>
    %110 = vector.multi_reduction <maximumf>, %109, %cst_59 [2] : vector<2x1x8xf32> to vector<2x1xf32>
    %111 = vector.shape_cast %110 : vector<2x1xf32> to vector<2x1x1xf32>
    %112 = vector.broadcast %111 : vector<2x1x1xf32> to vector<2x1x8xf32>
    %113 = arith.subf %109, %112 : vector<2x1x8xf32>
    %114 = math.exp %113 : vector<2x1x8xf32>
    %cst_60 = arith.constant dense<0.000000e+00> : vector<2x1xf32>
    %115 = vector.multi_reduction <add>, %114, %cst_60 [2] : vector<2x1x8xf32> to vector<2x1xf32>
    %116 = vector.shape_cast %115 : vector<2x1xf32> to vector<2x1x1xf32>
    %cst_61 = arith.constant 1.000000e+00 : f32
    %117 = vector.broadcast %cst_61 : f32 to vector<2x1x1xf32>
    %118 = arith.divf %117, %116 : vector<2x1x1xf32>
    %119 = vector.broadcast %118 : vector<2x1x1xf32> to vector<2x1x8xf32>
    %120 = arith.mulf %114, %119 : vector<2x1x8xf32>
    "tpu.trace_start"() <{level = 10 : i32, message = "bqs,bsh->bqh"}> : () -> ()
    %cst_62 = arith.constant dense<0.000000e+00> : vector<2x1x32xf32>
    %121 = tpu.matmul %120, %0, %cst_62 {dimension_numbers = #tpu.dot_dimension_numbers<[2], [1], [1], [2], [0, 0, 0, 1, 1, 2], [0], [0]>} : vector<2x1x8xf32>, vector<2x8x32xf32>, vector<2x1x32xf32> -> vector<2x1x32xf32>
    "tpu.trace_stop"() : () -> ()
    %122 = vector.shape_cast %121 : vector<2x1x32xf32> to vector<2x32xf32>
    %cst_63 = arith.constant dense<0.000000e+00> : vector<2x32xf32>
    %123 = tpu.matmul %122, %15, %cst_63 {dimension_numbers = #tpu.dot_dimension_numbers<[1], [0], [0], [1], [0, 0, 1, 1], [], []>} : vector<2x32xf32>, vector<32x32xf32>, vector<2x32xf32> -> vector<2x32xf32>
    %cst_64 = arith.constant dense<0.000000e+00> : vector<2x32xf32>
    %124 = tpu.matmul %106, %17, %cst_64 {dimension_numbers = #tpu.dot_dimension_numbers<[1], [0], [0], [1], [0, 0, 1, 1], [], []>} : vector<2x32xf32>, vector<32x32xf32>, vector<2x32xf32> -> vector<2x32xf32>
    %125 = arith.addf %123, %124 : vector<2x32xf32>
    %c0_65 = arith.constant 0 : index
    %c1_66 = arith.constant 1 : index
    %c0_67 = arith.constant 0 : index
    %126 = vector.load %arg6[%c0_65, %c1_66, %c0_67] : memref<2x8x32xf32, #tpu.memory_space<vmem>>, vector<2x1x32xf32>
    %127 = vector.shape_cast %126 : vector<2x1x32xf32> to vector<2x32xf32>
    %128 = vector.shape_cast %125 : vector<2x32xf32> to vector<2x1x32xf32>
    tpu.vector_store %arg6[%c0_65, %c1_66, %c0_67], %128 {strides = array<i32>} : memref<2x8x32xf32, #tpu.memory_space<vmem>>, vector<2x1x32xf32>,
    %cst_68 = arith.constant dense<0.000000e+00> : vector<2x32xf32>
    %129 = tpu.matmul %106, %3, %cst_68 {dimension_numbers = #tpu.dot_dimension_numbers<[1], [0], [0], [1], [0, 0, 1, 1], [], []>} : vector<2x32xf32>, vector<32x32xf32>, vector<2x32xf32> -> vector<2x32xf32>
    %130 = vector.broadcast %19 : vector<1x32xf32> to vector<2x32xf32>
    %131 = arith.addf %129, %130 : vector<2x32xf32>
    %132 = arith.negf %131 : vector<2x32xf32>
    %133 = math.exp %132 : vector<2x32xf32>
    %cst_69 = arith.constant 1.000000e+00 : f32
    %134 = vector.broadcast %cst_69 : f32 to vector<2x32xf32>
    %135 = arith.addf %134, %133 : vector<2x32xf32>
    %136 = arith.divf %134, %135 : vector<2x32xf32>
    %cst_70 = arith.constant dense<0.000000e+00> : vector<2x32xf32>
    %137 = tpu.matmul %106, %5, %cst_70 {dimension_numbers = #tpu.dot_dimension_numbers<[1], [0], [0], [1], [0, 0, 1, 1], [], []>} : vector<2x32xf32>, vector<32x32xf32>, vector<2x32xf32> -> vector<2x32xf32>
    %138 = vector.broadcast %21 : vector<1x32xf32> to vector<2x32xf32>
    %139 = arith.addf %137, %138 : vector<2x32xf32>
    %140 = arith.negf %139 : vector<2x32xf32>
    %141 = math.exp %140 : vector<2x32xf32>
    %cst_71 = arith.constant 1.000000e+00 : f32
    %142 = vector.broadcast %cst_71 : f32 to vector<2x32xf32>
    %143 = arith.addf %142, %141 : vector<2x32xf32>
    %144 = arith.divf %142, %143 : vector<2x32xf32>
    %cst_72 = arith.constant dense<0.000000e+00> : vector<2x32xf32>
    %145 = tpu.matmul %106, %7, %cst_72 {dimension_numbers = #tpu.dot_dimension_numbers<[1], [0], [0], [1], [0, 0, 1, 1], [], []>} : vector<2x32xf32>, vector<32x32xf32>, vector<2x32xf32> -> vector<2x32xf32>
    %146 = vector.broadcast %23 : vector<1x32xf32> to vector<2x32xf32>
    %147 = arith.addf %145, %146 : vector<2x32xf32>
    %cst_73 = arith.constant dense<0.000000e+00> : vector<2x32xf32>
    %148 = tpu.matmul %106, %9, %cst_73 {dimension_numbers = #tpu.dot_dimension_numbers<[1], [0], [0], [1], [0, 0, 1, 1], [], []>} : vector<2x32xf32>, vector<32x32xf32>, vector<2x32xf32> -> vector<2x32xf32>
    %149 = vector.broadcast %25 : vector<1x32xf32> to vector<2x32xf32>
    %150 = arith.addf %148, %149 : vector<2x32xf32>
    %151 = arith.mulf %136, %150 : vector<2x32xf32>
    %152 = arith.addf %147, %151 : vector<2x32xf32>
    %153 = math.tanh %152 : vector<2x32xf32>
    %cst_74 = arith.constant 1.000000e+00 : f32
    %154 = vector.broadcast %cst_74 : f32 to vector<2x32xf32>
    %155 = arith.subf %154, %144 : vector<2x32xf32>
    %156 = arith.mulf %155, %153 : vector<2x32xf32>
    %157 = arith.mulf %144, %106 : vector<2x32xf32>
    %158 = arith.addf %156, %157 : vector<2x32xf32>
    %159 = vector.shape_cast %158 : vector<2x32xf32> to vector<2x1x32xf32>
    "tpu.trace_start"() <{level = 10 : i32, message = "bqh,bsh->bqs"}> : () -> ()
    %cst_75 = arith.constant dense<0.000000e+00> : vector<2x1x8xf32>
    %160 = tpu.matmul %159, %0, %cst_75 {dimension_numbers = #tpu.dot_dimension_numbers<[2], [2], [1], [1], [0, 0, 0, 1, 1, 1], [0], [0]>} : vector<2x1x32xf32>, vector<2x8x32xf32>, vector<2x1x8xf32> -> vector<2x1x8xf32>
    "tpu.trace_stop"() : () -> ()
    %161 = arith.addf %160, %1 : vector<2x1x8xf32>
    %cst_76 = arith.constant dense<0xFF800000> : vector<2x1xf32>
    %162 = vector.multi_reduction <maximumf>, %161, %cst_76 [2] : vector<2x1x8xf32> to vector<2x1xf32>
    %163 = vector.shape_cast %162 : vector<2x1xf32> to vector<2x1x1xf32>
    %164 = vector.broadcast %163 : vector<2x1x1xf32> to vector<2x1x8xf32>
    %165 = arith.subf %161, %164 : vector<2x1x8xf32>
    %166 = math.exp %165 : vector<2x1x8xf32>
    %cst_77 = arith.constant dense<0.000000e+00> : vector<2x1xf32>
    %167 = vector.multi_reduction <add>, %166, %cst_77 [2] : vector<2x1x8xf32> to vector<2x1xf32>
    %168 = vector.shape_cast %167 : vector<2x1xf32> to vector<2x1x1xf32>
    %cst_78 = arith.constant 1.000000e+00 : f32
    %169 = vector.broadcast %cst_78 : f32 to vector<2x1x1xf32>
    %170 = arith.divf %169, %168 : vector<2x1x1xf32>
    %171 = vector.broadcast %170 : vector<2x1x1xf32> to vector<2x1x8xf32>
    %172 = arith.mulf %166, %171 : vector<2x1x8xf32>
    "tpu.trace_start"() <{level = 10 : i32, message = "bqs,bsh->bqh"}> : () -> ()
    %cst_79 = arith.constant dense<0.000000e+00> : vector<2x1x32xf32>
    %173 = tpu.matmul %172, %0, %cst_79 {dimension_numbers = #tpu.dot_dimension_numbers<[2], [1], [1], [2], [0, 0, 0, 1, 1, 2], [0], [0]>} : vector<2x1x8xf32>, vector<2x8x32xf32>, vector<2x1x32xf32> -> vector<2x1x32xf32>
    "tpu.trace_stop"() : () -> ()
    %174 = vector.shape_cast %173 : vector<2x1x32xf32> to vector<2x32xf32>
    %cst_80 = arith.constant dense<0.000000e+00> : vector<2x32xf32>
    %175 = tpu.matmul %174, %15, %cst_80 {dimension_numbers = #tpu.dot_dimension_numbers<[1], [0], [0], [1], [0, 0, 1, 1], [], []>} : vector<2x32xf32>, vector<32x32xf32>, vector<2x32xf32> -> vector<2x32xf32>
    %cst_81 = arith.constant dense<0.000000e+00> : vector<2x32xf32>
    %176 = tpu.matmul %158, %17, %cst_81 {dimension_numbers = #tpu.dot_dimension_numbers<[1], [0], [0], [1], [0, 0, 1, 1], [], []>} : vector<2x32xf32>, vector<32x32xf32>, vector<2x32xf32> -> vector<2x32xf32>
    %177 = arith.addf %175, %176 : vector<2x32xf32>
    %c0_82 = arith.constant 0 : index
    %c2_83 = arith.constant 2 : index
    %c0_84 = arith.constant 0 : index
    %178 = vector.load %arg6[%c0_82, %c2_83, %c0_84] : memref<2x8x32xf32, #tpu.memory_space<vmem>>, vector<2x1x32xf32>
    %179 = vector.shape_cast %178 : vector<2x1x32xf32> to vector<2x32xf32>
    %180 = vector.shape_cast %177 : vector<2x32xf32> to vector<2x1x32xf32>
    tpu.vector_store %arg6[%c0_82, %c2_83, %c0_84], %180 {strides = array<i32>} : memref<2x8x32xf32, #tpu.memory_space<vmem>>, vector<2x1x32xf32>,
    %cst_85 = arith.constant dense<0.000000e+00> : vector<2x32xf32>
    %181 = tpu.matmul %158, %3, %cst_85 {dimension_numbers = #tpu.dot_dimension_numbers<[1], [0], [0], [1], [0, 0, 1, 1], [], []>} : vector<2x32xf32>, vector<32x32xf32>, vector<2x32xf32> -> vector<2x32xf32>
    %182 = vector.broadcast %19 : vector<1x32xf32> to vector<2x32xf32>
    %183 = arith.addf %181, %182 : vector<2x32xf32>
    %184 = arith.negf %183 : vector<2x32xf32>
    %185 = math.exp %184 : vector<2x32xf32>
    %cst_86 = arith.constant 1.000000e+00 : f32
    %186 = vector.broadcast %cst_86 : f32 to vector<2x32xf32>
    %187 = arith.addf %186, %185 : vector<2x32xf32>
    %188 = arith.divf %186, %187 : vector<2x32xf32>
    %cst_87 = arith.constant dense<0.000000e+00> : vector<2x32xf32>
    %189 = tpu.matmul %158, %5, %cst_87 {dimension_numbers = #tpu.dot_dimension_numbers<[1], [0], [0], [1], [0, 0, 1, 1], [], []>} : vector<2x32xf32>, vector<32x32xf32>, vector<2x32xf32> -> vector<2x32xf32>
    %190 = vector.broadcast %21 : vector<1x32xf32> to vector<2x32xf32>
    %191 = arith.addf %189, %190 : vector<2x32xf32>
    %192 = arith.negf %191 : vector<2x32xf32>
    %193 = math.exp %192 : vector<2x32xf32>
    %cst_88 = arith.constant 1.000000e+00 : f32
    %194 = vector.broadcast %cst_88 : f32 to vector<2x32xf32>
    %195 = arith.addf %194, %193 : vector<2x32xf32>
    %196 = arith.divf %194, %195 : vector<2x32xf32>
    %cst_89 = arith.constant dense<0.000000e+00> : vector<2x32xf32>
    %197 = tpu.matmul %158, %7, %cst_89 {dimension_numbers = #tpu.dot_dimension_numbers<[1], [0], [0], [1], [0, 0, 1, 1], [], []>} : vector<2x32xf32>, vector<32x32xf32>, vector<2x32xf32> -> vector<2x32xf32>
    %198 = vector.broadcast %23 : vector<1x32xf32> to vector<2x32xf32>
    %199 = arith.addf %197, %198 : vector<2x32xf32>
    %cst_90 = arith.constant dense<0.000000e+00> : vector<2x32xf32>
    %200 = tpu.matmul %158, %9, %cst_90 {dimension_numbers = #tpu.dot_dimension_numbers<[1], [0], [0], [1], [0, 0, 1, 1], [], []>} : vector<2x32xf32>, vector<32x32xf32>, vector<2x32xf32> -> vector<2x32xf32>
    %201 = vector.broadcast %25 : vector<1x32xf32> to vector<2x32xf32>
    %202 = arith.addf %200, %201 : vector<2x32xf32>
    %203 = arith.mulf %188, %202 : vector<2x32xf32>
    %204 = arith.addf %199, %203 : vector<2x32xf32>
    %205 = math.tanh %204 : vector<2x32xf32>
    %cst_91 = arith.constant 1.000000e+00 : f32
    %206 = vector.broadcast %cst_91 : f32 to vector<2x32xf32>
    %207 = arith.subf %206, %196 : vector<2x32xf32>
    %208 = arith.mulf %207, %205 : vector<2x32xf32>
    %209 = arith.mulf %196, %158 : vector<2x32xf32>
    %210 = arith.addf %208, %209 : vector<2x32xf32>
    %211 = vector.shape_cast %210 : vector<2x32xf32> to vector<2x1x32xf32>
    "tpu.trace_start"() <{level = 10 : i32, message = "bqh,bsh->bqs"}> : () -> ()
    %cst_92 = arith.constant dense<0.000000e+00> : vector<2x1x8xf32>
    %212 = tpu.matmul %211, %0, %cst_92 {dimension_numbers = #tpu.dot_dimension_numbers<[2], [2], [1], [1], [0, 0, 0, 1, 1, 1], [0], [0]>} : vector<2x1x32xf32>, vector<2x8x32xf32>, vector<2x1x8xf32> -> vector<2x1x8xf32>
    "tpu.trace_stop"() : () -> ()
    %213 = arith.addf %212, %1 : vector<2x1x8xf32>
    %cst_93 = arith.constant dense<0xFF800000> : vector<2x1xf32>
    %214 = vector.multi_reduction <maximumf>, %213, %cst_93 [2] : vector<2x1x8xf32> to vector<2x1xf32>
    %215 = vector.shape_cast %214 : vector<2x1xf32> to vector<2x1x1xf32>
    %216 = vector.broadcast %215 : vector<2x1x1xf32> to vector<2x1x8xf32>
    %217 = arith.subf %213, %216 : vector<2x1x8xf32>
    %218 = math.exp %217 : vector<2x1x8xf32>
    %cst_94 = arith.constant dense<0.000000e+00> : vector<2x1xf32>
    %219 = vector.multi_reduction <add>, %218, %cst_94 [2] : vector<2x1x8xf32> to vector<2x1xf32>
    %220 = vector.shape_cast %219 : vector<2x1xf32> to vector<2x1x1xf32>
    %cst_95 = arith.constant 1.000000e+00 : f32
    %221 = vector.broadcast %cst_95 : f32 to vector<2x1x1xf32>
    %222 = arith.divf %221, %220 : vector<2x1x1xf32>
    %223 = vector.broadcast %222 : vector<2x1x1xf32> to vector<2x1x8xf32>
    %224 = arith.mulf %218, %223 : vector<2x1x8xf32>
    "tpu.trace_start"() <{level = 10 : i32, message = "bqs,bsh->bqh"}> : () -> ()
    %cst_96 = arith.constant dense<0.000000e+00> : vector<2x1x32xf32>
    %225 = tpu.matmul %224, %0, %cst_96 {dimension_numbers = #tpu.dot_dimension_numbers<[2], [1], [1], [2], [0, 0, 0, 1, 1, 2], [0], [0]>} : vector<2x1x8xf32>, vector<2x8x32xf32>, vector<2x1x32xf32> -> vector<2x1x32xf32>
    "tpu.trace_stop"() : () -> ()
    %226 = vector.shape_cast %225 : vector<2x1x32xf32> to vector<2x32xf32>
    %cst_97 = arith.constant dense<0.000000e+00> : vector<2x32xf32>
    %227 = tpu.matmul %226, %15, %cst_97 {dimension_numbers = #tpu.dot_dimension_numbers<[1], [0], [0], [1], [0, 0, 1, 1], [], []>} : vector<2x32xf32>, vector<32x32xf32>, vector<2x32xf32> -> vector<2x32xf32>
    %cst_98 = arith.constant dense<0.000000e+00> : vector<2x32xf32>
    %228 = tpu.matmul %210, %17, %cst_98 {dimension_numbers = #tpu.dot_dimension_numbers<[1], [0], [0], [1], [0, 0, 1, 1], [], []>} : vector<2x32xf32>, vector<32x32xf32>, vector<2x32xf32> -> vector<2x32xf32>
    %229 = arith.addf %227, %228 : vector<2x32xf32>
    %c0_99 = arith.constant 0 : index
    %c3_100 = arith.constant 3 : index
    %c0_101 = arith.constant 0 : index
    %230 = vector.load %arg6[%c0_99, %c3_100, %c0_101] : memref<2x8x32xf32, #tpu.memory_space<vmem>>, vector<2x1x32xf32>
    %231 = vector.shape_cast %230 : vector<2x1x32xf32> to vector<2x32xf32>
    %232 = vector.shape_cast %229 : vector<2x32xf32> to vector<2x1x32xf32>
    tpu.vector_store %arg6[%c0_99, %c3_100, %c0_101], %232 {strides = array<i32>} : memref<2x8x32xf32, #tpu.memory_space<vmem>>, vector<2x1x32xf32>,
    %cst_102 = arith.constant dense<0.000000e+00> : vector<2x32xf32>
    %233 = tpu.matmul %210, %3, %cst_102 {dimension_numbers = #tpu.dot_dimension_numbers<[1], [0], [0], [1], [0, 0, 1, 1], [], []>} : vector<2x32xf32>, vector<32x32xf32>, vector<2x32xf32> -> vector<2x32xf32>
    %234 = vector.broadcast %19 : vector<1x32xf32> to vector<2x32xf32>
    %235 = arith.addf %233, %234 : vector<2x32xf32>
    %236 = arith.negf %235 : vector<2x32xf32>
    %237 = math.exp %236 : vector<2x32xf32>
    %cst_103 = arith.constant 1.000000e+00 : f32
    %238 = vector.broadcast %cst_103 : f32 to vector<2x32xf32>
    %239 = arith.addf %238, %237 : vector<2x32xf32>
    %240 = arith.divf %238, %239 : vector<2x32xf32>
    %cst_104 = arith.constant dense<0.000000e+00> : vector<2x32xf32>
    %241 = tpu.matmul %210, %5, %cst_104 {dimension_numbers = #tpu.dot_dimension_numbers<[1], [0], [0], [1], [0, 0, 1, 1], [], []>} : vector<2x32xf32>, vector<32x32xf32>, vector<2x32xf32> -> vector<2x32xf32>
    %242 = vector.broadcast %21 : vector<1x32xf32> to vector<2x32xf32>
    %243 = arith.addf %241, %242 : vector<2x32xf32>
    %244 = arith.negf %243 : vector<2x32xf32>
    %245 = math.exp %244 : vector<2x32xf32>
    %cst_105 = arith.constant 1.000000e+00 : f32
    %246 = vector.broadcast %cst_105 : f32 to vector<2x32xf32>
    %247 = arith.addf %246, %245 : vector<2x32xf32>
    %248 = arith.divf %246, %247 : vector<2x32xf32>
    %cst_106 = arith.constant dense<0.000000e+00> : vector<2x32xf32>
    %249 = tpu.matmul %210, %7, %cst_106 {dimension_numbers = #tpu.dot_dimension_numbers<[1], [0], [0], [1], [0, 0, 1, 1], [], []>} : vector<2x32xf32>, vector<32x32xf32>, vector<2x32xf32> -> vector<2x32xf32>
    %250 = vector.broadcast %23 : vector<1x32xf32> to vector<2x32xf32>
    %251 = arith.addf %249, %250 : vector<2x32xf32>
    %cst_107 = arith.constant dense<0.000000e+00> : vector<2x32xf32>
    %252 = tpu.matmul %210, %9, %cst_107 {dimension_numbers = #tpu.dot_dimension_numbers<[1], [0], [0], [1], [0, 0, 1, 1], [], []>} : vector<2x32xf32>, vector<32x32xf32>, vector<2x32xf32> -> vector<2x32xf32>
    %253 = vector.broadcast %25 : vector<1x32xf32> to vector<2x32xf32>
    %254 = arith.addf %252, %253 : vector<2x32xf32>
    %255 = arith.mulf %240, %254 : vector<2x32xf32>
    %256 = arith.addf %251, %255 : vector<2x32xf32>
    %257 = math.tanh %256 : vector<2x32xf32>
    %cst_108 = arith.constant 1.000000e+00 : f32
    %258 = vector.broadcast %cst_108 : f32 to vector<2x32xf32>
    %259 = arith.subf %258, %248 : vector<2x32xf32>
    %260 = arith.mulf %259, %257 : vector<2x32xf32>
    %261 = arith.mulf %248, %210 : vector<2x32xf32>
    %262 = arith.addf %260, %261 : vector<2x32xf32>
    %263 = vector.shape_cast %262 : vector<2x32xf32> to vector<2x1x32xf32>
    "tpu.trace_start"() <{level = 10 : i32, message = "bqh,bsh->bqs"}> : () -> ()
    %cst_109 = arith.constant dense<0.000000e+00> : vector<2x1x8xf32>
    %264 = tpu.matmul %263, %0, %cst_109 {dimension_numbers = #tpu.dot_dimension_numbers<[2], [2], [1], [1], [0, 0, 0, 1, 1, 1], [0], [0]>} : vector<2x1x32xf32>, vector<2x8x32xf32>, vector<2x1x8xf32> -> vector<2x1x8xf32>
    "tpu.trace_stop"() : () -> ()
    %265 = arith.addf %264, %1 : vector<2x1x8xf32>
    %cst_110 = arith.constant dense<0xFF800000> : vector<2x1xf32>
    %266 = vector.multi_reduction <maximumf>, %265, %cst_110 [2] : vector<2x1x8xf32> to vector<2x1xf32>
    %267 = vector.shape_cast %266 : vector<2x1xf32> to vector<2x1x1xf32>
    %268 = vector.broadcast %267 : vector<2x1x1xf32> to vector<2x1x8xf32>
    %269 = arith.subf %265, %268 : vector<2x1x8xf32>
    %270 = math.exp %269 : vector<2x1x8xf32>
    %cst_111 = arith.constant dense<0.000000e+00> : vector<2x1xf32>
    %271 = vector.multi_reduction <add>, %270, %cst_111 [2] : vector<2x1x8xf32> to vector<2x1xf32>
    %272 = vector.shape_cast %271 : vector<2x1xf32> to vector<2x1x1xf32>
    %cst_112 = arith.constant 1.000000e+00 : f32
    %273 = vector.broadcast %cst_112 : f32 to vector<2x1x1xf32>
    %274 = arith.divf %273, %272 : vector<2x1x1xf32>
    %275 = vector.broadcast %274 : vector<2x1x1xf32> to vector<2x1x8xf32>
    %276 = arith.mulf %270, %275 : vector<2x1x8xf32>
    "tpu.trace_start"() <{level = 10 : i32, message = "bqs,bsh->bqh"}> : () -> ()
    %cst_113 = arith.constant dense<0.000000e+00> : vector<2x1x32xf32>
    %277 = tpu.matmul %276, %0, %cst_113 {dimension_numbers = #tpu.dot_dimension_numbers<[2], [1], [1], [2], [0, 0, 0, 1, 1, 2], [0], [0]>} : vector<2x1x8xf32>, vector<2x8x32xf32>, vector<2x1x32xf32> -> vector<2x1x32xf32>
    "tpu.trace_stop"() : () -> ()
    %278 = vector.shape_cast %277 : vector<2x1x32xf32> to vector<2x32xf32>
    %cst_114 = arith.constant dense<0.000000e+00> : vector<2x32xf32>
    %279 = tpu.matmul %278, %15, %cst_114 {dimension_numbers = #tpu.dot_dimension_numbers<[1], [0], [0], [1], [0, 0, 1, 1], [], []>} : vector<2x32xf32>, vector<32x32xf32>, vector<2x32xf32> -> vector<2x32xf32>
    %cst_115 = arith.constant dense<0.000000e+00> : vector<2x32xf32>
    %280 = tpu.matmul %262, %17, %cst_115 {dimension_numbers = #tpu.dot_dimension_numbers<[1], [0], [0], [1], [0, 0, 1, 1], [], []>} : vector<2x32xf32>, vector<32x32xf32>, vector<2x32xf32> -> vector<2x32xf32>
    %281 = arith.addf %279, %280 : vector<2x32xf32>
    %c0_116 = arith.constant 0 : index
    %c4_117 = arith.constant 4 : index
    %c0_118 = arith.constant 0 : index
    %282 = vector.load %arg6[%c0_116, %c4_117, %c0_118] : memref<2x8x32xf32, #tpu.memory_space<vmem>>, vector<2x1x32xf32>
    %283 = vector.shape_cast %282 : vector<2x1x32xf32> to vector<2x32xf32>
    %284 = vector.shape_cast %281 : vector<2x32xf32> to vector<2x1x32xf32>
    tpu.vector_store %arg6[%c0_116, %c4_117, %c0_118], %284 {strides = array<i32>} : memref<2x8x32xf32, #tpu.memory_space<vmem>>, vector<2x1x32xf32>,
    %cst_119 = arith.constant dense<0.000000e+00> : vector<2x32xf32>
    %285 = tpu.matmul %262, %3, %cst_119 {dimension_numbers = #tpu.dot_dimension_numbers<[1], [0], [0], [1], [0, 0, 1, 1], [], []>} : vector<2x32xf32>, vector<32x32xf32>, vector<2x32xf32> -> vector<2x32xf32>
    %286 = vector.broadcast %19 : vector<1x32xf32> to vector<2x32xf32>
    %287 = arith.addf %285, %286 : vector<2x32xf32>
    %288 = arith.negf %287 : vector<2x32xf32>
    %289 = math.exp %288 : vector<2x32xf32>
    %cst_120 = arith.constant 1.000000e+00 : f32
    %290 = vector.broadcast %cst_120 : f32 to vector<2x32xf32>
    %291 = arith.addf %290, %289 : vector<2x32xf32>
    %292 = arith.divf %290, %291 : vector<2x32xf32>
    %cst_121 = arith.constant dense<0.000000e+00> : vector<2x32xf32>
    %293 = tpu.matmul %262, %5, %cst_121 {dimension_numbers = #tpu.dot_dimension_numbers<[1], [0], [0], [1], [0, 0, 1, 1], [], []>} : vector<2x32xf32>, vector<32x32xf32>, vector<2x32xf32> -> vector<2x32xf32>
    %294 = vector.broadcast %21 : vector<1x32xf32> to vector<2x32xf32>
    %295 = arith.addf %293, %294 : vector<2x32xf32>
    %296 = arith.negf %295 : vector<2x32xf32>
    %297 = math.exp %296 : vector<2x32xf32>
    %cst_122 = arith.constant 1.000000e+00 : f32
    %298 = vector.broadcast %cst_122 : f32 to vector<2x32xf32>
    %299 = arith.addf %298, %297 : vector<2x32xf32>
    %300 = arith.divf %298, %299 : vector<2x32xf32>
    %cst_123 = arith.constant dense<0.000000e+00> : vector<2x32xf32>
    %301 = tpu.matmul %262, %7, %cst_123 {dimension_numbers = #tpu.dot_dimension_numbers<[1], [0], [0], [1], [0, 0, 1, 1], [], []>} : vector<2x32xf32>, vector<32x32xf32>, vector<2x32xf32> -> vector<2x32xf32>
    %302 = vector.broadcast %23 : vector<1x32xf32> to vector<2x32xf32>
    %303 = arith.addf %301, %302 : vector<2x32xf32>
    %cst_124 = arith.constant dense<0.000000e+00> : vector<2x32xf32>
    %304 = tpu.matmul %262, %9, %cst_124 {dimension_numbers = #tpu.dot_dimension_numbers<[1], [0], [0], [1], [0, 0, 1, 1], [], []>} : vector<2x32xf32>, vector<32x32xf32>, vector<2x32xf32> -> vector<2x32xf32>
    %305 = vector.broadcast %25 : vector<1x32xf32> to vector<2x32xf32>
    %306 = arith.addf %304, %305 : vector<2x32xf32>
    %307 = arith.mulf %292, %306 : vector<2x32xf32>
    %308 = arith.addf %303, %307 : vector<2x32xf32>
    %309 = math.tanh %308 : vector<2x32xf32>
    %cst_125 = arith.constant 1.000000e+00 : f32
    %310 = vector.broadcast %cst_125 : f32 to vector<2x32xf32>
    %311 = arith.subf %310, %300 : vector<2x32xf32>
    %312 = arith.mulf %311, %309 : vector<2x32xf32>
    %313 = arith.mulf %300, %262 : vector<2x32xf32>
    %314 = arith.addf %312, %313 : vector<2x32xf32>
    %315 = vector.shape_cast %314 : vector<2x32xf32> to vector<2x1x32xf32>
    "tpu.trace_start"() <{level = 10 : i32, message = "bqh,bsh->bqs"}> : () -> ()
    %cst_126 = arith.constant dense<0.000000e+00> : vector<2x1x8xf32>
    %316 = tpu.matmul %315, %0, %cst_126 {dimension_numbers = #tpu.dot_dimension_numbers<[2], [2], [1], [1], [0, 0, 0, 1, 1, 1], [0], [0]>} : vector<2x1x32xf32>, vector<2x8x32xf32>, vector<2x1x8xf32> -> vector<2x1x8xf32>
    "tpu.trace_stop"() : () -> ()
    %317 = arith.addf %316, %1 : vector<2x1x8xf32>
    %cst_127 = arith.constant dense<0xFF800000> : vector<2x1xf32>
    %318 = vector.multi_reduction <maximumf>, %317, %cst_127 [2] : vector<2x1x8xf32> to vector<2x1xf32>
    %319 = vector.shape_cast %318 : vector<2x1xf32> to vector<2x1x1xf32>
    %320 = vector.broadcast %319 : vector<2x1x1xf32> to vector<2x1x8xf32>
    %321 = arith.subf %317, %320 : vector<2x1x8xf32>
    %322 = math.exp %321 : vector<2x1x8xf32>
    %cst_128 = arith.constant dense<0.000000e+00> : vector<2x1xf32>
    %323 = vector.multi_reduction <add>, %322, %cst_128 [2] : vector<2x1x8xf32> to vector<2x1xf32>
    %324 = vector.shape_cast %323 : vector<2x1xf32> to vector<2x1x1xf32>
    %cst_129 = arith.constant 1.000000e+00 : f32
    %325 = vector.broadcast %cst_129 : f32 to vector<2x1x1xf32>
    %326 = arith.divf %325, %324 : vector<2x1x1xf32>
    %327 = vector.broadcast %326 : vector<2x1x1xf32> to vector<2x1x8xf32>
    %328 = arith.mulf %322, %327 : vector<2x1x8xf32>
    "tpu.trace_start"() <{level = 10 : i32, message = "bqs,bsh->bqh"}> : () -> ()
    %cst_130 = arith.constant dense<0.000000e+00> : vector<2x1x32xf32>
    %329 = tpu.matmul %328, %0, %cst_130 {dimension_numbers = #tpu.dot_dimension_numbers<[2], [1], [1], [2], [0, 0, 0, 1, 1, 2], [0], [0]>} : vector<2x1x8xf32>, vector<2x8x32xf32>, vector<2x1x32xf32> -> vector<2x1x32xf32>
    "tpu.trace_stop"() : () -> ()
    %330 = vector.shape_cast %329 : vector<2x1x32xf32> to vector<2x32xf32>
    %cst_131 = arith.constant dense<0.000000e+00> : vector<2x32xf32>
    %331 = tpu.matmul %330, %15, %cst_131 {dimension_numbers = #tpu.dot_dimension_numbers<[1], [0], [0], [1], [0, 0, 1, 1], [], []>} : vector<2x32xf32>, vector<32x32xf32>, vector<2x32xf32> -> vector<2x32xf32>
    %cst_132 = arith.constant dense<0.000000e+00> : vector<2x32xf32>
    %332 = tpu.matmul %314, %17, %cst_132 {dimension_numbers = #tpu.dot_dimension_numbers<[1], [0], [0], [1], [0, 0, 1, 1], [], []>} : vector<2x32xf32>, vector<32x32xf32>, vector<2x32xf32> -> vector<2x32xf32>
    %333 = arith.addf %331, %332 : vector<2x32xf32>
    %c0_133 = arith.constant 0 : index
    %c5_134 = arith.constant 5 : index
    %c0_135 = arith.constant 0 : index
    %334 = vector.load %arg6[%c0_133, %c5_134, %c0_135] : memref<2x8x32xf32, #tpu.memory_space<vmem>>, vector<2x1x32xf32>
    %335 = vector.shape_cast %334 : vector<2x1x32xf32> to vector<2x32xf32>
    %336 = vector.shape_cast %333 : vector<2x32xf32> to vector<2x1x32xf32>
    tpu.vector_store %arg6[%c0_133, %c5_134, %c0_135], %336 {strides = array<i32>} : memref<2x8x32xf32, #tpu.memory_space<vmem>>, vector<2x1x32xf32>,
    %cst_136 = arith.constant dense<0.000000e+00> : vector<2x32xf32>
    %337 = tpu.matmul %314, %3, %cst_136 {dimension_numbers = #tpu.dot_dimension_numbers<[1], [0], [0], [1], [0, 0, 1, 1], [], []>} : vector<2x32xf32>, vector<32x32xf32>, vector<2x32xf32> -> vector<2x32xf32>
    %338 = vector.broadcast %19 : vector<1x32xf32> to vector<2x32xf32>
    %339 = arith.addf %337, %338 : vector<2x32xf32>
    %340 = arith.negf %339 : vector<2x32xf32>
    %341 = math.exp %340 : vector<2x32xf32>
    %cst_137 = arith.constant 1.000000e+00 : f32
    %342 = vector.broadcast %cst_137 : f32 to vector<2x32xf32>
    %343 = arith.addf %342, %341 : vector<2x32xf32>
    %344 = arith.divf %342, %343 : vector<2x32xf32>
    %cst_138 = arith.constant dense<0.000000e+00> : vector<2x32xf32>
    %345 = tpu.matmul %314, %5, %cst_138 {dimension_numbers = #tpu.dot_dimension_numbers<[1], [0], [0], [1], [0, 0, 1, 1], [], []>} : vector<2x32xf32>, vector<32x32xf32>, vector<2x32xf32> -> vector<2x32xf32>
    %346 = vector.broadcast %21 : vector<1x32xf32> to vector<2x32xf32>
    %347 = arith.addf %345, %346 : vector<2x32xf32>
    %348 = arith.negf %347 : vector<2x32xf32>
    %349 = math.exp %348 : vector<2x32xf32>
    %cst_139 = arith.constant 1.000000e+00 : f32
    %350 = vector.broadcast %cst_139 : f32 to vector<2x32xf32>
    %351 = arith.addf %350, %349 : vector<2x32xf32>
    %352 = arith.divf %350, %351 : vector<2x32xf32>
    %cst_140 = arith.constant dense<0.000000e+00> : vector<2x32xf32>
    %353 = tpu.matmul %314, %7, %cst_140 {dimension_numbers = #tpu.dot_dimension_numbers<[1], [0], [0], [1], [0, 0, 1, 1], [], []>} : vector<2x32xf32>, vector<32x32xf32>, vector<2x32xf32> -> vector<2x32xf32>
    %354 = vector.broadcast %23 : vector<1x32xf32> to vector<2x32xf32>
    %355 = arith.addf %353, %354 : vector<2x32xf32>
    %cst_141 = arith.constant dense<0.000000e+00> : vector<2x32xf32>
    %356 = tpu.matmul %314, %9, %cst_141 {dimension_numbers = #tpu.dot_dimension_numbers<[1], [0], [0], [1], [0, 0, 1, 1], [], []>} : vector<2x32xf32>, vector<32x32xf32>, vector<2x32xf32> -> vector<2x32xf32>
    %357 = vector.broadcast %25 : vector<1x32xf32> to vector<2x32xf32>
    %358 = arith.addf %356, %357 : vector<2x32xf32>
    %359 = arith.mulf %344, %358 : vector<2x32xf32>
    %360 = arith.addf %355, %359 : vector<2x32xf32>
    %361 = math.tanh %360 : vector<2x32xf32>
    %cst_142 = arith.constant 1.000000e+00 : f32
    %362 = vector.broadcast %cst_142 : f32 to vector<2x32xf32>
    %363 = arith.subf %362, %352 : vector<2x32xf32>
    %364 = arith.mulf %363, %361 : vector<2x32xf32>
    %365 = arith.mulf %352, %314 : vector<2x32xf32>
    %366 = arith.addf %364, %365 : vector<2x32xf32>
    %367 = vector.shape_cast %366 : vector<2x32xf32> to vector<2x1x32xf32>
    "tpu.trace_start"() <{level = 10 : i32, message = "bqh,bsh->bqs"}> : () -> ()
    %cst_143 = arith.constant dense<0.000000e+00> : vector<2x1x8xf32>
    %368 = tpu.matmul %367, %0, %cst_143 {dimension_numbers = #tpu.dot_dimension_numbers<[2], [2], [1], [1], [0, 0, 0, 1, 1, 1], [0], [0]>} : vector<2x1x32xf32>, vector<2x8x32xf32>, vector<2x1x8xf32> -> vector<2x1x8xf32>
    "tpu.trace_stop"() : () -> ()
    %369 = arith.addf %368, %1 : vector<2x1x8xf32>
    %cst_144 = arith.constant dense<0xFF800000> : vector<2x1xf32>
    %370 = vector.multi_reduction <maximumf>, %369, %cst_144 [2] : vector<2x1x8xf32> to vector<2x1xf32>
    %371 = vector.shape_cast %370 : vector<2x1xf32> to vector<2x1x1xf32>
    %372 = vector.broadcast %371 : vector<2x1x1xf32> to vector<2x1x8xf32>
    %373 = arith.subf %369, %372 : vector<2x1x8xf32>
    %374 = math.exp %373 : vector<2x1x8xf32>
    %cst_145 = arith.constant dense<0.000000e+00> : vector<2x1xf32>
    %375 = vector.multi_reduction <add>, %374, %cst_145 [2] : vector<2x1x8xf32> to vector<2x1xf32>
    %376 = vector.shape_cast %375 : vector<2x1xf32> to vector<2x1x1xf32>
    %cst_146 = arith.constant 1.000000e+00 : f32
    %377 = vector.broadcast %cst_146 : f32 to vector<2x1x1xf32>
    %378 = arith.divf %377, %376 : vector<2x1x1xf32>
    %379 = vector.broadcast %378 : vector<2x1x1xf32> to vector<2x1x8xf32>
    %380 = arith.mulf %374, %379 : vector<2x1x8xf32>
    "tpu.trace_start"() <{level = 10 : i32, message = "bqs,bsh->bqh"}> : () -> ()
    %cst_147 = arith.constant dense<0.000000e+00> : vector<2x1x32xf32>
    %381 = tpu.matmul %380, %0, %cst_147 {dimension_numbers = #tpu.dot_dimension_numbers<[2], [1], [1], [2], [0, 0, 0, 1, 1, 2], [0], [0]>} : vector<2x1x8xf32>, vector<2x8x32xf32>, vector<2x1x32xf32> -> vector<2x1x32xf32>
    "tpu.trace_stop"() : () -> ()
    %382 = vector.shape_cast %381 : vector<2x1x32xf32> to vector<2x32xf32>
    %cst_148 = arith.constant dense<0.000000e+00> : vector<2x32xf32>
    %383 = tpu.matmul %382, %15, %cst_148 {dimension_numbers = #tpu.dot_dimension_numbers<[1], [0], [0], [1], [0, 0, 1, 1], [], []>} : vector<2x32xf32>, vector<32x32xf32>, vector<2x32xf32> -> vector<2x32xf32>
    %cst_149 = arith.constant dense<0.000000e+00> : vector<2x32xf32>
    %384 = tpu.matmul %366, %17, %cst_149 {dimension_numbers = #tpu.dot_dimension_numbers<[1], [0], [0], [1], [0, 0, 1, 1], [], []>} : vector<2x32xf32>, vector<32x32xf32>, vector<2x32xf32> -> vector<2x32xf32>
    %385 = arith.addf %383, %384 : vector<2x32xf32>
    %c0_150 = arith.constant 0 : index
    %c6_151 = arith.constant 6 : index
    %c0_152 = arith.constant 0 : index
    %386 = vector.load %arg6[%c0_150, %c6_151, %c0_152] : memref<2x8x32xf32, #tpu.memory_space<vmem>>, vector<2x1x32xf32>
    %387 = vector.shape_cast %386 : vector<2x1x32xf32> to vector<2x32xf32>
    %388 = vector.shape_cast %385 : vector<2x32xf32> to vector<2x1x32xf32>
    tpu.vector_store %arg6[%c0_150, %c6_151, %c0_152], %388 {strides = array<i32>} : memref<2x8x32xf32, #tpu.memory_space<vmem>>, vector<2x1x32xf32>,
    %cst_153 = arith.constant dense<0.000000e+00> : vector<2x32xf32>
    %389 = tpu.matmul %366, %3, %cst_153 {dimension_numbers = #tpu.dot_dimension_numbers<[1], [0], [0], [1], [0, 0, 1, 1], [], []>} : vector<2x32xf32>, vector<32x32xf32>, vector<2x32xf32> -> vector<2x32xf32>
    %390 = vector.broadcast %19 : vector<1x32xf32> to vector<2x32xf32>
    %391 = arith.addf %389, %390 : vector<2x32xf32>
    %392 = arith.negf %391 : vector<2x32xf32>
    %393 = math.exp %392 : vector<2x32xf32>
    %cst_154 = arith.constant 1.000000e+00 : f32
    %394 = vector.broadcast %cst_154 : f32 to vector<2x32xf32>
    %395 = arith.addf %394, %393 : vector<2x32xf32>
    %396 = arith.divf %394, %395 : vector<2x32xf32>
    %cst_155 = arith.constant dense<0.000000e+00> : vector<2x32xf32>
    %397 = tpu.matmul %366, %5, %cst_155 {dimension_numbers = #tpu.dot_dimension_numbers<[1], [0], [0], [1], [0, 0, 1, 1], [], []>} : vector<2x32xf32>, vector<32x32xf32>, vector<2x32xf32> -> vector<2x32xf32>
    %398 = vector.broadcast %21 : vector<1x32xf32> to vector<2x32xf32>
    %399 = arith.addf %397, %398 : vector<2x32xf32>
    %400 = arith.negf %399 : vector<2x32xf32>
    %401 = math.exp %400 : vector<2x32xf32>
    %cst_156 = arith.constant 1.000000e+00 : f32
    %402 = vector.broadcast %cst_156 : f32 to vector<2x32xf32>
    %403 = arith.addf %402, %401 : vector<2x32xf32>
    %404 = arith.divf %402, %403 : vector<2x32xf32>
    %cst_157 = arith.constant dense<0.000000e+00> : vector<2x32xf32>
    %405 = tpu.matmul %366, %7, %cst_157 {dimension_numbers = #tpu.dot_dimension_numbers<[1], [0], [0], [1], [0, 0, 1, 1], [], []>} : vector<2x32xf32>, vector<32x32xf32>, vector<2x32xf32> -> vector<2x32xf32>
    %406 = vector.broadcast %23 : vector<1x32xf32> to vector<2x32xf32>
    %407 = arith.addf %405, %406 : vector<2x32xf32>
    %cst_158 = arith.constant dense<0.000000e+00> : vector<2x32xf32>
    %408 = tpu.matmul %366, %9, %cst_158 {dimension_numbers = #tpu.dot_dimension_numbers<[1], [0], [0], [1], [0, 0, 1, 1], [], []>} : vector<2x32xf32>, vector<32x32xf32>, vector<2x32xf32> -> vector<2x32xf32>
    %409 = vector.broadcast %25 : vector<1x32xf32> to vector<2x32xf32>
    %410 = arith.addf %408, %409 : vector<2x32xf32>
    %411 = arith.mulf %396, %410 : vector<2x32xf32>
    %412 = arith.addf %407, %411 : vector<2x32xf32>
    %413 = math.tanh %412 : vector<2x32xf32>
    %cst_159 = arith.constant 1.000000e+00 : f32
    %414 = vector.broadcast %cst_159 : f32 to vector<2x32xf32>
    %415 = arith.subf %414, %404 : vector<2x32xf32>
    %416 = arith.mulf %415, %413 : vector<2x32xf32>
    %417 = arith.mulf %404, %366 : vector<2x32xf32>
    %418 = arith.addf %416, %417 : vector<2x32xf32>
    %419 = vector.shape_cast %418 : vector<2x32xf32> to vector<2x1x32xf32>
    "tpu.trace_start"() <{level = 10 : i32, message = "bqh,bsh->bqs"}> : () -> ()
    %cst_160 = arith.constant dense<0.000000e+00> : vector<2x1x8xf32>
    %420 = tpu.matmul %419, %0, %cst_160 {dimension_numbers = #tpu.dot_dimension_numbers<[2], [2], [1], [1], [0, 0, 0, 1, 1, 1], [0], [0]>} : vector<2x1x32xf32>, vector<2x8x32xf32>, vector<2x1x8xf32> -> vector<2x1x8xf32>
    "tpu.trace_stop"() : () -> ()
    %421 = arith.addf %420, %1 : vector<2x1x8xf32>
    %cst_161 = arith.constant dense<0xFF800000> : vector<2x1xf32>
    %422 = vector.multi_reduction <maximumf>, %421, %cst_161 [2] : vector<2x1x8xf32> to vector<2x1xf32>
    %423 = vector.shape_cast %422 : vector<2x1xf32> to vector<2x1x1xf32>
    %424 = vector.broadcast %423 : vector<2x1x1xf32> to vector<2x1x8xf32>
    %425 = arith.subf %421, %424 : vector<2x1x8xf32>
    %426 = math.exp %425 : vector<2x1x8xf32>
    %cst_162 = arith.constant dense<0.000000e+00> : vector<2x1xf32>
    %427 = vector.multi_reduction <add>, %426, %cst_162 [2] : vector<2x1x8xf32> to vector<2x1xf32>
    %428 = vector.shape_cast %427 : vector<2x1xf32> to vector<2x1x1xf32>
    %cst_163 = arith.constant 1.000000e+00 : f32
    %429 = vector.broadcast %cst_163 : f32 to vector<2x1x1xf32>
    %430 = arith.divf %429, %428 : vector<2x1x1xf32>
    %431 = vector.broadcast %430 : vector<2x1x1xf32> to vector<2x1x8xf32>
    %432 = arith.mulf %426, %431 : vector<2x1x8xf32>
    "tpu.trace_start"() <{level = 10 : i32, message = "bqs,bsh->bqh"}> : () -> ()
    %cst_164 = arith.constant dense<0.000000e+00> : vector<2x1x32xf32>
    %433 = tpu.matmul %432, %0, %cst_164 {dimension_numbers = #tpu.dot_dimension_numbers<[2], [1], [1], [2], [0, 0, 0, 1, 1, 2], [0], [0]>} : vector<2x1x8xf32>, vector<2x8x32xf32>, vector<2x1x32xf32> -> vector<2x1x32xf32>
    "tpu.trace_stop"() : () -> ()
    %434 = vector.shape_cast %433 : vector<2x1x32xf32> to vector<2x32xf32>
    %cst_165 = arith.constant dense<0.000000e+00> : vector<2x32xf32>
    %435 = tpu.matmul %434, %15, %cst_165 {dimension_numbers = #tpu.dot_dimension_numbers<[1], [0], [0], [1], [0, 0, 1, 1], [], []>} : vector<2x32xf32>, vector<32x32xf32>, vector<2x32xf32> -> vector<2x32xf32>
    %cst_166 = arith.constant dense<0.000000e+00> : vector<2x32xf32>
    %436 = tpu.matmul %418, %17, %cst_166 {dimension_numbers = #tpu.dot_dimension_numbers<[1], [0], [0], [1], [0, 0, 1, 1], [], []>} : vector<2x32xf32>, vector<32x32xf32>, vector<2x32xf32> -> vector<2x32xf32>
    %437 = arith.addf %435, %436 : vector<2x32xf32>
    %c0_167 = arith.constant 0 : index
    %c7_168 = arith.constant 7 : index
    %c0_169 = arith.constant 0 : index
    %438 = vector.load %arg6[%c0_167, %c7_168, %c0_169] : memref<2x8x32xf32, #tpu.memory_space<vmem>>, vector<2x1x32xf32>
    %439 = vector.shape_cast %438 : vector<2x1x32xf32> to vector<2x32xf32>
    %440 = vector.shape_cast %437 : vector<2x32xf32> to vector<2x1x32xf32>
    tpu.vector_store %arg6[%c0_167, %c7_168, %c0_169], %440 {strides = array<i32>} : memref<2x8x32xf32, #tpu.memory_space<vmem>>, vector<2x1x32xf32>,
    return
  }
  func.func @transform_0(%arg0: i32) -> (i32, i32, i32) {
    %c0_i32 = arith.constant 0 : i32
    %c0_i32_0 = arith.constant 0 : i32
    %c0_i32_1 = arith.constant 0 : i32
    %c0_i32_2 = arith.constant 0 : i32
    return %c0_i32, %c0_i32_0, %c0_i32_1 : i32, i32, i32
  }
  func.func @transform_1(%arg0: i32) -> (i32, i32) {
    %c0_i32 = arith.constant 0 : i32
    %c0_i32_0 = arith.constant 0 : i32
    %c0_i32_1 = arith.constant 0 : i32
    return %c0_i32, %c0_i32_0 : i32, i32
  }
  func.func @transform_2(%arg0: i32) -> (i32, i32, i32) {
    %c0_i32 = arith.constant 0 : i32
    %c0_i32_0 = arith.constant 0 : i32
    %c0_i32_1 = arith.constant 0 : i32
    %c0_i32_2 = arith.constant 0 : i32
    return %c0_i32, %c0_i32_0, %c0_i32_1 : i32, i32, i32
  }
  func.func @transform_3(%arg0: i32) -> (i32, i32, i32) {
    %c0_i32 = arith.constant 0 : i32
    %c0_i32_0 = arith.constant 0 : i32
    %c0_i32_1 = arith.constant 0 : i32
    %c0_i32_2 = arith.constant 0 : i32
    return %c0_i32, %c0_i32_0, %c0_i32_1 : i32, i32, i32
  }
  func.func @transform_4(%arg0: i32) -> (i32, i32, i32) {
    %c0_i32 = arith.constant 0 : i32
    %c0_i32_0 = arith.constant 0 : i32
    %c0_i32_1 = arith.constant 0 : i32
    %c0_i32_2 = arith.constant 0 : i32
    return %c0_i32, %c0_i32_0, %c0_i32_1 : i32, i32, i32
  }
  func.func @transform_5(%arg0: i32) -> (i32, i32, i32) {
    %c0_i32 = arith.constant 0 : i32
    %c0_i32_0 = arith.constant 0 : i32
    %c0_i32_1 = arith.constant 0 : i32
    %c0_i32_2 = arith.constant 0 : i32
    return %c0_i32, %c0_i32_0, %c0_i32_1 : i32, i32, i32
  }
}

</mosaic_0001>

<bundles_post_ra>
// kernel: tpu_custom_call.1
= control target key start
LH: loop header
LB: loop body
LE: loop exit
PB: predicated region body
PF: predicated region fallthrough
CT: control target
= control target key end

     0   :  { %10 = vsyncpa [#allocation3], 0  ;;  %s9137_s0 = inlined_call_operand.hbm [shape: f32[2,8,32], index: 0, kind: input, shape index: {}]   ;;  %s9138_s1 = inlined_call_operand.vmem [shape: f32[2,32], index: 1, kind: input, shape index: {}]   ;;  %s9139_s2 = inlined_call_operand.hbm [shape: f32[2,1,8], index: 2, kind: input, shape index: {}]   ;;  %s9140_s3 = inlined_call_operand.hbm [shape: f32[8,32,32], index: 3, kind: input, shape index: {}]   ;;  %s9141_s4 = inlined_call_operand.vmem [shape: f32[4,1,32], index: 4, kind: input, shape index: {}]   ;;  %s9142_s5 = inlined_call_operand.hbm [shape: f32[2,8,32], index: 5, kind: output, shape index: {}]  }
   0x1   :  { %11 = vsyncpa [#allocation6], 0 }
   0x2   :  { %12 = vsyncpa [#allocation4], 0  ;;  %s8237_s18 = smov [#allocation5]   ;;  %s8143_s22 = scalar_lea.hbm %s9139_s2, 32 }
   0x3   :  { %s32_s19 = sshll.u32 %s8237_s18, 4  ;;  %p8144_p0 = scmp.ne.s32.totalorder %s9139_s2, %s8143_s22  ;;  %s33_s19 = int_to_ptr.vmem [resolvable:$true] %s32_s19 }
   0x4   :  { %p8147_p1 = scmp.lt.u32.totalorder %s8143_s22, %s9139_s2 }
   0x6   :  { %p8149_p2 = pnand %p8147_p1, %p8144_p0 }
   0x8   :  { %8152 = shalt.err (!%p8149_p2)
}
   0x9   :  { %s8153_s27 = scalar_lea.vmem %s33_s19, 32  ;;  %p8158_p4 = scmp.lt.s32.totalorder %s33_s19, %s33_s19 }
   0xa   :  { %p8154_p3 = scmp.ne.s32.totalorder %s33_s19, %s8153_s27  ;;  %p8159_p5 = scmp.lt.s32.totalorder %s8153_s27, %s8153_s27 }
   0xc   :  { %p8160_p6 = por %p8159_p5, %p8158_p4 }
   0xe   :  { %p8161_p7 = pnand %p8160_p6, %p8154_p3 }
  0x10   :  { %8164 = shalt.err (!%p8161_p7)
}
  0x11   :  { %s8238_s28 = smov 16   ;;  %s8239_s29 = smov 1  }
  0x12   :  { %38 = dma.hbm_to_vmem [thread:$0]  %s9139_s2, 32, %s33_s19, [#allocation6], %s8238_s28, %s8238_s28, %s8239_s29  }
  0x13   :  { %s8240_s7 = smov [#allocation2]   ;;  %s8165_s11 = scalar_lea.hbm %s9137_s0, 256 }
  0x14   :  { %s18_s8 = sshll.u32 %s8240_s7, 4  ;;  %p8166_p8 = scmp.ne.s32.totalorder %s9137_s0, %s8165_s11  ;;  %s19_s8 = int_to_ptr.vmem [resolvable:$true] %s18_s8 }
  0x15   :  { %p8169_p9 = scmp.lt.u32.totalorder %s8165_s11, %s9137_s0 }
  0x17   :  { %p8171_p10 = pnand %p8169_p9, %p8166_p8 }
  0x19   :  { %8174 = shalt.err (!%p8171_p10)
}
  0x1a   :  { %s8175_s16 = scalar_lea.vmem %s19_s8, 256  ;;  %p8180_p12 = scmp.lt.s32.totalorder %s19_s8, %s19_s8 }
  0x1b   :  { %p8176_p11 = scmp.ne.s32.totalorder %s19_s8, %s8175_s16  ;;  %p8181_p13 = scmp.lt.s32.totalorder %s8175_s16, %s8175_s16 }
  0x1d   :  { %p8182_p0 = por %p8181_p13, %p8180_p12 }
  0x1f   :  { %p8183_p1 = pnand %p8182_p0, %p8176_p11 }
  0x21   :  { %8186 = shalt.err (!%p8183_p1)
}
  0x22   :  { %s8241_s2 = smov 128   ;;  %s8242_s17 = smov 8  }
  0x23   :  { %24 = dma.hbm_to_vmem [thread:$0]  %s9137_s0, 256, %s19_s8, [#allocation3], %s8241_s2, %s8241_s2, %s8242_s17  }
  0x24   :  { %s8243_s20 = smov [#allocation7]   ;;  %s8187_s24 = scalar_lea.hbm %s9140_s3, 4096 }
  0x25   :  { %s44_s21 = sshll.u32 %s8243_s20, 4  ;;  %p8188_p2 = scmp.ne.s32.totalorder %s9140_s3, %s8187_s24  ;;  %s45_s21 = int_to_ptr.vmem [resolvable:$true] %s44_s21 }
  0x26   :  { %p8191_p3 = scmp.lt.u32.totalorder %s8187_s24, %s9140_s3 }
  0x28   :  { %p8193_p4 = pnand %p8191_p3, %p8188_p2 }
  0x2a   :  { %8196 = shalt.err (!%p8193_p4)
}
  0x2b   :  { %s8197_s29 = scalar_lea.vmem %s45_s21, 4096  ;;  %p8202_p6 = scmp.lt.s32.totalorder %s45_s21, %s45_s21 }
  0x2c   :  { %p8198_p5 = scmp.ne.s32.totalorder %s45_s21, %s8197_s29  ;;  %p8203_p7 = scmp.lt.s32.totalorder %s8197_s29, %s8197_s29 }
  0x2e   :  { %p8204_p8 = por %p8203_p7, %p8202_p6 }
  0x30   :  { %p8205_p9 = pnand %p8204_p8, %p8198_p5 }
  0x32   :  { %8208 = shalt.err (!%p8205_p9)
}
  0x33   :  { %50 = dma.hbm_to_vmem [thread:$0]  %s9140_s3, 4096, %s45_s21, [#allocation6], %s8241_s2, %s8241_s2, %s8242_s17  }
  0x34   :  { %8231 = dma.done.wait [#allocation3], 256  }
  0x35   :  { %8232 = vsyncadd [#allocation3], 4294967040 }
  0x36   :  { %8233 = dma.done.wait [#allocation6], 4128  }
  0x37   :  { %8234 = vsyncadd [#allocation6], 4294963168  ;;  %v8244_v0 = vmov 0.0|0.0   ;;  %vm8245_vm0 = vmmov 0   ;;  %v8246_v1 = vmov 0.0   ;;  %v86_v2 = vld [vmem:[#allocation7 + $0x80] sm:$0xff]  ;;  %v374_v46 = vlaneseq }
  0x38   :  { %7681 = vmatprep.subr.bf16.mxu1 %v8244_v0  ;;  %7012 = vmatprep.mubr.msk.f32.mxu1 %vm8245_vm0, %v8246_v1  ;;  %v87_v3 = vld [vmem:[#allocation7 + $0x88] sm:$0xff]  ;;  %v88_v4 = vld [vmem:[#allocation7 + $0x90] sm:$0xff]  ;;  %v89_v6 = vld [vmem:[#allocation7 + $0x98] sm:$0xff]  ;;  %vm119_vm1 = vcmask 261120   ;;  %v8247_v44 = vmov 1966171168  }
  0x39   :  { %7693 = vmatprep.subr.bf16.mxu0 %v8244_v0  ;;  %7034 = vmatprep.mubr.msk.f32.mxu0 %vm8245_vm0, %v8246_v1  ;;  %v7682_v5 = vpack.c.bf16 %v87_v3, %v86_v2  ;;  %v7685_v7 = vpack.c.bf16 %v89_v6, %v88_v4  ;;  %v81_v8 = vld [vmem:[#allocation7 + $0x60] sm:$0xff]  ;;  %v82_v9 = vld [vmem:[#allocation7 + $0x68] sm:$0xff]  ;;  %v83_v10 = vld [vmem:[#allocation7 + $0x70] sm:$0xff]  ;;  %v372_v45 = vunpack.c.l.s4 %v8247_v44  ;;  %v375_v50 = vshrl.u32 %v374_v46, 7 }
  0x3a   :  { %v91_v11 = vld [vmem:[#allocation7 + $0xa0] sm:$0xff]  ;;  %v92_v12 = vld [vmem:[#allocation7 + $0xa8] sm:$0xff]  ;;  %v8328_v13 = vpack.c.bf16 %v82_v9, %v81_v8  ;;  %v84_v14 = vld [vmem:[#allocation7 + $0x78] sm:$0xff]  ;;  %vm543_vm2 = vcmask 57344   ;;  %vm568_vm3 = vcmask 64512   ;;  %vm790_vm4 = vcmask 1041409  }
  0x3b   :  { %7683 = vmatpush3.bf16.msra.mxu1 %v7682_v5  ;;  %v8331_v15 = vpack.c.bf16 %v84_v14, %v83_v10  ;;  %v112_v16 = vld [vmem:[%s9138_s1] sm:$0x3]  ;;  %v7688_v17 = vpack.c.bf16 %v92_v12, %v91_v11  ;;  %v93_v18 = vld [vmem:[#allocation7 + $0xb0] sm:$0xff]  ;;  %v94_v19 = vld [vmem:[#allocation7 + $0xb8] sm:$0xff]  ;;  %v373_v49 = vunpack.c.0.s8 %v372_v45  ;;  %vm889_vm5 = vcmask 253952  }
  0x3c   :  { %7684 = vmatprep.subr.bf16.mxu1 %v8244_v0  ;;  %7695 = vmatpush3.bf16.msra.mxu0 %v8328_v13  ;;  %v7691_v20 = vpack.c.bf16 %v94_v19, %v93_v18  ;;  %v8351_v21 = vld [vmem:[#allocation2] sm:$0xff]  ;;  %v8389_v58 = vld [vmem:[#allocation2 + $0x8] sm:$0xff]  ;;  %v8403_v63 = vld [vmem:[#allocation5 + $0x1] sm:$0x1] }
  0x3d   :  { %7696 = vmatprep.subr.bf16.mxu0 %v8244_v0  ;;  %v8361_v22 = vld [vmem:[%s9141_s4] ss:$0 sm:$0xff]  ;;  %v8367_v29 = vld [vmem:[%s9141_s4 + $0x1] ss:$0 sm:$0xff]  ;;  %v8373_v36 = vld [vmem:[%s9141_s4 + $0x3] ss:$0 sm:$0xff]  ;;  %v8382_v54 = vsub.s32 %v373_v49, %v375_v50 }
  0x3e   :  { %v8379_v41 = vld [vmem:[%s9141_s4 + $0x2] ss:$0 sm:$0xff]  ;;  %v8405_v2 = vld [vmem:[#allocation5] sm:$0x1]  ;;  %v72_v44 = vld [vmem:[#allocation7 + $0x28] sm:$0xff] }
  0x3f   :  { %7686 = vmatpush3.bf16.msra.mxu1 %v7685_v7  ;;  %v96_v49 = vld [vmem:[#allocation7 + $0xc0] sm:$0xff]  ;;  %v97_v50 = vld [vmem:[#allocation7 + $0xc8] sm:$0xff] }
  0x40   :  { %7687 = vmatprep.subr.bf16.mxu1 %v8244_v0  ;;  %7698 = vmatpush3.bf16.msra.mxu0 %v8331_v15 }
  0x41   :  { %7047 = vmatprep.subr.mxu0 %v8246_v1 }
  0x42   :  { %7013 = vmatmul.mubr.msk.f32.vlgmr.msra.gmra.mrb[0].mxu1 %vm119_vm1, %v112_v16 }
  0x43   :  { %7689 = vmatpush3.bf16.msra.mxu1 %v7688_v17  ;;  %7023 = vmatprep.mubr.msk.f32.mxu1 %vm8245_vm0, %v8246_v1 }
  0x44   :  { %7690 = vmatprep.subr.bf16.mxu1 %v8244_v0  ;;  %7035 = vmatmul.mubr.msk.f32.vlgmr.msra.gmra.mrb[0].mxu0 %vm119_vm1, %v112_v16 }
  0x45   :  { %7049 = vmatprep.mubr.msk.f32.mxu0 %vm8245_vm0, %v8246_v1  ;;  %7048 = vmatpush3.msra.mxu0 %v8351_v21 }
  0x46   :  { %7699 = vmatprep.subr.bf16.mxu0 %v8244_v0 }
  0x47   :  { %7692 = vmatpush3.bf16.msra.mxu1 %v7691_v20 }
  0x48   :  { %7037 = vmatprep.subr.mxu1 %v8246_v1 }
  0x4a   :  { %7024 = vmatmul.mubr.msk.f32.vlgmr.msra.gmra.mrb[2].mxu1 %vm119_vm1, %v112_v16 }
  0x4b   :  { %7039 = vmatprep.mubr.msk.f32.mxu1 %vm8245_vm0, %v8246_v1 }
  0x50   :  { %7038 = vmatpush3.xpose.msk.msra.mxu1 %vm119_vm1, %v8351_v21 }
  0x51   :  { %7042 = vmatprep.subr.mxu1 %v8246_v1 }
 0x115   :  { %v189_v23 = vpop.f32.mrb[0].mxu1 }
 0x116   :  { %v190_v24 = vadd.f32 %v8361_v22, %v189_v23  ;;  %v7014_v25 = vpop.f32.mrb[1].mxu1 }
 0x117   :  { %v353_v27 = vpop.f32.mrb[0].mxu0  ;;  %v66_v25 = vld [vmem:[#allocation7] sm:$0xff] }
 0x118   :  { %v6592_v26 = vmul.f32 -1.442695, %v190_v24  ;;  %v7036_v28 = vpop.f32.mrb[1].mxu0  ;;  %v354_v39 = vadd.f32 %v8373_v36, %v353_v27 }
 0x11a   :  { %7991 = vpow2.f32 %v6592_v26  ;;  %v67_v26 = vld [vmem:[#allocation7 + $0x8] sm:$0xff] }
 0x11b   :  { %v8413_v28 = vpack.c.bf16 %v67_v26, %v66_v25 }
 0x11d   :  { %v271_v30 = vpop.f32.mrb[2].mxu1 }
 0x11e   :  { %v272_v31 = vadd.f32 %v8367_v29, %v271_v30  ;;  %v7025_v32 = vpop.f32.mrb[3].mxu1  ;;  %v101_v30 = vld [vmem:[#allocation7 + $0xe0] sm:$0xff] }
 0x11f   :  { %v102_v32 = vld [vmem:[#allocation7 + $0xe8] sm:$0xff] }
 0x120   :  { %v6595_v33 = vmul.f32 -1.442695, %v272_v31 }
 0x122   :  { %7993 = vpow2.f32 %v6595_v33  ;;  %v68_v33 = vld [vmem:[#allocation7 + $0x10] sm:$0xff] }
 0x124   :  { %v7992_v34 = vpop.eup %7991 }
 0x125   :  { %v196_v35 = vadd.f32 1.0, %v7992_v34  ;;  %v69_v34 = vld [vmem:[#allocation7 + $0x18] sm:$0xff] }
 0x127   :  { %7995 = vrcp.f32 %v196_v35 }
 0x12c   :  { %v7994_v37 = vpop.eup %7993 }
 0x12d   :  { %v278_v38 = vadd.f32 1.0, %v7994_v37  ;;  %v8417_v37 = vpack.c.bf16 %v102_v32, %v101_v30 }
 0x12f   :  { %7997 = vrcp.f32 %v278_v38  ;;  %v8419_v38 = vpack.c.bf16 %v69_v34, %v68_v33 }
 0x131   :  { %v7996_v40 = vpop.eup %7995 }
 0x132   :  { %v357_v42 = vmul.f32 %v7996_v40, %v354_v39  ;;  %v103_v39 = vld [vmem:[#allocation7 + $0xf0] sm:$0xff] }
 0x134   :  { %v364_v43 = vadd.f32 %v8379_v41, %v357_v42  ;;  %v104_v42 = vld [vmem:[#allocation7 + $0xf8] sm:$0xff] }
 0x135   :  { %v8427_v45 = vpack.c.bf16 %v104_v42, %v103_v39 }
 0x136   :  { %7999 = vtanh.f32 %v364_v43  ;;  %v71_v43 = vld [vmem:[#allocation7 + $0x20] sm:$0xff] }
 0x137   :  { %v8429_v46 = vpack.c.bf16 %v72_v44, %v71_v43 }
 0x139   :  { %v7998_v47 = vpop.eup %7997 }
 0x13a   :  { %v366_v48 = vsub.f32 1.0, %v7998_v47  ;;  %v368_v52 = vmul.f32 %v7998_v47, %v112_v16  ;;  %v73_v47 = vld [vmem:[#allocation7 + $0x30] sm:$0xff] }
 0x140   :  { %v8000_v51 = vpop.eup %7999 }
 0x141   :  { %v367_v53 = vmul.f32 %v8000_v51, %v366_v48  ;;  %v74_v48 = vld [vmem:[#allocation7 + $0x38] sm:$0xff] }
 0x142   :  { %v8439_v51 = vpack.c.bf16 %v74_v48, %v73_v47 }
 0x143   :  { %v8384_v55 = vadd.f32 %v368_v52, %v367_v53  ;;  %v8441_v52 = vpack.c.bf16 %v97_v50, %v96_v49  ;;  %v98_v53 = vld [vmem:[#allocation7 + $0xd0] sm:$0xff] }
 0x145   :  { %v377_v56 = vrot.slane %v8384_v55, %v8382_v54 }
 0x147   :  { %v385_v57 = vrot.slane %v377_v56, %v8382_v54  ;;  %v378_v59 = vcombine.high %v377_v56, %v377_v56  ;;  %v99_v56 = vld [vmem:[#allocation7 + $0xd8] sm:$0xff] }
 0x149   :  { %7040 = vmatmul.mubr.msk.f32.vlgmr.msra.gmra.mrb[4].mxu1 %vm119_vm1, %v385_v57  ;;  %v392_v60 = vrot.slane %v378_v59, %v8382_v54  ;;  %v8470_v57 = vpack.c.bf16 %v99_v56, %v98_v53 }
 0x14a   :  { %7043 = vmatpush3.xpose.msk.msra.mxu1 %vm119_vm1, %v8389_v58  ;;  %7044 = vmatprep.mubr.msk.f32.mxu1 %vm8245_vm0, %v8246_v1 }
 0x14b   :  { %7052 = vmatprep.subr.mxu1 %v8246_v1 }
 0x14d   :  { %7045 = vmatmul.mubr.msk.f32.vlgmr.msra.gmra.mrb[6].mxu1 %vm119_vm1, %v392_v60  ;;  %v76_v60 = vld [vmem:[#allocation7 + $0x40] sm:$0xff] }
 0x14e   :  { %7053 = vmatpush3.msra.mxu1 %v8389_v58  ;;  %7054 = vmatprep.mubr.msk.f32.mxu1 %vm8245_vm0, %v8246_v1 }
 0x14f   :  { %7711 = vmatprep.subr.bf16.mxu1 %v8244_v0 }
 0x21c   :  { %v464_v61 = vpop.f32.mrb[4].mxu1 }
 0x21d   :  { %v7041_v62 = vpop.f32.mrb[5].mxu1  ;;  %v465_v6 = vadd.f32 %v464_v61, %v8405_v2  ;;  %v77_v61 = vld [vmem:[#allocation7 + $0x48] sm:$0xff] }
 0x21f   :  { %v544_v8 = vsel %vm543_vm2, %v465_v6, -inf }
 0x220   :  { %v539_v3 = vpop.f32.mrb[6].mxu1 }
 0x221   :  { %v540_v4 = vadd.f32 %v539_v3, %v8403_v63  ;;  %v7046_v5 = vpop.f32.mrb[7].mxu1 }
 0x223   :  { %v547_v7 = vsel %vm543_vm2, %v540_v4, -inf }
 0x224   :  { %548 = vmax.xlane.f32.xlu0 %v547_v7  ;;  %v79_v7 = vld [vmem:[#allocation7 + $0x58] sm:$0xff] }
 0x228   :  { %545 = vmax.xlane.f32.xlu0 %v544_v8 }
 0x2b1   :  { %v549_v9 = vpop.xlane.xlu0 %548 }
 0x2b2   :  { %v551_v10 = vsub.f32 %v540_v4, %v549_v9  ;;  %v8474_v4 = vpack.c.bf16 %v77_v61, %v76_v60 }
 0x2b4   :  { %v554_v11 = vmul.f32 1.442695, %v551_v10 }
 0x2b5   :  { %v546_v12 = vpop.xlane.xlu0 %545 }
 0x2b6   :  { %8001 = vpow2.f32 %v554_v11  ;;  %v550_v14 = vsub.f32 %v465_v6, %v546_v12  ;;  %v78_v6 = vld [vmem:[#allocation7 + $0x50] sm:$0xff] }
 0x2b7   :  { %v8479_v10 = vpack.c.bf16 %v79_v7, %v78_v6 }
 0x2b8   :  { %v552_v16 = vmul.f32 1.442695, %v550_v14 }
 0x2ba   :  { %8003 = vpow2.f32 %v552_v16 }
 0x2c0   :  { %v8002_v17 = vpop.eup %8001 }
 0x2c1   :  { %v559_v18 = vsel %vm543_vm2, %v8002_v17, 0.0 }
 0x2c2   :  { %560 = vadd.xlane.f32.xlu1 %v559_v18 }
 0x2c4   :  { %v8004_v19 = vpop.eup %8003 }
 0x2c5   :  { %v556_v20 = vsel %vm543_vm2, %v8004_v19, 0.0 }
 0x2c6   :  { %557 = vadd.xlane.f32.xlu1 %v556_v20 }
 0x34f   :  { %v561_v23 = vpop.xlane.xlu1 %560 }
 0x350   :  { %8005 = vrcp.f32 %v561_v23 }
 0x353   :  { %v558_v24 = vpop.xlane.xlu1 %557 }
 0x354   :  { %8007 = vrcp.f32 %v558_v24 }
 0x35a   :  { %v8006_v27 = vpop.eup %8005 }
 0x35b   :  { %v567_v31 = vmul.f32 %v8006_v27, %v8002_v17 }
 0x35d   :  { %7055 = vmatmul.mubr.msk.f32.vlgmr.msra.gmra.mrb[8].mxu1 %vm568_vm3, %v567_v31 }
 0x35e   :  { %v8008_v35 = vpop.eup %8007  ;;  %7713 = vmatpush3.bf16.msra.mxu1 %v8413_v28  ;;  %7087 = vmatprep.mubr.msk.f32.mxu1 %vm8245_vm0, %v8246_v1 }
 0x35f   :  { %v566_v40 = vmul.f32 %v8008_v35, %v8004_v19  ;;  %7714 = vmatprep.subr.bf16.mxu1 %v8244_v0 }
 0x361   :  { %7050 = vmatmul.mubr.msk.f32.vlgmr.msra.gmra.mrb[2].mxu0 %vm568_vm3, %v566_v40 }
 0x362   :  { %7701 = vmatpush3.bf16.msra.mxu0 %v8417_v37  ;;  %7716 = vmatpush3.bf16.msra.mxu1 %v8419_v38 }
 0x363   :  { %7702 = vmatprep.subr.bf16.mxu0 %v8244_v0  ;;  %7717 = vmatprep.subr.bf16.mxu1 %v8244_v0 }
 0x364   :  { %7065 = vmatprep.mubr.msk.f32.mxu0 %vm8245_vm0, %v8246_v1 }
 0x365   :  { %7088 = vmatmul.mubr.msk.f32.vlgmr.msra.gmra.mrb[10].mxu1 %vm119_vm1, %v8384_v55 }
 0x366   :  { %7704 = vmatpush3.bf16.msra.mxu0 %v8427_v45  ;;  %7719 = vmatpush3.bf16.msra.mxu1 %v8429_v46 }
 0x367   :  { %7720 = vmatprep.subr.bf16.mxu1 %v8244_v0  ;;  %7098 = vmatprep.mubr.msk.f32.mxu1 %vm8245_vm0, %v8246_v1 }
 0x368   :  { %7705 = vmatprep.subr.bf16.mxu0 %v8244_v0 }
 0x369   :  { %7066 = vmatmul.mubr.msk.f32.vlgmr.msra.gmra.mrb[4].mxu0 %vm119_vm1, %v8384_v55 }
 0x36a   :  { %7722 = vmatpush3.bf16.msra.mxu1 %v8439_v51  ;;  %7707 = vmatpush3.bf16.msra.mxu0 %v8441_v52 }
 0x36b   :  { %7729 = vmatprep.subr.bf16.mxu1 %v8244_v0  ;;  %7708 = vmatprep.subr.bf16.mxu0 %v8244_v0 }
 0x36c   :  { %7076 = vmatprep.mubr.msk.f32.mxu0 %vm8245_vm0, %v8246_v1 }
 0x36d   :  { %7099 = vmatmul.mubr.msk.f32.vlgmr.msra.gmra.mrb[12].mxu1 %vm119_vm1, %v8384_v55 }
 0x36e   :  { %7731 = vmatpush3.bf16.msra.mxu1 %v8328_v13  ;;  %7120 = vmatprep.mubr.msk.f32.mxu1 %vm8245_vm0, %v8246_v1 }
 0x36f   :  { %7732 = vmatprep.subr.bf16.mxu1 %v8244_v0  ;;  %7710 = vmatpush3.bf16.msra.mxu0 %v8470_v57 }
 0x370   :  { %7723 = vmatprep.subr.bf16.mxu0 %v8244_v0 }
 0x372   :  { %7734 = vmatpush3.bf16.msra.mxu1 %v8331_v15 }
 0x373   :  { %7128 = vmatprep.subr.mxu1 %v8246_v1 }
 0x375   :  { %7121 = vmatmul.mubr.msk.f32.vlgmr.msra.gmra.mrb[14].mxu1 %vm119_vm1, %v8384_v55 }
 0x376   :  { %7130 = vmatprep.mubr.msk.f32.mxu1 %vm8245_vm0, %v8246_v1 }
 0x37b   :  { %7129 = vmatpush3.xpose.msk.msra.mxu1 %vm119_vm1, %v8389_v58 }
 0x37c   :  { %7138 = vmatprep.subr.mxu1 %v8246_v1 }
 0x430   :  { %v711_v59 = vpop.f32.mrb[8].mxu1 }
 0x431   :  { %v7056_v62 = vpop.f32.mrb[9].mxu1  ;;  %v789_v3 = vrot.slane %v711_v59, 7 }
 0x434   :  { %v638_v5 = vpop.f32.mrb[2].mxu0 }
 0x435   :  { %v791_v8 = vsel %vm790_vm4, %v789_v3, %v638_v5  ;;  %v7051_v9 = vpop.f32.mrb[3].mxu0 }
 0x436   :  { %7077 = vmatmul.mubr.msk.f32.vlgmr.msra.gmra.mrb[4].mxu0 %vm119_vm1, %v791_v8 }
 0x437   :  { %7725 = vmatpush3.bf16.msra.mxu0 %v8474_v4  ;;  %7109 = vmatprep.mubr.msk.f32.mxu0 %vm8245_vm0, %v8246_v1 }
 0x438   :  { %v958_v11 = vpop.f32.mrb[10].mxu1  ;;  %7726 = vmatprep.subr.bf16.mxu0 %v8244_v0 }
 0x439   :  { %v959_v12 = vadd.f32 %v8361_v22, %v958_v11  ;;  %v7089_v14 = vpop.f32.mrb[11].mxu1 }
 0x43b   :  { %v6608_v16 = vmul.f32 -1.442695, %v959_v12  ;;  %7728 = vmatpush3.bf16.msra.mxu0 %v8479_v10 }
 0x43c   :  { %7123 = vmatprep.subr.mxu0 %v8246_v1 }
 0x43d   :  { %8009 = vpow2.f32 %v6608_v16 }
 0x43e   :  { %7110 = vmatmul.mubr.msk.f32.vlgmr.msra.gmra.mrb[6].mxu0 %vm119_vm1, %v8384_v55 }
 0x43f   :  { %7125 = vmatprep.mubr.msk.f32.mxu0 %vm8245_vm0, %v8246_v1 }
 0x440   :  { %v1034_v17 = vpop.f32.mrb[12].mxu1 }
 0x441   :  { %v7100_v18 = vpop.f32.mrb[13].mxu1  ;;  %v1035_v30 = vadd.f32 %v8367_v29, %v1034_v17 }
 0x443   :  { %v6610_v31 = vmul.f32 -1.442695, %v1035_v30 }
 0x444   :  { %7124 = vmatpush3.xpose.msk.msra.mxu0 %vm119_vm1, %v8351_v21 }
 0x445   :  { %7133 = vmatprep.subr.mxu0 %v8246_v1 }
 0x447   :  { %v8010_v19 = vpop.eup %8009 }
 0x448   :  { %v965_v20 = vadd.f32 1.0, %v8010_v19  ;;  %v1180_v23 = vpop.f32.mrb[14].mxu1 }
 0x449   :  { %v7122_v24 = vpop.f32.mrb[15].mxu1  ;;  %v1181_v25 = vadd.f32 %v8373_v36, %v1180_v23 }
 0x44a   :  { %8011 = vrcp.f32 %v965_v20 }
 0x44b   :  { %8013 = vpow2.f32 %v6610_v31 }
 0x454   :  { %v8012_v26 = vpop.eup %8011 }
 0x455   :  { %v1184_v27 = vmul.f32 %v8012_v26, %v1181_v25  ;;  %v8014_v35 = vpop.eup %8013 }
 0x456   :  { %v1041_v42 = vadd.f32 1.0, %v8014_v35 }
 0x458   :  { %8015 = vrcp.f32 %v1041_v42 }
 0x462   :  { %v8016_v50 = vpop.eup %8015 }
 0x463   :  { %v1187_v53 = vsub.f32 1.0, %v8016_v50  ;;  %v1189_v59 = vmul.f32 %v8016_v50, %v8384_v55 }
 0x509   :  { %v860_v32 = vpop.f32.mrb[4].mxu0 }
 0x50a   :  { %v871_v33 = vrot.slane %v860_v32, %v8382_v54  ;;  %v7078_v34 = vpop.f32.mrb[5].mxu0 }
 0x50c   :  { %v872_v39 = vcombine.high %v871_v33, %v871_v33  ;;  %v879_v40 = vrot.slane %v871_v33, %v8382_v54 }
 0x50e   :  { %v886_v43 = vrot.slane %v872_v39, %v8382_v54  ;;  %890 = vst.msk [vmem:[#allocation8] sm:$0x1] %vm889_vm5, %v879_v40 }
 0x510   :  { %891 = vst.msk [vmem:[#allocation8 + $0x8] sm:$0x1] %vm889_vm5, %v886_v43 }
 0x511   :  { %v1110_v44 = vpop.f32.mrb[6].mxu0 }
 0x512   :  { %v1111_v47 = vadd.f32 %v8379_v41, %v1110_v44  ;;  %v7111_v48 = vpop.f32.mrb[7].mxu0 }
 0x514   :  { %v1185_v49 = vadd.f32 %v1184_v27, %v1111_v47 }
 0x516   :  { %8017 = vtanh.f32 %v1185_v49 }
 0x520   :  { %v8018_v56 = vpop.eup %8017 }
 0x521   :  { %v1188_v60 = vmul.f32 %v8018_v56, %v1187_v53 }
 0x523   :  { %v8503_v61 = vadd.f32 %v1189_v59, %v1188_v60 }
 0x525   :  { %v1198_v62 = vrot.slane %v8503_v61, %v8382_v54 }
 0x527   :  { %v1206_v3 = vrot.slane %v1198_v62, %v8382_v54  ;;  %v1199_v5 = vcombine.high %v1198_v62, %v1198_v62 }
 0x529   :  { %7126 = vmatmul.mubr.msk.f32.vlgmr.msra.gmra.mrb[8].mxu0 %vm119_vm1, %v1206_v3  ;;  %v1213_v6 = vrot.slane %v1199_v5, %v8382_v54 }
 0x52a   :  { %7134 = vmatpush3.msra.mxu0 %v8351_v21  ;;  %7135 = vmatprep.mubr.msk.f32.mxu0 %vm8245_vm0, %v8246_v1 }
 0x52b   :  { %7131 = vmatmul.mubr.msk.f32.vlgmr.msra.gmra.mrb[16].mxu1 %vm119_vm1, %v1213_v6  ;;  %7735 = vmatprep.subr.bf16.mxu0 %v8244_v0 }
 0x52c   :  { %7139 = vmatpush3.msra.mxu1 %v8389_v58  ;;  %7140 = vmatprep.mubr.msk.f32.mxu1 %vm8245_vm0, %v8246_v1 }
 0x52d   :  { %7747 = vmatprep.subr.bf16.mxu1 %v8244_v0 }
 0x5fc   :  { %v1282_v55 = vpop.f32.mrb[8].mxu0 }
 0x5fd   :  { %v1283_v7 = vadd.f32 %v1282_v55, %v8405_v2  ;;  %v7127_v8 = vpop.f32.mrb[9].mxu0 }
 0x5fe   :  { %v1354_v9 = vpop.f32.mrb[16].mxu1 }
 0x5ff   :  { %v1355_v11 = vadd.f32 %v1354_v9, %v8403_v63  ;;  %v7132_v12 = vpop.f32.mrb[17].mxu1  ;;  %v1358_v14 = vsel %vm543_vm2, %v1283_v7, -inf }
 0x600   :  { %1359 = vmax.xlane.f32.xlu1 %v1358_v14 }
 0x601   :  { %v1361_v16 = vsel %vm543_vm2, %v1355_v11, -inf }
 0x602   :  { %1362 = vmax.xlane.f32.xlu0 %v1361_v16 }
 0x68d   :  { %v1360_v17 = vpop.xlane.xlu1 %1359 }
 0x68e   :  { %v1364_v18 = vsub.f32 %v1283_v7, %v1360_v17 }
 0x68f   :  { %v1363_v19 = vpop.xlane.xlu0 %1362 }
 0x690   :  { %v1366_v20 = vmul.f32 1.442695, %v1364_v18  ;;  %v1365_v23 = vsub.f32 %v1355_v11, %v1363_v19 }
 0x692   :  { %8019 = vpow2.f32 %v1366_v20  ;;  %v1368_v24 = vmul.f32 1.442695, %v1365_v23 }
 0x694   :  { %8021 = vpow2.f32 %v1368_v24 }
 0x69c   :  { %v8020_v25 = vpop.eup %8019 }
 0x69d   :  { %v1370_v26 = vsel %vm543_vm2, %v8020_v25, 0.0 }
 0x69e   :  { %v8022_v27 = vpop.eup %8021  ;;  %1371 = vadd.xlane.f32.xlu1 %v1370_v26 }
 0x69f   :  { %v1373_v30 = vsel %vm543_vm2, %v8022_v27, 0.0 }
 0x6a0   :  { %1374 = vadd.xlane.f32.xlu0 %v1373_v30 }
 0x72b   :  { %v1372_v31 = vpop.xlane.xlu1 %1371 }
 0x72c   :  { %8023 = vrcp.f32 %v1372_v31 }
 0x72d   :  { %v1375_v32 = vpop.xlane.xlu0 %1374 }
 0x72e   :  { %8025 = vrcp.f32 %v1375_v32 }
 0x736   :  { %v8024_v33 = vpop.eup %8023 }
 0x737   :  { %v1380_v34 = vmul.f32 %v8024_v33, %v8020_v25 }
 0x738   :  { %v8026_v35 = vpop.eup %8025 }
 0x739   :  { %v1381_v39 = vmul.f32 %v8026_v35, %v8022_v27  ;;  %7136 = vmatmul.mubr.msk.f32.vlgmr.msra.gmra.mrb[10].mxu0 %vm568_vm3, %v1380_v34 }
 0x73a   :  { %7737 = vmatpush3.bf16.msra.mxu0 %v8417_v37  ;;  %7151 = vmatprep.mubr.msk.f32.mxu0 %vm8245_vm0, %v8246_v1 }
 0x73b   :  { %7141 = vmatmul.mubr.msk.f32.vlgmr.msra.gmra.mrb[18].mxu1 %vm568_vm3, %v1381_v39  ;;  %7738 = vmatprep.subr.bf16.mxu0 %v8244_v0 }
 0x73c   :  { %7749 = vmatpush3.bf16.msra.mxu1 %v8413_v28  ;;  %7173 = vmatprep.mubr.msk.f32.mxu1 %vm8245_vm0, %v8246_v1 }
 0x73d   :  { %7750 = vmatprep.subr.bf16.mxu1 %v8244_v0 }
 0x73e   :  { %7740 = vmatpush3.bf16.msra.mxu0 %v8427_v45 }
 0x73f   :  { %7741 = vmatprep.subr.bf16.mxu0 %v8244_v0 }
 0x740   :  { %7752 = vmatpush3.bf16.msra.mxu1 %v8419_v38 }
 0x741   :  { %7152 = vmatmul.mubr.msk.f32.vlgmr.msra.gmra.mrb[12].mxu0 %vm119_vm1, %v8503_v61  ;;  %7753 = vmatprep.subr.bf16.mxu1 %v8244_v0 }
 0x742   :  { %7743 = vmatpush3.bf16.msra.mxu0 %v8441_v52  ;;  %7162 = vmatprep.mubr.msk.f32.mxu0 %vm8245_vm0, %v8246_v1 }
 0x743   :  { %7174 = vmatmul.mubr.msk.f32.vlgmr.msra.gmra.mrb[20].mxu1 %vm119_vm1, %v8503_v61  ;;  %7744 = vmatprep.subr.bf16.mxu0 %v8244_v0 }
 0x744   :  { %7755 = vmatpush3.bf16.msra.mxu1 %v8429_v46  ;;  %7184 = vmatprep.mubr.msk.f32.mxu1 %vm8245_vm0, %v8246_v1 }
 0x745   :  { %7756 = vmatprep.subr.bf16.mxu1 %v8244_v0 }
 0x746   :  { %7746 = vmatpush3.bf16.msra.mxu0 %v8470_v57 }
 0x747   :  { %7759 = vmatprep.subr.bf16.mxu0 %v8244_v0 }
 0x748   :  { %7758 = vmatpush3.bf16.msra.mxu1 %v8439_v51 }
 0x749   :  { %7765 = vmatprep.subr.bf16.mxu1 %v8244_v0 }
 0x74b   :  { %7185 = vmatmul.mubr.msk.f32.vlgmr.msra.gmra.mrb[22].mxu1 %vm119_vm1, %v8503_v61 }
 0x74c   :  { %7767 = vmatpush3.bf16.msra.mxu1 %v8328_v13  ;;  %7206 = vmatprep.mubr.msk.f32.mxu1 %vm8245_vm0, %v8246_v1 }
 0x74d   :  { %7768 = vmatprep.subr.bf16.mxu1 %v8244_v0 }
 0x750   :  { %7770 = vmatpush3.bf16.msra.mxu1 %v8331_v15 }
 0x751   :  { %7214 = vmatprep.subr.mxu1 %v8246_v1 }
 0x753   :  { %7207 = vmatmul.mubr.msk.f32.vlgmr.msra.gmra.mrb[24].mxu1 %vm119_vm1, %v8503_v61 }
 0x754   :  { %7216 = vmatprep.mubr.msk.f32.mxu1 %vm8245_vm0, %v8246_v1 }
 0x759   :  { %7215 = vmatpush3.xpose.msk.msra.mxu1 %vm119_vm1, %v8389_v58 }
 0x75a   :  { %7224 = vmatprep.subr.mxu1 %v8246_v1 }
 0x80c   :  { %v1451_v40 = vpop.f32.mrb[10].mxu0 }
 0x80d   :  { %v7137_v42 = vpop.f32.mrb[11].mxu0 }
 0x80e   :  { %v1524_v43 = vpop.f32.mrb[18].mxu1 }
 0x80f   :  { %v1602_v44 = vrot.slane %v1524_v43, 7  ;;  %v7142_v47 = vpop.f32.mrb[19].mxu1 }
 0x811   :  { %v1603_v48 = vsel %vm790_vm4, %v1602_v44, %v1451_v40 }
 0x812   :  { %7163 = vmatmul.mubr.msk.f32.vlgmr.msra.gmra.mrb[12].mxu0 %vm119_vm1, %v1603_v48 }
 0x813   :  { %7761 = vmatpush3.bf16.msra.mxu0 %v8474_v4  ;;  %7195 = vmatprep.mubr.msk.f32.mxu0 %vm8245_vm0, %v8246_v1 }
 0x814   :  { %7762 = vmatprep.subr.bf16.mxu0 %v8244_v0 }
 0x816   :  { %v1769_v49 = vpop.f32.mrb[20].mxu1 }
 0x817   :  { %v1770_v50 = vadd.f32 %v8361_v22, %v1769_v49  ;;  %v7175_v53 = vpop.f32.mrb[21].mxu1  ;;  %7764 = vmatpush3.bf16.msra.mxu0 %v8479_v10 }
 0x818   :  { %7209 = vmatprep.subr.mxu0 %v8246_v1 }
 0x819   :  { %v6622_v56 = vmul.f32 -1.442695, %v1770_v50 }
 0x81a   :  { %7196 = vmatmul.mubr.msk.f32.vlgmr.msra.gmra.mrb[14].mxu0 %vm119_vm1, %v8503_v61 }
 0x81b   :  { %8027 = vpow2.f32 %v6622_v56  ;;  %7211 = vmatprep.mubr.msk.f32.mxu0 %vm8245_vm0, %v8246_v1 }
 0x81e   :  { %v1845_v59 = vpop.f32.mrb[22].mxu1 }
 0x81f   :  { %v7186_v60 = vpop.f32.mrb[23].mxu1  ;;  %v1846_v9 = vadd.f32 %v8367_v29, %v1845_v59 }
 0x820   :  { %7210 = vmatpush3.xpose.msk.msra.mxu0 %vm119_vm1, %v8351_v21 }
 0x821   :  { %7219 = vmatprep.subr.mxu0 %v8246_v1  ;;  %v6624_v11 = vmul.f32 -1.442695, %v1846_v9 }
 0x825   :  { %v8028_v62 = vpop.eup %8027 }
 0x826   :  { %v1776_v3 = vadd.f32 1.0, %v8028_v62  ;;  %v1991_v5 = vpop.f32.mrb[24].mxu1 }
 0x827   :  { %v7208_v6 = vpop.f32.mrb[25].mxu1  ;;  %v1992_v55 = vadd.f32 %v8373_v36, %v1991_v5 }
 0x828   :  { %8029 = vrcp.f32 %v1776_v3 }
 0x829   :  { %8031 = vpow2.f32 %v6624_v11 }
 0x832   :  { %v8030_v7 = vpop.eup %8029 }
 0x833   :  { %v1995_v8 = vmul.f32 %v8030_v7, %v1992_v55  ;;  %v8032_v17 = vpop.eup %8031 }
 0x834   :  { %v1852_v20 = vadd.f32 1.0, %v8032_v17 }
 0x836   :  { %8033 = vrcp.f32 %v1852_v20 }
 0x840   :  { %v8034_v30 = vpop.eup %8033 }
 0x841   :  { %v1998_v31 = vsub.f32 1.0, %v8034_v30  ;;  %v2000_v33 = vmul.f32 %v8034_v30, %v8503_v61 }
 0x8e5   :  { %v1672_v12 = vpop.f32.mrb[12].mxu0 }
 0x8e6   :  { %v1683_v14 = vrot.slane %v1672_v12, %v8382_v54  ;;  %v7164_v16 = vpop.f32.mrb[13].mxu0 }
 0x8e8   :  { %v1684_v18 = vcombine.high %v1683_v14, %v1683_v14  ;;  %v1691_v19 = vrot.slane %v1683_v14, %v8382_v54 }
 0x8ea   :  { %v1698_v23 = vrot.slane %v1684_v18, %v8382_v54  ;;  %1701 = vst.msk [vmem:[#allocation8 + $0x1] sm:$0x1] %vm889_vm5, %v1691_v19 }
 0x8ec   :  { %1702 = vst.msk [vmem:[#allocation8 + $0x9] sm:$0x1] %vm889_vm5, %v1698_v23 }
 0x8ed   :  { %v1921_v24 = vpop.f32.mrb[14].mxu0 }
 0x8ee   :  { %v1922_v25 = vadd.f32 %v8379_v41, %v1921_v24  ;;  %v7197_v26 = vpop.f32.mrb[15].mxu0 }
 0x8f0   :  { %v1996_v27 = vadd.f32 %v1995_v8, %v1922_v25 }
 0x8f2   :  { %8035 = vtanh.f32 %v1996_v27 }
 0x8fc   :  { %v8036_v32 = vpop.eup %8035 }
 0x8fd   :  { %v1999_v34 = vmul.f32 %v8036_v32, %v1998_v31 }
 0x8ff   :  { %v8595_v35 = vadd.f32 %v2000_v33, %v1999_v34 }
 0x901   :  { %v2009_v39 = vrot.slane %v8595_v35, %v8382_v54 }
 0x903   :  { %v2017_v40 = vrot.slane %v2009_v39, %v8382_v54  ;;  %v2010_v42 = vcombine.high %v2009_v39, %v2009_v39 }
 0x905   :  { %7212 = vmatmul.mubr.msk.f32.vlgmr.msra.gmra.mrb[16].mxu0 %vm119_vm1, %v2017_v40  ;;  %v2024_v43 = vrot.slane %v2010_v42, %v8382_v54 }
 0x906   :  { %7220 = vmatpush3.msra.mxu0 %v8351_v21  ;;  %7221 = vmatprep.mubr.msk.f32.mxu0 %vm8245_vm0, %v8246_v1 }
 0x907   :  { %7217 = vmatmul.mubr.msk.f32.vlgmr.msra.gmra.mrb[26].mxu1 %vm119_vm1, %v2024_v43  ;;  %7771 = vmatprep.subr.bf16.mxu0 %v8244_v0 }
 0x908   :  { %7225 = vmatpush3.msra.mxu1 %v8389_v58  ;;  %7226 = vmatprep.mubr.msk.f32.mxu1 %vm8245_vm0, %v8246_v1 }
 0x909   :  { %7783 = vmatprep.subr.bf16.mxu1 %v8244_v0 }
 0x9d8   :  { %v2093_v61 = vpop.f32.mrb[16].mxu0 }
 0x9d9   :  { %v2094_v44 = vadd.f32 %v2093_v61, %v8405_v2  ;;  %v7213_v47 = vpop.f32.mrb[17].mxu0 }
 0x9da   :  { %v2165_v48 = vpop.f32.mrb[26].mxu1 }
 0x9db   :  { %v2166_v49 = vadd.f32 %v2165_v48, %v8403_v63  ;;  %v7218_v50 = vpop.f32.mrb[27].mxu1  ;;  %v2169_v53 = vsel %vm543_vm2, %v2094_v44, -inf }
 0x9dc   :  { %2170 = vmax.xlane.f32.xlu1 %v2169_v53 }
 0x9dd   :  { %v2172_v56 = vsel %vm543_vm2, %v2166_v49, -inf }
 0x9de   :  { %2173 = vmax.xlane.f32.xlu0 %v2172_v56 }
 0xa69   :  { %v2171_v59 = vpop.xlane.xlu1 %2170 }
 0xa6a   :  { %v2175_v60 = vsub.f32 %v2094_v44, %v2171_v59 }
 0xa6b   :  { %v2174_v62 = vpop.xlane.xlu0 %2173 }
 0xa6c   :  { %v2177_v3 = vmul.f32 1.442695, %v2175_v60  ;;  %v2176_v5 = vsub.f32 %v2166_v49, %v2174_v62 }
 0xa6e   :  { %8037 = vpow2.f32 %v2177_v3  ;;  %v2179_v6 = vmul.f32 1.442695, %v2176_v5 }
 0xa70   :  { %8039 = vpow2.f32 %v2179_v6 }
 0xa78   :  { %v8038_v55 = vpop.eup %8037 }
 0xa79   :  { %v2181_v7 = vsel %vm543_vm2, %v8038_v55, 0.0 }
 0xa7a   :  { %v8040_v8 = vpop.eup %8039  ;;  %2182 = vadd.xlane.f32.xlu1 %v2181_v7 }
 0xa7b   :  { %v2184_v9 = vsel %vm543_vm2, %v8040_v8, 0.0 }
 0xa7c   :  { %2185 = vadd.xlane.f32.xlu0 %v2184_v9 }
 0xb07   :  { %v2183_v11 = vpop.xlane.xlu1 %2182 }
 0xb08   :  { %8041 = vrcp.f32 %v2183_v11 }
 0xb09   :  { %v2186_v12 = vpop.xlane.xlu0 %2185 }
 0xb0a   :  { %8043 = vrcp.f32 %v2186_v12 }
 0xb12   :  { %v8042_v14 = vpop.eup %8041 }
 0xb13   :  { %v2191_v16 = vmul.f32 %v8042_v14, %v8038_v55 }
 0xb14   :  { %v8044_v17 = vpop.eup %8043 }
 0xb15   :  { %v2192_v18 = vmul.f32 %v8044_v17, %v8040_v8  ;;  %7222 = vmatmul.mubr.msk.f32.vlgmr.msra.gmra.mrb[18].mxu0 %vm568_vm3, %v2191_v16 }
 0xb16   :  { %7773 = vmatpush3.bf16.msra.mxu0 %v8417_v37  ;;  %7237 = vmatprep.mubr.msk.f32.mxu0 %vm8245_vm0, %v8246_v1 }
 0xb17   :  { %7227 = vmatmul.mubr.msk.f32.vlgmr.msra.gmra.mrb[28].mxu1 %vm568_vm3, %v2192_v18  ;;  %7774 = vmatprep.subr.bf16.mxu0 %v8244_v0 }
 0xb18   :  { %7785 = vmatpush3.bf16.msra.mxu1 %v8413_v28  ;;  %7259 = vmatprep.mubr.msk.f32.mxu1 %vm8245_vm0, %v8246_v1 }
 0xb19   :  { %7786 = vmatprep.subr.bf16.mxu1 %v8244_v0 }
 0xb1a   :  { %7776 = vmatpush3.bf16.msra.mxu0 %v8427_v45 }
 0xb1b   :  { %7777 = vmatprep.subr.bf16.mxu0 %v8244_v0 }
 0xb1c   :  { %7788 = vmatpush3.bf16.msra.mxu1 %v8419_v38 }
 0xb1d   :  { %7238 = vmatmul.mubr.msk.f32.vlgmr.msra.gmra.mrb[20].mxu0 %vm119_vm1, %v8595_v35  ;;  %7789 = vmatprep.subr.bf16.mxu1 %v8244_v0 }
 0xb1e   :  { %7779 = vmatpush3.bf16.msra.mxu0 %v8441_v52  ;;  %7248 = vmatprep.mubr.msk.f32.mxu0 %vm8245_vm0, %v8246_v1 }
 0xb1f   :  { %7260 = vmatmul.mubr.msk.f32.vlgmr.msra.gmra.mrb[30].mxu1 %vm119_vm1, %v8595_v35  ;;  %7780 = vmatprep.subr.bf16.mxu0 %v8244_v0 }
 0xb20   :  { %7791 = vmatpush3.bf16.msra.mxu1 %v8429_v46  ;;  %7270 = vmatprep.mubr.msk.f32.mxu1 %vm8245_vm0, %v8246_v1 }
 0xb21   :  { %7792 = vmatprep.subr.bf16.mxu1 %v8244_v0 }
 0xb22   :  { %7782 = vmatpush3.bf16.msra.mxu0 %v8470_v57 }
 0xb23   :  { %7795 = vmatprep.subr.bf16.mxu0 %v8244_v0 }
 0xb24   :  { %7794 = vmatpush3.bf16.msra.mxu1 %v8439_v51 }
 0xb25   :  { %7801 = vmatprep.subr.bf16.mxu1 %v8244_v0 }
 0xb27   :  { %7271 = vmatmul.mubr.msk.f32.vlgmr.msra.gmra.mrb[32].mxu1 %vm119_vm1, %v8595_v35 }
 0xb28   :  { %7803 = vmatpush3.bf16.msra.mxu1 %v8328_v13  ;;  %7292 = vmatprep.mubr.msk.f32.mxu1 %vm8245_vm0, %v8246_v1 }
 0xb29   :  { %7804 = vmatprep.subr.bf16.mxu1 %v8244_v0 }
 0xb2c   :  { %7806 = vmatpush3.bf16.msra.mxu1 %v8331_v15 }
 0xb2d   :  { %7300 = vmatprep.subr.mxu1 %v8246_v1 }
 0xb2f   :  { %7293 = vmatmul.mubr.msk.f32.vlgmr.msra.gmra.mrb[34].mxu1 %vm119_vm1, %v8595_v35 }
 0xb30   :  { %7302 = vmatprep.mubr.msk.f32.mxu1 %vm8245_vm0, %v8246_v1 }
 0xb35   :  { %7301 = vmatpush3.xpose.msk.msra.mxu1 %vm119_vm1, %v8389_v58 }
 0xb36   :  { %7310 = vmatprep.subr.mxu1 %v8246_v1 }
 0xbe8   :  { %v2262_v19 = vpop.f32.mrb[18].mxu0 }
 0xbe9   :  { %v7223_v20 = vpop.f32.mrb[19].mxu0 }
 0xbea   :  { %v2335_v23 = vpop.f32.mrb[28].mxu1 }
 0xbeb   :  { %v2413_v24 = vrot.slane %v2335_v23, 7  ;;  %v7228_v25 = vpop.f32.mrb[29].mxu1 }
 0xbed   :  { %v2414_v26 = vsel %vm790_vm4, %v2413_v24, %v2262_v19 }
 0xbee   :  { %7249 = vmatmul.mubr.msk.f32.vlgmr.msra.gmra.mrb[20].mxu0 %vm119_vm1, %v2414_v26 }
 0xbef   :  { %7797 = vmatpush3.bf16.msra.mxu0 %v8474_v4  ;;  %7281 = vmatprep.mubr.msk.f32.mxu0 %vm8245_vm0, %v8246_v1 }
 0xbf0   :  { %7798 = vmatprep.subr.bf16.mxu0 %v8244_v0 }
 0xbf2   :  { %v2580_v27 = vpop.f32.mrb[30].mxu1 }
 0xbf3   :  { %v2581_v30 = vadd.f32 %v8361_v22, %v2580_v27  ;;  %v7261_v31 = vpop.f32.mrb[31].mxu1  ;;  %7800 = vmatpush3.bf16.msra.mxu0 %v8479_v10 }
 0xbf4   :  { %7295 = vmatprep.subr.mxu0 %v8246_v1 }
 0xbf5   :  { %v6636_v32 = vmul.f32 -1.442695, %v2581_v30 }
 0xbf6   :  { %7282 = vmatmul.mubr.msk.f32.vlgmr.msra.gmra.mrb[22].mxu0 %vm119_vm1, %v8595_v35 }
 0xbf7   :  { %8045 = vpow2.f32 %v6636_v32  ;;  %7297 = vmatprep.mubr.msk.f32.mxu0 %vm8245_vm0, %v8246_v1 }
 0xbfa   :  { %v2656_v33 = vpop.f32.mrb[32].mxu1 }
 0xbfb   :  { %v7272_v34 = vpop.f32.mrb[33].mxu1  ;;  %v2657_v47 = vadd.f32 %v8367_v29, %v2656_v33 }
 0xbfc   :  { %7296 = vmatpush3.xpose.msk.msra.mxu0 %vm119_vm1, %v8351_v21 }
 0xbfd   :  { %7305 = vmatprep.subr.mxu0 %v8246_v1  ;;  %v6638_v48 = vmul.f32 -1.442695, %v2657_v47 }
 0xc01   :  { %v8046_v22 = vpop.eup %8045 }
 0xc02   :  { %v2587_v39 = vadd.f32 1.0, %v8046_v22  ;;  %v2802_v40 = vpop.f32.mrb[34].mxu1 }
 0xc03   :  { %v7294_v42 = vpop.f32.mrb[35].mxu1  ;;  %v2803_v43 = vadd.f32 %v8373_v36, %v2802_v40 }
 0xc04   :  { %8047 = vrcp.f32 %v2587_v39 }
 0xc05   :  { %8049 = vpow2.f32 %v6638_v48 }
 0xc0e   :  { %v8048_v61 = vpop.eup %8047 }
 0xc0f   :  { %v2806_v44 = vmul.f32 %v8048_v61, %v2803_v43  ;;  %v8050_v56 = vpop.eup %8049 }
 0xc10   :  { %v2663_v62 = vadd.f32 1.0, %v8050_v56 }
 0xc12   :  { %8051 = vrcp.f32 %v2663_v62 }
 0xc1c   :  { %v8052_v55 = vpop.eup %8051 }
 0xc1d   :  { %v2809_v7 = vsub.f32 1.0, %v8052_v55  ;;  %v2811_v9 = vmul.f32 %v8052_v55, %v8595_v35 }
 0xcc1   :  { %v2483_v49 = vpop.f32.mrb[20].mxu0 }
 0xcc2   :  { %v2494_v50 = vrot.slane %v2483_v49, %v8382_v54  ;;  %v7250_v53 = vpop.f32.mrb[21].mxu0 }
 0xcc4   :  { %v2495_v59 = vcombine.high %v2494_v50, %v2494_v50  ;;  %v2502_v60 = vrot.slane %v2494_v50, %v8382_v54 }
 0xcc6   :  { %v2509_v3 = vrot.slane %v2495_v59, %v8382_v54  ;;  %2512 = vst.msk [vmem:[#allocation8 + $0x2] sm:$0x1] %vm889_vm5, %v2502_v60  ;;  %v8765_v60 = vld [vmem:[%s9141_s4] ss:$0 sm:$0xff] }
 0xcc8   :  { %2513 = vst.msk [vmem:[#allocation8 + $0xa] sm:$0x1] %vm889_vm5, %v2509_v3 }
 0xcc9   :  { %v2732_v36 = vpop.f32.mrb[22].mxu0 }
 0xcca   :  { %v2733_v29 = vadd.f32 %v8379_v41, %v2732_v36  ;;  %v7283_v5 = vpop.f32.mrb[23].mxu0 }
 0xccc   :  { %v2807_v6 = vadd.f32 %v2806_v44, %v2733_v29  ;;  %v8751_v44 = vld [vmem:[#allocation2 + $0x8] sm:$0xff] }
 0xcce   :  { %8053 = vtanh.f32 %v2807_v6  ;;  %v8774_v6 = vld [vmem:[#allocation2] sm:$0xff] }
 0xcd8   :  { %v8054_v8 = vpop.eup %8053 }
 0xcd9   :  { %v2810_v11 = vmul.f32 %v8054_v8, %v2809_v7 }
 0xcdb   :  { %v8687_v12 = vadd.f32 %v2811_v9, %v2810_v11  ;;  %v8782_v11 = vld [vmem:[%s9141_s4 + $0x3] ss:$0 sm:$0xff] }
 0xcdd   :  { %v2820_v14 = vrot.slane %v8687_v12, %v8382_v54 }
 0xcdf   :  { %v2828_v16 = vrot.slane %v2820_v14, %v8382_v54  ;;  %v2821_v17 = vcombine.high %v2820_v14, %v2820_v14 }
 0xce1   :  { %7298 = vmatmul.mubr.msk.f32.vlgmr.msra.gmra.mrb[24].mxu0 %vm119_vm1, %v2828_v16  ;;  %v2835_v41 = vrot.slane %v2821_v17, %v8382_v54 }
 0xce2   :  { %7306 = vmatpush3.msra.mxu0 %v8351_v21  ;;  %7307 = vmatprep.mubr.msk.f32.mxu0 %vm8245_vm0, %v8246_v1 }
 0xce3   :  { %7303 = vmatmul.mubr.msk.f32.vlgmr.msra.gmra.mrb[36].mxu1 %vm119_vm1, %v2835_v41  ;;  %7807 = vmatprep.subr.bf16.mxu0 %v8244_v0  ;;  %v8788_v41 = vld [vmem:[%s9141_s4 + $0x1] ss:$0 sm:$0xff] }
 0xce4   :  { %7311 = vmatpush3.msra.mxu1 %v8389_v58  ;;  %7312 = vmatprep.mubr.msk.f32.mxu1 %vm8245_vm0, %v8246_v1 }
 0xce5   :  { %7819 = vmatprep.subr.bf16.mxu1 %v8244_v0 }
 0xdb4   :  { %v2904_v35 = vpop.f32.mrb[24].mxu0 }
 0xdb5   :  { %v2905_v18 = vadd.f32 %v2904_v35, %v8405_v2  ;;  %v7299_v19 = vpop.f32.mrb[25].mxu0 }
 0xdb6   :  { %v2976_v20 = vpop.f32.mrb[36].mxu1 }
 0xdb7   :  { %v2977_v21 = vadd.f32 %v2976_v20, %v8403_v63  ;;  %v7304_v23 = vpop.f32.mrb[37].mxu1  ;;  %v2980_v24 = vsel %vm543_vm2, %v2905_v18, -inf }
 0xdb8   :  { %2981 = vmax.xlane.f32.xlu1 %v2980_v24 }
 0xdb9   :  { %v2983_v25 = vsel %vm543_vm2, %v2977_v21, -inf }
 0xdba   :  { %2984 = vmax.xlane.f32.xlu0 %v2983_v25 }
 0xe45   :  { %v2982_v58 = vpop.xlane.xlu1 %2981 }
 0xe46   :  { %v2986_v26 = vsub.f32 %v2905_v18, %v2982_v58 }
 0xe47   :  { %v2985_v27 = vpop.xlane.xlu0 %2984 }
 0xe48   :  { %v2988_v30 = vmul.f32 1.442695, %v2986_v26  ;;  %v2987_v31 = vsub.f32 %v2977_v21, %v2985_v27 }
 0xe4a   :  { %8055 = vpow2.f32 %v2988_v30  ;;  %v2990_v32 = vmul.f32 1.442695, %v2987_v31  ;;  %v8799_v30 = vld [vmem:[%s9141_s4 + $0x2] ss:$0 sm:$0xff]  ;;  %s8248_s4 = smov [#allocation8]  }
 0xe4b   :  { %s6574_s23 = sshll.u32 %s8248_s4, 4  ;;  %s6575_s23 = int_to_ptr.vmem [resolvable:$true] %s6574_s23 }
 0xe4c   :  { %8057 = vpow2.f32 %v2990_v32  ;;  %s8209_s24 = scalar_lea.vmem %s6575_s23, 256  ;;  %p8214_p11 = scmp.lt.s32.totalorder %s6575_s23, %s6575_s23 }
 0xe4d   :  { %p8210_p10 = scmp.ne.s32.totalorder %s6575_s23, %s8209_s24  ;;  %p8215_p12 = scmp.lt.s32.totalorder %s8209_s24, %s8209_s24 }
 0xe4f   :  { %p8216_p13 = por %p8215_p12, %p8214_p11 }
 0xe51   :  { %p8217_p0 = pnand %p8216_p13, %p8210_p10 }
 0xe54   :  { %v8056_v2 = vpop.eup %8055 }
 0xe55   :  { %v2992_v33 = vsel %vm543_vm2, %v8056_v2, 0.0 }
 0xe56   :  { %v8058_v34 = vpop.eup %8057  ;;  %2993 = vadd.xlane.f32.xlu1 %v2992_v33 }
 0xe57   :  { %v2995_v63 = vsel %vm543_vm2, %v8058_v34, 0.0 }
 0xe58   :  { %2996 = vadd.xlane.f32.xlu0 %v2995_v63 }
 0xee3   :  { %v2994_v22 = vpop.xlane.xlu1 %2993 }
 0xee4   :  { %8059 = vrcp.f32 %v2994_v22 }
 0xee5   :  { %v2997_v39 = vpop.xlane.xlu0 %2996 }
 0xee6   :  { %8061 = vrcp.f32 %v2997_v39 }
 0xeee   :  { %v8060_v40 = vpop.eup %8059 }
 0xeef   :  { %v3002_v42 = vmul.f32 %v8060_v40, %v8056_v2 }
 0xef0   :  { %v8062_v43 = vpop.eup %8061 }
 0xef1   :  { %v3003_v61 = vmul.f32 %v8062_v43, %v8058_v34  ;;  %7308 = vmatmul.mubr.msk.f32.vlgmr.msra.gmra.mrb[26].mxu0 %vm568_vm3, %v3002_v42 }
 0xef2   :  { %7809 = vmatpush3.bf16.msra.mxu0 %v8417_v37  ;;  %7323 = vmatprep.mubr.msk.f32.mxu0 %vm8245_vm0, %v8246_v1 }
 0xef3   :  { %7313 = vmatmul.mubr.msk.f32.vlgmr.msra.gmra.mrb[38].mxu1 %vm568_vm3, %v3003_v61  ;;  %7810 = vmatprep.subr.bf16.mxu0 %v8244_v0 }
 0xef4   :  { %7821 = vmatpush3.bf16.msra.mxu1 %v8413_v28  ;;  %7345 = vmatprep.mubr.msk.f32.mxu1 %vm8245_vm0, %v8246_v1 }
 0xef5   :  { %7822 = vmatprep.subr.bf16.mxu1 %v8244_v0 }
 0xef6   :  { %7812 = vmatpush3.bf16.msra.mxu0 %v8427_v45 }
 0xef7   :  { %7813 = vmatprep.subr.bf16.mxu0 %v8244_v0 }
 0xef8   :  { %7824 = vmatpush3.bf16.msra.mxu1 %v8419_v38 }
 0xef9   :  { %7324 = vmatmul.mubr.msk.f32.vlgmr.msra.gmra.mrb[28].mxu0 %vm119_vm1, %v8687_v12  ;;  %7825 = vmatprep.subr.bf16.mxu1 %v8244_v0 }
 0xefa   :  { %7815 = vmatpush3.bf16.msra.mxu0 %v8441_v52  ;;  %7334 = vmatprep.mubr.msk.f32.mxu0 %vm8245_vm0, %v8246_v1 }
 0xefb   :  { %7346 = vmatmul.mubr.msk.f32.vlgmr.msra.gmra.mrb[40].mxu1 %vm119_vm1, %v8687_v12  ;;  %7816 = vmatprep.subr.bf16.mxu0 %v8244_v0 }
 0xefc   :  { %7827 = vmatpush3.bf16.msra.mxu1 %v8429_v46  ;;  %7356 = vmatprep.mubr.msk.f32.mxu1 %vm8245_vm0, %v8246_v1 }
 0xefd   :  { %7828 = vmatprep.subr.bf16.mxu1 %v8244_v0 }
 0xefe   :  { %7818 = vmatpush3.bf16.msra.mxu0 %v8470_v57 }
 0xeff   :  { %7831 = vmatprep.subr.bf16.mxu0 %v8244_v0 }
 0xf00   :  { %7830 = vmatpush3.bf16.msra.mxu1 %v8439_v51 }
 0xf01   :  { %7837 = vmatprep.subr.bf16.mxu1 %v8244_v0 }
 0xf03   :  { %7357 = vmatmul.mubr.msk.f32.vlgmr.msra.gmra.mrb[42].mxu1 %vm119_vm1, %v8687_v12 }
 0xf04   :  { %7839 = vmatpush3.bf16.msra.mxu1 %v8328_v13  ;;  %7378 = vmatprep.mubr.msk.f32.mxu1 %vm8245_vm0, %v8246_v1 }
 0xf05   :  { %7840 = vmatprep.subr.bf16.mxu1 %v8244_v0 }
 0xf08   :  { %7842 = vmatpush3.bf16.msra.mxu1 %v8331_v15 }
 0xf09   :  { %7386 = vmatprep.subr.mxu1 %v8246_v1 }
 0xf0b   :  { %7379 = vmatmul.mubr.msk.f32.vlgmr.msra.gmra.mrb[44].mxu1 %vm119_vm1, %v8687_v12 }
 0xf0c   :  { %7388 = vmatprep.mubr.msk.f32.mxu1 %vm8245_vm0, %v8246_v1 }
 0xf11   :  { %7387 = vmatpush3.xpose.msk.msra.mxu1 %vm119_vm1, %v8751_v44 }
 0xf12   :  { %7396 = vmatprep.subr.mxu1 %v8246_v1 }
 0xfc4   :  { %v3073_v47 = vpop.f32.mrb[26].mxu0 }
 0xfc5   :  { %v7309_v48 = vpop.f32.mrb[27].mxu0 }
 0xfc6   :  { %v3146_v49 = vpop.f32.mrb[38].mxu1  ;;  %v8819_v48 = vld [vmem:[#allocation5] sm:$0x1] }
 0xfc7   :  { %v3224_v50 = vrot.slane %v3146_v49, 7  ;;  %v7314_v53 = vpop.f32.mrb[39].mxu1 }
 0xfc9   :  { %v3225_v56 = vsel %vm790_vm4, %v3224_v50, %v3073_v47 }
 0xfca   :  { %7335 = vmatmul.mubr.msk.f32.vlgmr.msra.gmra.mrb[28].mxu0 %vm119_vm1, %v3225_v56  ;;  %v8822_v56 = vld [vmem:[#allocation5 + $0x1] sm:$0x1] }
 0xfcb   :  { %7833 = vmatpush3.bf16.msra.mxu0 %v8474_v4  ;;  %7367 = vmatprep.mubr.msk.f32.mxu0 %vm8245_vm0, %v8246_v1 }
 0xfcc   :  { %7834 = vmatprep.subr.bf16.mxu0 %v8244_v0 }
 0xfce   :  { %v3391_v59 = vpop.f32.mrb[40].mxu1 }
 0xfcf   :  { %v3392_v62 = vadd.f32 %v8765_v60, %v3391_v59  ;;  %v7347_v3 = vpop.f32.mrb[41].mxu1  ;;  %7836 = vmatpush3.bf16.msra.mxu0 %v8479_v10 }
 0xfd0   :  { %7381 = vmatprep.subr.mxu0 %v8246_v1 }
 0xfd1   :  { %v6650_v36 = vmul.f32 -1.442695, %v3392_v62 }
 0xfd2   :  { %7368 = vmatmul.mubr.msk.f32.vlgmr.msra.gmra.mrb[30].mxu0 %vm119_vm1, %v8687_v12 }
 0xfd3   :  { %8063 = vpow2.f32 %v6650_v36  ;;  %7383 = vmatprep.mubr.msk.f32.mxu0 %vm8245_vm0, %v8246_v1 }
 0xfd6   :  { %v3467_v29 = vpop.f32.mrb[42].mxu1 }
 0xfd7   :  { %v7358_v5 = vpop.f32.mrb[43].mxu1  ;;  %v3468_v35 = vadd.f32 %v8788_v41, %v3467_v29 }
 0xfd8   :  { %7382 = vmatpush3.xpose.msk.msra.mxu0 %vm119_vm1, %v8774_v6 }
 0xfd9   :  { %7391 = vmatprep.subr.mxu0 %v8246_v1  ;;  %v6652_v18 = vmul.f32 -1.442695, %v3468_v35 }
 0xfdd   :  { %v8064_v55 = vpop.eup %8063 }
 0xfde   :  { %v3398_v7 = vadd.f32 1.0, %v8064_v55  ;;  %v3613_v8 = vpop.f32.mrb[44].mxu1 }
 0xfdf   :  { %v7380_v9 = vpop.f32.mrb[45].mxu1  ;;  %v3614_v14 = vadd.f32 %v8782_v11, %v3613_v8 }
 0xfe0   :  { %8065 = vrcp.f32 %v3398_v7 }
 0xfe1   :  { %8067 = vpow2.f32 %v6652_v18 }
 0xfea   :  { %v8066_v16 = vpop.eup %8065 }
 0xfeb   :  { %v3617_v17 = vmul.f32 %v8066_v16, %v3614_v14  ;;  %v8068_v23 = vpop.eup %8067 }
 0xfec   :  { %v3474_v58 = vadd.f32 1.0, %v8068_v23 }
 0xfee   :  { %8069 = vrcp.f32 %v3474_v58 }
 0xff8   :  { %v8070_v33 = vpop.eup %8069 }
 0xff9   :  { %v3620_v34 = vsub.f32 1.0, %v8070_v33  ;;  %v3622_v22 = vmul.f32 %v8070_v33, %v8687_v12 }
0x109d   :  { %v3294_v19 = vpop.f32.mrb[28].mxu0 }
0x109e   :  { %v3305_v20 = vrot.slane %v3294_v19, %v8382_v54  ;;  %v7336_v21 = vpop.f32.mrb[29].mxu0 }
0x10a0   :  { %v3306_v24 = vcombine.high %v3305_v20, %v3305_v20  ;;  %v3313_v25 = vrot.slane %v3305_v20, %v8382_v54 }
0x10a2   :  { %v3320_v26 = vrot.slane %v3306_v24, %v8382_v54  ;;  %3323 = vst.msk [vmem:[#allocation8 + $0x3] sm:$0x1] %vm889_vm5, %v3313_v25 }
0x10a4   :  { %3324 = vst.msk [vmem:[#allocation8 + $0xb] sm:$0x1] %vm889_vm5, %v3320_v26 }
0x10a5   :  { %v3543_v27 = vpop.f32.mrb[30].mxu0 }
0x10a6   :  { %v3544_v31 = vadd.f32 %v8799_v30, %v3543_v27  ;;  %v7369_v32 = vpop.f32.mrb[31].mxu0 }
0x10a8   :  { %v3618_v2 = vadd.f32 %v3617_v17, %v3544_v31 }
0x10aa   :  { %8071 = vtanh.f32 %v3618_v2 }
0x10b4   :  { %v8072_v63 = vpop.eup %8071 }
0x10b5   :  { %v3621_v39 = vmul.f32 %v8072_v63, %v3620_v34 }
0x10b7   :  { %v8803_v40 = vadd.f32 %v3622_v22, %v3621_v39 }
0x10b9   :  { %v3631_v42 = vrot.slane %v8803_v40, %v8382_v54 }
0x10bb   :  { %v3639_v43 = vrot.slane %v3631_v42, %v8382_v54  ;;  %v3632_v61 = vcombine.high %v3631_v42, %v3631_v42 }
0x10bd   :  { %7384 = vmatmul.mubr.msk.f32.vlgmr.msra.gmra.mrb[32].mxu0 %vm119_vm1, %v3639_v43  ;;  %v3646_v47 = vrot.slane %v3632_v61, %v8382_v54 }
0x10be   :  { %7392 = vmatpush3.msra.mxu0 %v8774_v6  ;;  %7393 = vmatprep.mubr.msk.f32.mxu0 %vm8245_vm0, %v8246_v1 }
0x10bf   :  { %7389 = vmatmul.mubr.msk.f32.vlgmr.msra.gmra.mrb[46].mxu1 %vm119_vm1, %v3646_v47  ;;  %7843 = vmatprep.subr.bf16.mxu0 %v8244_v0 }
0x10c0   :  { %7397 = vmatpush3.msra.mxu1 %v8751_v44  ;;  %7398 = vmatprep.mubr.msk.f32.mxu1 %vm8245_vm0, %v8246_v1 }
0x10c1   :  { %7855 = vmatprep.subr.bf16.mxu1 %v8244_v0 }
0x1190   :  { %v3715_v12 = vpop.f32.mrb[32].mxu0 }
0x1191   :  { %v3716_v49 = vadd.f32 %v8819_v48, %v3715_v12  ;;  %v7385_v50 = vpop.f32.mrb[33].mxu0 }
0x1192   :  { %v3787_v53 = vpop.f32.mrb[46].mxu1 }
0x1193   :  { %v3788_v59 = vadd.f32 %v8822_v56, %v3787_v53  ;;  %v7390_v62 = vpop.f32.mrb[47].mxu1  ;;  %v3791_v3 = vsel %vm543_vm2, %v3716_v49, -inf }
0x1194   :  { %3792 = vmax.xlane.f32.xlu1 %v3791_v3 }
0x1195   :  { %v3794_v36 = vsel %vm543_vm2, %v3788_v59, -inf }
0x1196   :  { %3795 = vmax.xlane.f32.xlu0 %v3794_v36 }
0x1221   :  { %v3793_v29 = vpop.xlane.xlu1 %3792 }
0x1222   :  { %v3797_v5 = vsub.f32 %v3716_v49, %v3793_v29 }
0x1223   :  { %v3796_v55 = vpop.xlane.xlu0 %3795 }
0x1224   :  { %v3799_v7 = vmul.f32 1.442695, %v3797_v5  ;;  %v3798_v8 = vsub.f32 %v3788_v59, %v3796_v55 }
0x1226   :  { %8073 = vpow2.f32 %v3799_v7  ;;  %v3801_v9 = vmul.f32 1.442695, %v3798_v8 }
0x1228   :  { %8075 = vpow2.f32 %v3801_v9 }
0x1230   :  { %v8074_v14 = vpop.eup %8073 }
0x1231   :  { %v3803_v16 = vsel %vm543_vm2, %v8074_v14, 0.0 }
0x1232   :  { %v8076_v17 = vpop.eup %8075  ;;  %3804 = vadd.xlane.f32.xlu1 %v3803_v16 }
0x1233   :  { %v3806_v35 = vsel %vm543_vm2, %v8076_v17, 0.0 }
0x1234   :  { %3807 = vadd.xlane.f32.xlu0 %v3806_v35 }
0x12bf   :  { %v3805_v18 = vpop.xlane.xlu1 %3804 }
0x12c0   :  { %8077 = vrcp.f32 %v3805_v18 }
0x12c1   :  { %v3808_v19 = vpop.xlane.xlu0 %3807 }
0x12c2   :  { %8079 = vrcp.f32 %v3808_v19 }
0x12ca   :  { %v8078_v20 = vpop.eup %8077 }
0x12cb   :  { %v3813_v21 = vmul.f32 %v8078_v20, %v8074_v14 }
0x12cc   :  { %v8080_v23 = vpop.eup %8079 }
0x12cd   :  { %v3814_v24 = vmul.f32 %v8080_v23, %v8076_v17  ;;  %7394 = vmatmul.mubr.msk.f32.vlgmr.msra.gmra.mrb[34].mxu0 %vm568_vm3, %v3813_v21 }
0x12ce   :  { %7845 = vmatpush3.bf16.msra.mxu0 %v8417_v37  ;;  %7409 = vmatprep.mubr.msk.f32.mxu0 %vm8245_vm0, %v8246_v1 }
0x12cf   :  { %7399 = vmatmul.mubr.msk.f32.vlgmr.msra.gmra.mrb[48].mxu1 %vm568_vm3, %v3814_v24  ;;  %7846 = vmatprep.subr.bf16.mxu0 %v8244_v0 }
0x12d0   :  { %7857 = vmatpush3.bf16.msra.mxu1 %v8413_v28  ;;  %7431 = vmatprep.mubr.msk.f32.mxu1 %vm8245_vm0, %v8246_v1 }
0x12d1   :  { %7858 = vmatprep.subr.bf16.mxu1 %v8244_v0 }
0x12d2   :  { %7848 = vmatpush3.bf16.msra.mxu0 %v8427_v45 }
0x12d3   :  { %7849 = vmatprep.subr.bf16.mxu0 %v8244_v0 }
0x12d4   :  { %7860 = vmatpush3.bf16.msra.mxu1 %v8419_v38 }
0x12d5   :  { %7410 = vmatmul.mubr.msk.f32.vlgmr.msra.gmra.mrb[36].mxu0 %vm119_vm1, %v8803_v40  ;;  %7861 = vmatprep.subr.bf16.mxu1 %v8244_v0 }
0x12d6   :  { %7851 = vmatpush3.bf16.msra.mxu0 %v8441_v52  ;;  %7420 = vmatprep.mubr.msk.f32.mxu0 %vm8245_vm0, %v8246_v1 }
0x12d7   :  { %7432 = vmatmul.mubr.msk.f32.vlgmr.msra.gmra.mrb[50].mxu1 %vm119_vm1, %v8803_v40  ;;  %7852 = vmatprep.subr.bf16.mxu0 %v8244_v0 }
0x12d8   :  { %7863 = vmatpush3.bf16.msra.mxu1 %v8429_v46  ;;  %7442 = vmatprep.mubr.msk.f32.mxu1 %vm8245_vm0, %v8246_v1 }
0x12d9   :  { %7864 = vmatprep.subr.bf16.mxu1 %v8244_v0 }
0x12da   :  { %7854 = vmatpush3.bf16.msra.mxu0 %v8470_v57 }
0x12db   :  { %7867 = vmatprep.subr.bf16.mxu0 %v8244_v0 }
0x12dc   :  { %7866 = vmatpush3.bf16.msra.mxu1 %v8439_v51 }
0x12dd   :  { %7873 = vmatprep.subr.bf16.mxu1 %v8244_v0 }
0x12df   :  { %7443 = vmatmul.mubr.msk.f32.vlgmr.msra.gmra.mrb[52].mxu1 %vm119_vm1, %v8803_v40 }
0x12e0   :  { %7875 = vmatpush3.bf16.msra.mxu1 %v8328_v13  ;;  %7464 = vmatprep.mubr.msk.f32.mxu1 %vm8245_vm0, %v8246_v1 }
0x12e1   :  { %7876 = vmatprep.subr.bf16.mxu1 %v8244_v0 }
0x12e4   :  { %7878 = vmatpush3.bf16.msra.mxu1 %v8331_v15 }
0x12e5   :  { %7472 = vmatprep.subr.mxu1 %v8246_v1 }
0x12e7   :  { %7465 = vmatmul.mubr.msk.f32.vlgmr.msra.gmra.mrb[54].mxu1 %vm119_vm1, %v8803_v40 }
0x12e8   :  { %7474 = vmatprep.mubr.msk.f32.mxu1 %vm8245_vm0, %v8246_v1 }
0x12ed   :  { %7473 = vmatpush3.xpose.msk.msra.mxu1 %vm119_vm1, %v8751_v44 }
0x12ee   :  { %7482 = vmatprep.subr.mxu1 %v8246_v1 }
0x13a0   :  { %v3884_v25 = vpop.f32.mrb[34].mxu0 }
0x13a1   :  { %v7395_v58 = vpop.f32.mrb[35].mxu0 }
0x13a2   :  { %v3957_v26 = vpop.f32.mrb[48].mxu1 }
0x13a3   :  { %v4035_v27 = vrot.slane %v3957_v26, 7  ;;  %v7400_v31 = vpop.f32.mrb[49].mxu1 }
0x13a5   :  { %v4036_v32 = vsel %vm790_vm4, %v4035_v27, %v3884_v25 }
0x13a6   :  { %7421 = vmatmul.mubr.msk.f32.vlgmr.msra.gmra.mrb[36].mxu0 %vm119_vm1, %v4036_v32 }
0x13a7   :  { %7869 = vmatpush3.bf16.msra.mxu0 %v8474_v4  ;;  %7453 = vmatprep.mubr.msk.f32.mxu0 %vm8245_vm0, %v8246_v1 }
0x13a8   :  { %7870 = vmatprep.subr.bf16.mxu0 %v8244_v0 }
0x13aa   :  { %v4202_v2 = vpop.f32.mrb[50].mxu1 }
0x13ab   :  { %v4203_v33 = vadd.f32 %v8765_v60, %v4202_v2  ;;  %v7433_v34 = vpop.f32.mrb[51].mxu1  ;;  %7872 = vmatpush3.bf16.msra.mxu0 %v8479_v10 }
0x13ac   :  { %7467 = vmatprep.subr.mxu0 %v8246_v1 }
0x13ad   :  { %v6664_v63 = vmul.f32 -1.442695, %v4203_v33 }
0x13ae   :  { %7454 = vmatmul.mubr.msk.f32.vlgmr.msra.gmra.mrb[38].mxu0 %vm119_vm1, %v8803_v40 }
0x13af   :  { %8081 = vpow2.f32 %v6664_v63  ;;  %7469 = vmatprep.mubr.msk.f32.mxu0 %vm8245_vm0, %v8246_v1 }
0x13b2   :  { %v4278_v22 = vpop.f32.mrb[52].mxu1 }
0x13b3   :  { %v7444_v39 = vpop.f32.mrb[53].mxu1  ;;  %v4279_v53 = vadd.f32 %v8788_v41, %v4278_v22 }
0x13b4   :  { %7468 = vmatpush3.xpose.msk.msra.mxu0 %vm119_vm1, %v8774_v6 }
0x13b5   :  { %7477 = vmatprep.subr.mxu0 %v8246_v1  ;;  %v6666_v59 = vmul.f32 -1.442695, %v4279_v53 }
0x13b9   :  { %v8082_v42 = vpop.eup %8081 }
0x13ba   :  { %v4209_v43 = vadd.f32 1.0, %v8082_v42  ;;  %v4424_v61 = vpop.f32.mrb[54].mxu1 }
0x13bb   :  { %v7466_v47 = vpop.f32.mrb[55].mxu1  ;;  %v4425_v12 = vadd.f32 %v8782_v11, %v4424_v61 }
0x13bc   :  { %8083 = vrcp.f32 %v4209_v43 }
0x13bd   :  { %8085 = vpow2.f32 %v6666_v59 }
0x13c6   :  { %v8084_v49 = vpop.eup %8083 }
0x13c7   :  { %v4428_v50 = vmul.f32 %v8084_v49, %v4425_v12  ;;  %v8086_v29 = vpop.eup %8085 }
0x13c8   :  { %v4285_v7 = vadd.f32 1.0, %v8086_v29 }
0x13ca   :  { %8087 = vrcp.f32 %v4285_v7 }
0x13d4   :  { %v8088_v35 = vpop.eup %8087 }
0x13d5   :  { %v4431_v18 = vsub.f32 1.0, %v8088_v35  ;;  %v4433_v20 = vmul.f32 %v8088_v35, %v8803_v40 }
0x1479   :  { %v4105_v62 = vpop.f32.mrb[36].mxu0 }
0x147a   :  { %v4116_v3 = vrot.slane %v4105_v62, %v8382_v54  ;;  %v7422_v36 = vpop.f32.mrb[37].mxu0 }
0x147c   :  { %v4117_v5 = vcombine.high %v4116_v3, %v4116_v3  ;;  %v4124_v55 = vrot.slane %v4116_v3, %v8382_v54 }
0x147e   :  { %v4131_v8 = vrot.slane %v4117_v5, %v8382_v54  ;;  %4134 = vst.msk [vmem:[#allocation8 + $0x4] sm:$0x1] %vm889_vm5, %v4124_v55 }
0x1480   :  { %4135 = vst.msk [vmem:[#allocation8 + $0xc] sm:$0x1] %vm889_vm5, %v4131_v8 }
0x1481   :  { %v4354_v9 = vpop.f32.mrb[38].mxu0 }
0x1482   :  { %v4355_v14 = vadd.f32 %v8799_v30, %v4354_v9  ;;  %v7455_v16 = vpop.f32.mrb[39].mxu0 }
0x1484   :  { %v4429_v17 = vadd.f32 %v4428_v50, %v4355_v14 }
0x1486   :  { %8089 = vtanh.f32 %v4429_v17 }
0x1490   :  { %v8090_v19 = vpop.eup %8089 }
0x1491   :  { %v4432_v21 = vmul.f32 %v8090_v19, %v4431_v18 }
0x1493   :  { %v8899_v23 = vadd.f32 %v4433_v20, %v4432_v21 }
0x1495   :  { %v4442_v24 = vrot.slane %v8899_v23, %v8382_v54 }
0x1497   :  { %v4450_v25 = vrot.slane %v4442_v24, %v8382_v54  ;;  %v4443_v58 = vcombine.high %v4442_v24, %v4442_v24 }
0x1499   :  { %7470 = vmatmul.mubr.msk.f32.vlgmr.msra.gmra.mrb[40].mxu0 %vm119_vm1, %v4450_v25  ;;  %v4457_v26 = vrot.slane %v4443_v58, %v8382_v54 }
0x149a   :  { %7478 = vmatpush3.msra.mxu0 %v8774_v6  ;;  %7479 = vmatprep.mubr.msk.f32.mxu0 %vm8245_vm0, %v8246_v1 }
0x149b   :  { %7475 = vmatmul.mubr.msk.f32.vlgmr.msra.gmra.mrb[56].mxu1 %vm119_vm1, %v4457_v26  ;;  %7879 = vmatprep.subr.bf16.mxu0 %v8244_v0 }
0x149c   :  { %7483 = vmatpush3.msra.mxu1 %v8751_v44  ;;  %7484 = vmatprep.mubr.msk.f32.mxu1 %vm8245_vm0, %v8246_v1 }
0x149d   :  { %7891 = vmatprep.subr.bf16.mxu1 %v8244_v0 }
0x156c   :  { %v4526_v40 = vpop.f32.mrb[40].mxu0 }
0x156d   :  { %v4527_v27 = vadd.f32 %v8819_v48, %v4526_v40  ;;  %v7471_v31 = vpop.f32.mrb[41].mxu0 }
0x156e   :  { %v4598_v32 = vpop.f32.mrb[56].mxu1 }
0x156f   :  { %v4599_v2 = vadd.f32 %v8822_v56, %v4598_v32  ;;  %v7476_v33 = vpop.f32.mrb[57].mxu1  ;;  %v4602_v34 = vsel %vm543_vm2, %v4527_v27, -inf }
0x1570   :  { %4603 = vmax.xlane.f32.xlu1 %v4602_v34 }
0x1571   :  { %v4605_v63 = vsel %vm543_vm2, %v4599_v2, -inf }
0x1572   :  { %4606 = vmax.xlane.f32.xlu0 %v4605_v63 }
0x15fd   :  { %v4604_v22 = vpop.xlane.xlu1 %4603 }
0x15fe   :  { %v4608_v39 = vsub.f32 %v4527_v27, %v4604_v22 }
0x15ff   :  { %v4607_v42 = vpop.xlane.xlu0 %4606 }
0x1600   :  { %v4610_v43 = vmul.f32 1.442695, %v4608_v39  ;;  %v4609_v61 = vsub.f32 %v4599_v2, %v4607_v42 }
0x1602   :  { %8091 = vpow2.f32 %v4610_v43  ;;  %v4612_v47 = vmul.f32 1.442695, %v4609_v61 }
0x1604   :  { %8093 = vpow2.f32 %v4612_v47 }
0x160c   :  { %v8092_v12 = vpop.eup %8091 }
0x160d   :  { %v4614_v49 = vsel %vm543_vm2, %v8092_v12, 0.0 }
0x160e   :  { %v8094_v50 = vpop.eup %8093  ;;  %4615 = vadd.xlane.f32.xlu1 %v4614_v49 }
0x160f   :  { %v4617_v53 = vsel %vm543_vm2, %v8094_v50, 0.0 }
0x1610   :  { %4618 = vadd.xlane.f32.xlu0 %v4617_v53 }
0x169b   :  { %v4616_v59 = vpop.xlane.xlu1 %4615 }
0x169c   :  { %8095 = vrcp.f32 %v4616_v59 }
0x169d   :  { %v4619_v62 = vpop.xlane.xlu0 %4618 }
0x169e   :  { %8097 = vrcp.f32 %v4619_v62 }
0x16a6   :  { %v8096_v3 = vpop.eup %8095 }
0x16a7   :  { %v4624_v36 = vmul.f32 %v8096_v3, %v8092_v12 }
0x16a8   :  { %v8098_v29 = vpop.eup %8097 }
0x16a9   :  { %v4625_v5 = vmul.f32 %v8098_v29, %v8094_v50  ;;  %7480 = vmatmul.mubr.msk.f32.vlgmr.msra.gmra.mrb[42].mxu0 %vm568_vm3, %v4624_v36 }
0x16aa   :  { %7881 = vmatpush3.bf16.msra.mxu0 %v8417_v37  ;;  %7495 = vmatprep.mubr.msk.f32.mxu0 %vm8245_vm0, %v8246_v1 }
0x16ab   :  { %7485 = vmatmul.mubr.msk.f32.vlgmr.msra.gmra.mrb[58].mxu1 %vm568_vm3, %v4625_v5  ;;  %7882 = vmatprep.subr.bf16.mxu0 %v8244_v0 }
0x16ac   :  { %7893 = vmatpush3.bf16.msra.mxu1 %v8413_v28  ;;  %7517 = vmatprep.mubr.msk.f32.mxu1 %vm8245_vm0, %v8246_v1 }
0x16ad   :  { %7894 = vmatprep.subr.bf16.mxu1 %v8244_v0 }
0x16ae   :  { %7884 = vmatpush3.bf16.msra.mxu0 %v8427_v45 }
0x16af   :  { %7885 = vmatprep.subr.bf16.mxu0 %v8244_v0 }
0x16b0   :  { %7896 = vmatpush3.bf16.msra.mxu1 %v8419_v38 }
0x16b1   :  { %7496 = vmatmul.mubr.msk.f32.vlgmr.msra.gmra.mrb[44].mxu0 %vm119_vm1, %v8899_v23  ;;  %7897 = vmatprep.subr.bf16.mxu1 %v8244_v0 }
0x16b2   :  { %7887 = vmatpush3.bf16.msra.mxu0 %v8441_v52  ;;  %7506 = vmatprep.mubr.msk.f32.mxu0 %vm8245_vm0, %v8246_v1 }
0x16b3   :  { %7518 = vmatmul.mubr.msk.f32.vlgmr.msra.gmra.mrb[60].mxu1 %vm119_vm1, %v8899_v23  ;;  %7888 = vmatprep.subr.bf16.mxu0 %v8244_v0 }
0x16b4   :  { %7899 = vmatpush3.bf16.msra.mxu1 %v8429_v46  ;;  %7528 = vmatprep.mubr.msk.f32.mxu1 %vm8245_vm0, %v8246_v1 }
0x16b5   :  { %7900 = vmatprep.subr.bf16.mxu1 %v8244_v0 }
0x16b6   :  { %7890 = vmatpush3.bf16.msra.mxu0 %v8470_v57 }
0x16b7   :  { %7903 = vmatprep.subr.bf16.mxu0 %v8244_v0 }
0x16b8   :  { %7902 = vmatpush3.bf16.msra.mxu1 %v8439_v51 }
0x16b9   :  { %7909 = vmatprep.subr.bf16.mxu1 %v8244_v0 }
0x16bb   :  { %7529 = vmatmul.mubr.msk.f32.vlgmr.msra.gmra.mrb[62].mxu1 %vm119_vm1, %v8899_v23 }
0x16bc   :  { %7911 = vmatpush3.bf16.msra.mxu1 %v8328_v13  ;;  %7550 = vmatprep.mubr.msk.f32.mxu1 %vm8245_vm0, %v8246_v1 }
0x16bd   :  { %7912 = vmatprep.subr.bf16.mxu1 %v8244_v0 }
0x16c0   :  { %7914 = vmatpush3.bf16.msra.mxu1 %v8331_v15 }
0x16c1   :  { %7558 = vmatprep.subr.mxu1 %v8246_v1 }
0x16c3   :  { %7551 = vmatmul.mubr.msk.f32.vlgmr.msra.gmra.mrb[64].mxu1 %vm119_vm1, %v8899_v23 }
0x16c4   :  { %7560 = vmatprep.mubr.msk.f32.mxu1 %vm8245_vm0, %v8246_v1 }
0x16c9   :  { %7559 = vmatpush3.xpose.msk.msra.mxu1 %vm119_vm1, %v8751_v44 }
0x16ca   :  { %7568 = vmatprep.subr.mxu1 %v8246_v1 }
0x177c   :  { %v4695_v55 = vpop.f32.mrb[42].mxu0 }
0x177d   :  { %v7481_v7 = vpop.f32.mrb[43].mxu0 }
0x177e   :  { %v4768_v8 = vpop.f32.mrb[58].mxu1 }
0x177f   :  { %v4846_v9 = vrot.slane %v4768_v8, 7  ;;  %v7486_v14 = vpop.f32.mrb[59].mxu1 }
0x1781   :  { %v4847_v16 = vsel %vm790_vm4, %v4846_v9, %v4695_v55 }
0x1782   :  { %7507 = vmatmul.mubr.msk.f32.vlgmr.msra.gmra.mrb[44].mxu0 %vm119_vm1, %v4847_v16 }
0x1783   :  { %7905 = vmatpush3.bf16.msra.mxu0 %v8474_v4  ;;  %7539 = vmatprep.mubr.msk.f32.mxu0 %vm8245_vm0, %v8246_v1 }
0x1784   :  { %7906 = vmatprep.subr.bf16.mxu0 %v8244_v0 }
0x1786   :  { %v5013_v17 = vpop.f32.mrb[60].mxu1 }
0x1787   :  { %v5014_v35 = vadd.f32 %v8765_v60, %v5013_v17  ;;  %v7519_v18 = vpop.f32.mrb[61].mxu1  ;;  %7908 = vmatpush3.bf16.msra.mxu0 %v8479_v10 }
0x1788   :  { %7553 = vmatprep.subr.mxu0 %v8246_v1 }
0x1789   :  { %v6678_v19 = vmul.f32 -1.442695, %v5014_v35 }
0x178a   :  { %7540 = vmatmul.mubr.msk.f32.vlgmr.msra.gmra.mrb[46].mxu0 %vm119_vm1, %v8899_v23 }
0x178b   :  { %8099 = vpow2.f32 %v6678_v19  ;;  %7555 = vmatprep.mubr.msk.f32.mxu0 %vm8245_vm0, %v8246_v1 }
0x178e   :  { %v5089_v20 = vpop.f32.mrb[62].mxu1 }
0x178f   :  { %v7530_v21 = vpop.f32.mrb[63].mxu1  ;;  %v5090_v32 = vadd.f32 %v8788_v41, %v5089_v20 }
0x1790   :  { %7554 = vmatpush3.xpose.msk.msra.mxu0 %vm119_vm1, %v8774_v6 }
0x1791   :  { %7563 = vmatprep.subr.mxu0 %v8246_v1  ;;  %v6680_v2 = vmul.f32 -1.442695, %v5090_v32 }
0x1795   :  { %v8100_v24 = vpop.eup %8099 }
0x1796   :  { %v5020_v25 = vadd.f32 1.0, %v8100_v24  ;;  %v5235_v58 = vpop.f32.mrb[64].mxu1 }
0x1797   :  { %v7552_v26 = vpop.f32.mrb[65].mxu1  ;;  %v5236_v40 = vadd.f32 %v8782_v11, %v5235_v58 }
0x1798   :  { %8101 = vrcp.f32 %v5020_v25 }
0x1799   :  { %8103 = vpow2.f32 %v6680_v2 }
0x17a2   :  { %v8102_v27 = vpop.eup %8101 }
0x17a3   :  { %v5239_v31 = vmul.f32 %v8102_v27, %v5236_v40  ;;  %v8104_v22 = vpop.eup %8103 }
0x17a4   :  { %v5096_v43 = vadd.f32 1.0, %v8104_v22 }
0x17a6   :  { %8105 = vrcp.f32 %v5096_v43 }
0x17b0   :  { %v8106_v53 = vpop.eup %8105 }
0x17b1   :  { %v5242_v59 = vsub.f32 1.0, %v8106_v53  ;;  %v5244_v3 = vmul.f32 %v8106_v53, %v8899_v23 }
0x1855   :  { %v4916_v33 = vpop.f32.mrb[44].mxu0 }
0x1856   :  { %v4927_v34 = vrot.slane %v4916_v33, %v8382_v54  ;;  %v7508_v63 = vpop.f32.mrb[45].mxu0 }
0x1858   :  { %v4928_v39 = vcombine.high %v4927_v34, %v4927_v34  ;;  %v4935_v42 = vrot.slane %v4927_v34, %v8382_v54 }
0x185a   :  { %v4942_v61 = vrot.slane %v4928_v39, %v8382_v54  ;;  %4945 = vst.msk [vmem:[#allocation8 + $0x5] sm:$0x1] %vm889_vm5, %v4935_v42 }
0x185c   :  { %4946 = vst.msk [vmem:[#allocation8 + $0xd] sm:$0x1] %vm889_vm5, %v4942_v61 }
0x185d   :  { %v5165_v47 = vpop.f32.mrb[46].mxu0 }
0x185e   :  { %v5166_v12 = vadd.f32 %v8799_v30, %v5165_v47  ;;  %v7541_v49 = vpop.f32.mrb[47].mxu0 }
0x1860   :  { %v5240_v50 = vadd.f32 %v5239_v31, %v5166_v12 }
0x1862   :  { %8107 = vtanh.f32 %v5240_v50 }
0x186c   :  { %v8108_v62 = vpop.eup %8107 }
0x186d   :  { %v5243_v36 = vmul.f32 %v8108_v62, %v5242_v59 }
0x186f   :  { %v8991_v29 = vadd.f32 %v5244_v3, %v5243_v36 }
0x1871   :  { %v5253_v5 = vrot.slane %v8991_v29, %v8382_v54 }
0x1873   :  { %v5261_v55 = vrot.slane %v5253_v5, %v8382_v54  ;;  %v5254_v7 = vcombine.high %v5253_v5, %v5253_v5 }
0x1875   :  { %7556 = vmatmul.mubr.msk.f32.vlgmr.msra.gmra.mrb[48].mxu0 %vm119_vm1, %v5261_v55  ;;  %v5268_v8 = vrot.slane %v5254_v7, %v8382_v54 }
0x1876   :  { %7564 = vmatpush3.msra.mxu0 %v8774_v6  ;;  %7565 = vmatprep.mubr.msk.f32.mxu0 %vm8245_vm0, %v8246_v1 }
0x1877   :  { %7561 = vmatmul.mubr.msk.f32.vlgmr.msra.gmra.mrb[66].mxu1 %vm119_vm1, %v5268_v8  ;;  %7915 = vmatprep.subr.bf16.mxu0 %v8244_v0 }
0x1878   :  { %7569 = vmatpush3.msra.mxu1 %v8751_v44  ;;  %7570 = vmatprep.mubr.msk.f32.mxu1 %vm8245_vm0, %v8246_v1 }
0x1879   :  { %7927 = vmatprep.subr.bf16.mxu1 %v8244_v0 }
0x1948   :  { %v5337_v23 = vpop.f32.mrb[48].mxu0 }
0x1949   :  { %v5338_v9 = vadd.f32 %v8819_v48, %v5337_v23  ;;  %v7557_v14 = vpop.f32.mrb[49].mxu0 }
0x194a   :  { %v5409_v16 = vpop.f32.mrb[66].mxu1 }
0x194b   :  { %v5410_v17 = vadd.f32 %v8822_v56, %v5409_v16  ;;  %v7562_v35 = vpop.f32.mrb[67].mxu1  ;;  %v5413_v18 = vsel %vm543_vm2, %v5338_v9, -inf }
0x194c   :  { %5414 = vmax.xlane.f32.xlu1 %v5413_v18 }
0x194d   :  { %v5416_v19 = vsel %vm543_vm2, %v5410_v17, -inf }
0x194e   :  { %5417 = vmax.xlane.f32.xlu0 %v5416_v19 }
0x19d9   :  { %v5415_v20 = vpop.xlane.xlu1 %5414 }
0x19da   :  { %v5419_v21 = vsub.f32 %v5338_v9, %v5415_v20 }
0x19db   :  { %v5418_v24 = vpop.xlane.xlu0 %5417 }
0x19dc   :  { %v5421_v25 = vmul.f32 1.442695, %v5419_v21  ;;  %v5420_v58 = vsub.f32 %v5410_v17, %v5418_v24 }
0x19de   :  { %8109 = vpow2.f32 %v5421_v25  ;;  %v5423_v26 = vmul.f32 1.442695, %v5420_v58 }
0x19e0   :  { %8111 = vpow2.f32 %v5423_v26 }
0x19e8   :  { %v8110_v40 = vpop.eup %8109 }
0x19e9   :  { %v5425_v27 = vsel %vm543_vm2, %v8110_v40, 0.0 }
0x19ea   :  { %v8112_v31 = vpop.eup %8111  ;;  %5426 = vadd.xlane.f32.xlu1 %v5425_v27 }
0x19eb   :  { %v5428_v32 = vsel %vm543_vm2, %v8112_v31, 0.0 }
0x19ec   :  { %5429 = vadd.xlane.f32.xlu0 %v5428_v32 }
0x1a77   :  { %v5427_v2 = vpop.xlane.xlu1 %5426 }
0x1a78   :  { %8113 = vrcp.f32 %v5427_v2 }
0x1a79   :  { %v5430_v33 = vpop.xlane.xlu0 %5429 }
0x1a7a   :  { %8115 = vrcp.f32 %v5430_v33 }
0x1a82   :  { %v8114_v34 = vpop.eup %8113 }
0x1a83   :  { %v5435_v63 = vmul.f32 %v8114_v34, %v8110_v40 }
0x1a84   :  { %v8116_v22 = vpop.eup %8115 }
0x1a85   :  { %v5436_v39 = vmul.f32 %v8116_v22, %v8112_v31  ;;  %7566 = vmatmul.mubr.msk.f32.vlgmr.msra.gmra.mrb[50].mxu0 %vm568_vm3, %v5435_v63 }
0x1a86   :  { %7917 = vmatpush3.bf16.msra.mxu0 %v8417_v37  ;;  %7581 = vmatprep.mubr.msk.f32.mxu0 %vm8245_vm0, %v8246_v1 }
0x1a87   :  { %7571 = vmatmul.mubr.msk.f32.vlgmr.msra.gmra.mrb[68].mxu1 %vm568_vm3, %v5436_v39  ;;  %7918 = vmatprep.subr.bf16.mxu0 %v8244_v0 }
0x1a88   :  { %7929 = vmatpush3.bf16.msra.mxu1 %v8413_v28  ;;  %7603 = vmatprep.mubr.msk.f32.mxu1 %vm8245_vm0, %v8246_v1 }
0x1a89   :  { %7930 = vmatprep.subr.bf16.mxu1 %v8244_v0 }
0x1a8a   :  { %7920 = vmatpush3.bf16.msra.mxu0 %v8427_v45 }
0x1a8b   :  { %7921 = vmatprep.subr.bf16.mxu0 %v8244_v0 }
0x1a8c   :  { %7932 = vmatpush3.bf16.msra.mxu1 %v8419_v38 }
0x1a8d   :  { %7582 = vmatmul.mubr.msk.f32.vlgmr.msra.gmra.mrb[52].mxu0 %vm119_vm1, %v8991_v29  ;;  %7933 = vmatprep.subr.bf16.mxu1 %v8244_v0 }
0x1a8e   :  { %7923 = vmatpush3.bf16.msra.mxu0 %v8441_v52  ;;  %7592 = vmatprep.mubr.msk.f32.mxu0 %vm8245_vm0, %v8246_v1 }
0x1a8f   :  { %7604 = vmatmul.mubr.msk.f32.vlgmr.msra.gmra.mrb[70].mxu1 %vm119_vm1, %v8991_v29  ;;  %7924 = vmatprep.subr.bf16.mxu0 %v8244_v0 }
0x1a90   :  { %7935 = vmatpush3.bf16.msra.mxu1 %v8429_v46  ;;  %7614 = vmatprep.mubr.msk.f32.mxu1 %vm8245_vm0, %v8246_v1 }
0x1a91   :  { %7936 = vmatprep.subr.bf16.mxu1 %v8244_v0 }
0x1a92   :  { %7926 = vmatpush3.bf16.msra.mxu0 %v8470_v57 }
0x1a93   :  { %7939 = vmatprep.subr.bf16.mxu0 %v8244_v0 }
0x1a94   :  { %7938 = vmatpush3.bf16.msra.mxu1 %v8439_v51 }
0x1a95   :  { %7945 = vmatprep.subr.bf16.mxu1 %v8244_v0 }
0x1a97   :  { %7615 = vmatmul.mubr.msk.f32.vlgmr.msra.gmra.mrb[72].mxu1 %vm119_vm1, %v8991_v29 }
0x1a98   :  { %7947 = vmatpush3.bf16.msra.mxu1 %v8328_v13  ;;  %7636 = vmatprep.mubr.msk.f32.mxu1 %vm8245_vm0, %v8246_v1 }
0x1a99   :  { %7948 = vmatprep.subr.bf16.mxu1 %v8244_v0 }
0x1a9c   :  { %7950 = vmatpush3.bf16.msra.mxu1 %v8331_v15 }
0x1a9d   :  { %7644 = vmatprep.subr.mxu1 %v8246_v1 }
0x1a9f   :  { %7637 = vmatmul.mubr.msk.f32.vlgmr.msra.gmra.mrb[74].mxu1 %vm119_vm1, %v8991_v29 }
0x1aa0   :  { %7646 = vmatprep.mubr.msk.f32.mxu1 %vm8245_vm0, %v8246_v1 }
0x1aa5   :  { %7645 = vmatpush3.xpose.msk.msra.mxu1 %vm119_vm1, %v8751_v44 }
0x1aa6   :  { %7654 = vmatprep.subr.mxu1 %v8246_v1 }
0x1b58   :  { %v5506_v13 = vpop.f32.mrb[50].mxu0 }
0x1b59   :  { %v7567_v28 = vpop.f32.mrb[51].mxu0 }
0x1b5a   :  { %v5579_v38 = vpop.f32.mrb[68].mxu1 }
0x1b5b   :  { %v5657_v46 = vrot.slane %v5579_v38, 7  ;;  %v7572_v51 = vpop.f32.mrb[69].mxu1 }
0x1b5d   :  { %v5658_v15 = vsel %vm790_vm4, %v5657_v46, %v5506_v13 }
0x1b5e   :  { %7593 = vmatmul.mubr.msk.f32.vlgmr.msra.gmra.mrb[52].mxu0 %vm119_vm1, %v5658_v15 }
0x1b5f   :  { %7941 = vmatpush3.bf16.msra.mxu0 %v8474_v4  ;;  %7625 = vmatprep.mubr.msk.f32.mxu0 %vm8245_vm0, %v8246_v1 }
0x1b60   :  { %7942 = vmatprep.subr.bf16.mxu0 %v8244_v0 }
0x1b62   :  { %v5824_v42 = vpop.f32.mrb[70].mxu1 }
0x1b63   :  { %v5825_v43 = vadd.f32 %v8765_v60, %v5824_v42  ;;  %v7605_v61 = vpop.f32.mrb[71].mxu1  ;;  %7944 = vmatpush3.bf16.msra.mxu0 %v8479_v10 }
0x1b64   :  { %7639 = vmatprep.subr.mxu0 %v8246_v1 }
0x1b65   :  { %v6692_v47 = vmul.f32 -1.442695, %v5825_v43 }
0x1b66   :  { %7626 = vmatmul.mubr.msk.f32.vlgmr.msra.gmra.mrb[54].mxu0 %vm119_vm1, %v8991_v29 }
0x1b67   :  { %8117 = vpow2.f32 %v6692_v47  ;;  %7641 = vmatprep.mubr.msk.f32.mxu0 %vm8245_vm0, %v8246_v1 }
0x1b6a   :  { %v5900_v4 = vpop.f32.mrb[72].mxu1 }
0x1b6b   :  { %v7616_v12 = vpop.f32.mrb[73].mxu1  ;;  %v5901_v3 = vadd.f32 %v8788_v41, %v5900_v4 }
0x1b6c   :  { %7640 = vmatpush3.xpose.msk.msra.mxu0 %vm119_vm1, %v8774_v6 }
0x1b6d   :  { %7649 = vmatprep.subr.mxu0 %v8246_v1  ;;  %v6694_v36 = vmul.f32 -1.442695, %v5901_v3 }
0x1b71   :  { %v8118_v60 = vpop.eup %8117 }
0x1b72   :  { %v5831_v49 = vadd.f32 1.0, %v8118_v60  ;;  %v6046_v10 = vpop.f32.mrb[74].mxu1 }
0x1b73   :  { %v7638_v50 = vpop.f32.mrb[75].mxu1  ;;  %v6047_v53 = vadd.f32 %v8782_v11, %v6046_v10 }
0x1b74   :  { %8119 = vrcp.f32 %v5831_v49 }
0x1b75   :  { %8121 = vpow2.f32 %v6694_v36 }
0x1b7e   :  { %v8120_v59 = vpop.eup %8119 }
0x1b7f   :  { %v6050_v62 = vmul.f32 %v8120_v59, %v6047_v53  ;;  %v8122_v8 = vpop.eup %8121 }
0x1b80   :  { %v5907_v14 = vadd.f32 1.0, %v8122_v8 }
0x1b82   :  { %8123 = vrcp.f32 %v5907_v14 }
0x1b8c   :  { %v8124_v18 = vpop.eup %8123 }
0x1b8d   :  { %v6053_v19 = vsub.f32 1.0, %v8124_v18  ;;  %v6055_v21 = vmul.f32 %v8124_v18, %v8991_v29 }
0x1c31   :  { %v5727_v5 = vpop.f32.mrb[52].mxu0 }
0x1c32   :  { %v5738_v55 = vrot.slane %v5727_v5, %v8382_v54  ;;  %v7594_v7 = vpop.f32.mrb[53].mxu0 }
0x1c34   :  { %v5739_v23 = vcombine.high %v5738_v55, %v5738_v55  ;;  %v5746_v9 = vrot.slane %v5738_v55, %v8382_v54 }
0x1c36   :  { %v5753_v16 = vrot.slane %v5739_v23, %v8382_v54  ;;  %5756 = vst.msk [vmem:[#allocation8 + $0x6] sm:$0x1] %vm889_vm5, %v5746_v9 }
0x1c38   :  { %5757 = vst.msk [vmem:[#allocation8 + $0xe] sm:$0x1] %vm889_vm5, %v5753_v16 }
0x1c39   :  { %v5976_v11 = vpop.f32.mrb[54].mxu0 }
0x1c3a   :  { %v5977_v41 = vadd.f32 %v8799_v30, %v5976_v11  ;;  %v7627_v17 = vpop.f32.mrb[55].mxu0 }
0x1c3c   :  { %v6051_v35 = vadd.f32 %v6050_v62, %v5977_v41 }
0x1c3e   :  { %8125 = vtanh.f32 %v6051_v35 }
0x1c48   :  { %v8126_v20 = vpop.eup %8125 }
0x1c49   :  { %v6054_v24 = vmul.f32 %v8126_v20, %v6053_v19 }
0x1c4b   :  { %v6056_v25 = vadd.f32 %v6055_v21, %v6054_v24 }
0x1c4d   :  { %v6064_v58 = vrot.slane %v6056_v25, %v8382_v54 }
0x1c4f   :  { %v6072_v26 = vrot.slane %v6064_v58, %v8382_v54  ;;  %v6065_v40 = vcombine.high %v6064_v58, %v6064_v58 }
0x1c51   :  { %7642 = vmatmul.mubr.msk.f32.vlgmr.msra.gmra.mrb[56].mxu0 %vm119_vm1, %v6072_v26  ;;  %v6079_v27 = vrot.slane %v6065_v40, %v8382_v54 }
0x1c52   :  { %7650 = vmatpush3.msra.mxu0 %v8774_v6  ;;  %7651 = vmatprep.mubr.msk.f32.mxu0 %vm8245_vm0, %v8246_v1 }
0x1c53   :  { %7647 = vmatmul.mubr.msk.f32.vlgmr.msra.gmra.mrb[76].mxu1 %vm119_vm1, %v6079_v27  ;;  %7951 = vmatprep.subr.bf16.mxu0 %v8244_v0 }
0x1c54   :  { %7655 = vmatpush3.msra.mxu1 %v8751_v44  ;;  %7656 = vmatprep.mubr.msk.f32.mxu1 %vm8245_vm0, %v8246_v1 }
0x1d24   :  { %v6148_v30 = vpop.f32.mrb[56].mxu0 }
0x1d25   :  { %v6149_v29 = vadd.f32 %v8819_v48, %v6148_v30  ;;  %v7643_v31 = vpop.f32.mrb[57].mxu0 }
0x1d26   :  { %v6220_v32 = vpop.f32.mrb[76].mxu1 }
0x1d27   :  { %v6221_v2 = vadd.f32 %v8822_v56, %v6220_v32  ;;  %v7648_v6 = vpop.f32.mrb[77].mxu1  ;;  %v6224_v33 = vsel %vm543_vm2, %v6149_v29, -inf }
0x1d28   :  { %6225 = vmax.xlane.f32.xlu1 %v6224_v33 }
0x1d29   :  { %v6227_v34 = vsel %vm543_vm2, %v6221_v2, -inf }
0x1d2a   :  { %6228 = vmax.xlane.f32.xlu0 %v6227_v34 }
0x1db5   :  { %v6226_v63 = vpop.xlane.xlu1 %6225 }
0x1db6   :  { %v6230_v22 = vsub.f32 %v6149_v29, %v6226_v63 }
0x1db7   :  { %v6229_v44 = vpop.xlane.xlu0 %6228 }
0x1db8   :  { %v6232_v39 = vmul.f32 1.442695, %v6230_v22  ;;  %v6231_v13 = vsub.f32 %v6221_v2, %v6229_v44 }
0x1dba   :  { %8127 = vpow2.f32 %v6232_v39  ;;  %v6234_v28 = vmul.f32 1.442695, %v6231_v13 }
0x1dbc   :  { %8129 = vpow2.f32 %v6234_v28 }
0x1dc4   :  { %v8128_v48 = vpop.eup %8127 }
0x1dc5   :  { %v6236_v38 = vsel %vm543_vm2, %v8128_v48, 0.0 }
0x1dc6   :  { %v8130_v46 = vpop.eup %8129  ;;  %6237 = vadd.xlane.f32.xlu1 %v6236_v38 }
0x1dc7   :  { %v6239_v56 = vsel %vm543_vm2, %v8130_v46, 0.0 }
0x1dc8   :  { %6240 = vadd.xlane.f32.xlu0 %v6239_v56 }
0x1e53   :  { %v6238_v51 = vpop.xlane.xlu1 %6237 }
0x1e54   :  { %8131 = vrcp.f32 %v6238_v51 }
0x1e55   :  { %v6241_v15 = vpop.xlane.xlu0 %6240 }
0x1e56   :  { %8133 = vrcp.f32 %v6241_v15 }
0x1e5e   :  { %v8132_v42 = vpop.eup %8131 }
0x1e5f   :  { %v6246_v43 = vmul.f32 %v8132_v42, %v8128_v48 }
0x1e60   :  { %v8134_v61 = vpop.eup %8133 }
0x1e61   :  { %v6247_v47 = vmul.f32 %v8134_v61, %v8130_v46  ;;  %7652 = vmatmul.mubr.msk.f32.vlgmr.msra.gmra.mrb[58].mxu0 %vm568_vm3, %v6246_v43 }
0x1e62   :  { %7953 = vmatpush3.bf16.msra.mxu0 %v8417_v37  ;;  %7667 = vmatprep.mubr.msk.f32.mxu0 %vm8245_vm0, %v8246_v1 }
0x1e63   :  { %7657 = vmatmul.mubr.msk.f32.vlgmr.msra.gmra.mrb[78].mxu1 %vm568_vm3, %v6247_v47  ;;  %7954 = vmatprep.subr.bf16.mxu0 %v8244_v0 }
0x1e66   :  { %7956 = vmatpush3.bf16.msra.mxu0 %v8427_v45 }
0x1e67   :  { %7957 = vmatprep.subr.bf16.mxu0 %v8244_v0 }
0x1e69   :  { %7668 = vmatmul.mubr.msk.f32.vlgmr.msra.gmra.mrb[60].mxu0 %vm119_vm1, %v6056_v25 }
0x1e6a   :  { %7959 = vmatpush3.bf16.msra.mxu0 %v8441_v52  ;;  %7678 = vmatprep.mubr.msk.f32.mxu0 %vm8245_vm0, %v8246_v1 }
0x1e6b   :  { %7960 = vmatprep.subr.bf16.mxu0 %v8244_v0 }
0x1e6e   :  { %7962 = vmatpush3.bf16.msra.mxu0 %v8470_v57 }
0x1f34   :  { %v6317_v37 = vpop.f32.mrb[58].mxu0 }
0x1f35   :  { %v7653_v4 = vpop.f32.mrb[59].mxu0 }
0x1f36   :  { %v6390_v12 = vpop.f32.mrb[78].mxu1 }
0x1f37   :  { %v6468_v60 = vrot.slane %v6390_v12, 7  ;;  %v7658_v49 = vpop.f32.mrb[79].mxu1 }
0x1f39   :  { %v6469_v45 = vsel %vm790_vm4, %v6468_v60, %v6317_v37 }
0x1f3a   :  { %7679 = vmatmul.mubr.msk.f32.vlgmr.msra.gmra.mrb[60].mxu0 %vm119_vm1, %v6469_v45 }
0x200d   :  { %v6538_v10 = vpop.f32.mrb[60].mxu0 }
0x200e   :  { %v6549_v50 = vrot.slane %v6538_v10, %v8382_v54  ;;  %v7680_v52 = vpop.f32.mrb[61].mxu0 }
0x2010   :  { %v6550_v1 = vcombine.high %v6549_v50, %v6549_v50  ;;  %v6557_v0 = vrot.slane %v6549_v50, %v8382_v54 }
0x2012   :  { %v6564_v57 = vrot.slane %v6550_v1, %v8382_v54  ;;  %6567 = vst.msk [vmem:[#allocation8 + $0x7] sm:$0x1] %vm889_vm5, %v6557_v0 }
0x2014   :  { %6568 = vst.msk [vmem:[#allocation8 + $0xf] sm:$0x1] %vm889_vm5, %v6564_v57 }
0x2015   :  { %8220 = shalt.err (!%p8217_p0)
}
0x2016   :  { %s8221_s27 = scalar_lea.hbm %s9142_s5, 256 }
0x2017   :  { %p8222_p1 = scmp.ne.s32.totalorder %s9142_s5, %s8221_s27  ;;  %p8225_p2 = scmp.lt.u32.totalorder %s8221_s27, %s9142_s5 }
0x2019   :  { %p8227_p3 = pnand %p8225_p2, %p8222_p1 }
0x201b   :  { %8230 = shalt.err (!%p8227_p3)
}
0x201c   :  { %6580 = dma.vmem_to_hbm [thread:$0]  %s6575_s23, 256, %s9142_s5, [#allocation4], %s8241_s2, %s8241_s2, %s8242_s17  }
0x201d   :  { %8235 = dma.done.wait [#allocation4], 256  }
0x201e   :  { %8236 = vsyncadd [#allocation4], 4294967040 }
0x201f   :  { %6584 = vsyncpa [#allocation3], 1 }
0x2020   :  { %6585 = vsyncpa [#allocation6], 1 }
0x2021   :  { %6586 = vsyncpa [#allocation4], 1 }

</bundles_post_ra>
